<compile_context>
chip_gen: v6e
topology: v6e:2x2x1
jax: 0.10.0
libtpu: 0.0.40
codegen_flags: <defaults>
</compile_context>

<pallas_src>
import math

import jax
import jax.numpy as jnp
from jax.experimental import pallas as pl
from jax.experimental.pallas import tpu as pltpu


HIDDEN = 256     # hidden_dim of SdfDecoder_pointnet
DIM = 3          # point dimension
DIM_PAD = 8      # fc_pos contraction dim padded to 8 (zero-filled)
C_DIM = 1        # sdf scalar output
TM = 512         # rows (points) per grid step


def _sdf_mlp_kernel(p_ref,
                    wpos_ref, bpos_ref,
                    w0_ref, b0_ref,
                    w1_ref, b1_ref,
                    w2_ref, b2_ref,
                    w3_ref, b3_ref,
                    wct_ref, bc_ref,
                    out_ref):
    """One tile of TM points through the full SdfDecoder_pointnet MLP.

    bf16 matmul operands, f32 accumulation; dropout is a no-op in eval mode.
    """
    # fc_pos + ReLU   (K padded to 8; padded columns/rows are zero)
    acc = jnp.dot(p_ref[...], wpos_ref[...], preferred_element_type=jnp.float32)
    net = jnp.maximum((acc + bpos_ref[...]).astype(jnp.bfloat16), 0.0)

    # fc_0 .. fc_3 + ReLU  (statically unrolled)
    for w_ref, b_ref in ((w0_ref, b0_ref), (w1_ref, b1_ref),
                         (w2_ref, b2_ref), (w3_ref, b3_ref)):
        acc = jnp.dot(net, w_ref[...], preferred_element_type=jnp.float32)
        net = jnp.maximum((acc + b_ref[...]).astype(jnp.bfloat16), 0.0)

    # fc_c + Tanh : N=1, so do it on VPU (multiply) + XLU (lane reduce) + EUP (tanh)
    # instead of burning an MXU pass for one useful output lane.
    c = jnp.sum(net * wct_ref[...], axis=-1, keepdims=True) + bc_ref[...]
    out_ref[...] = jnp.tanh(c).astype(out_ref.dtype)


def sdf_decoder_pallas(p_flat, kernel_params, tm=TM):
    """p_flat: (M, 3) float32 (any M).  Returns (M, 1) float32."""
    M = p_flat.shape[0]
    M_pad = ((M + tm - 1) // tm) * tm

    # Pad rows to a multiple of TM and the contraction dim to DIM_PAD, cast to bf16.
    p_pad = jnp.pad(p_flat.astype(jnp.float32),
                    ((0, M_pad - M), (0, DIM_PAD - DIM))).astype(jnp.bfloat16)

    (wpos, bpos, w0, b0, w1, b1, w2, b2, w3, b3, wct, bc) = kernel_params

    def full_spec(arr):
        # untiled parameter: one block = whole array, same block every grid step
        # (constant index_map => stays resident in VMEM, no re-DMA per step)
        n = arr.ndim
        return pl.BlockSpec(arr.shape, lambda i, _n=n: (0,) * _n)

    grid_spec = pltpu.PrefetchScalarGridSpec(
        num_scalar_prefetch=0,
        grid=(M_pad // tm,),
        in_specs=[
            pl.BlockSpec((tm, DIM_PAD), lambda i: (i, 0)),   # points tile
            full_spec(wpos), full_spec(bpos),
            full_spec(w0), full_spec(b0),
            full_spec(w1), full_spec(b1),
            full_spec(w2), full_spec(b2),
            full_spec(w3), full_spec(b3),
            full_spec(wct), full_spec(bc),
        ],
        out_specs=pl.BlockSpec((tm, C_DIM), lambda i: (i, 0)),
    )

    flops = 2 * M_pad * (DIM_PAD * HIDDEN + 4 * HIDDEN * HIDDEN + HIDDEN * C_DIM)
    weight_bytes = sum(int(x.size) * x.dtype.itemsize for x in kernel_params)
    cost = pl.CostEstimate(
        flops=flops,
        transcendentals=M_pad,                                   # tanh per point
        bytes_accessed=M_pad * DIM_PAD * 2 + M_pad * 4 + weight_bytes)

    out = pl.pallas_call(
        _sdf_mlp_kernel,
        out_shape=jax.ShapeDtypeStruct((M_pad, C_DIM), jnp.float32),
        grid_spec=grid_spec,
        compiler_params=pltpu.CompilerParams(
            dimension_semantics=("parallel",),        # megacore-splittable on v7x
            vmem_limit_bytes=32 * 1024 * 1024),       # safe on v5e/v6e/v7x
        cost_estimate=cost,
    )(p_pad, wpos, bpos, w0, b0, w1, b1, w2, b2, w3, b3, wct, bc)

    return out[:M]


def init_sdf_decoder_params(key):
    """PyTorch nn.Linear default init: U(-1/sqrt(fan_in), 1/sqrt(fan_in)); f32."""
    def linear(k, fan_in, fan_out):
        kw, kb = jax.random.split(k)
        bound = 1.0 / math.sqrt(fan_in)
        # stored as (in, out) so the kernel computes x @ W  (== x @ W_pt.T)
        w = jax.random.uniform(kw, (fan_in, fan_out), jnp.float32, -bound, bound)
        b = jax.random.uniform(kb, (1, fan_out), jnp.float32, -bound, bound)
        return w, b

    keys = jax.random.split(key, 6)
    wpos, bpos = linear(keys[0], DIM, HIDDEN)
    w0, b0 = linear(keys[1], HIDDEN, HIDDEN)
    w1, b1 = linear(keys[2], HIDDEN, HIDDEN)
    w2, b2 = linear(keys[3], HIDDEN, HIDDEN)
    w3, b3 = linear(keys[4], HIDDEN, HIDDEN)
    wc, bc = linear(keys[5], HIDDEN, C_DIM)
    return (wpos, bpos, w0, b0, w1, b1, w2, b2, w3, b3, wc, bc)


def prepare_kernel_params(params_f32):
    """Convert f32 (in,out) params to the layout/dtypes the kernel expects:
    bf16 matmul weights (fc_pos padded to K=8), f32 biases, fc_c as a (1,256) f32 row."""
    (wpos, bpos, w0, b0, w1, b1, w2, b2, w3, b3, wc, bc) = params_f32
    wpos_pad = jnp.pad(wpos, ((0, DIM_PAD - DIM), (0, 0))).astype(jnp.bfloat16)
    bf16 = lambda w: w.astype(jnp.bfloat16)
    return (wpos_pad, bpos,
            bf16(w0), b0, bf16(w1), b1, bf16(w2), b2, bf16(w3), b3,
            wc.T, bc)   # wc.T: (1, HIDDEN) f32, bc: (1, 1) f32


def decoder_forward(inp, on_data, kernel_params):
    """Eval-mode Decoder.forward(input, on_data) with predict_sp=False,
    output_warped_points=False, mode='inverse'.

    inp:     (B, N, 3)
    on_data: (B, O, 3)
    returns: (B, N + O, 1)
    """
    B, N, _ = inp.shape
    _, O, _ = on_data.shape

    # input_all = torch.cat([input, on_data], dim=1)
    input_all = jnp.concatenate([inp, on_data], axis=1)        # (B, N+O, 3)

    # TODO(synk): SimpleNVP warper not provided; identity warp (p_final = input_all).
    p_final = input_all

    # x = self.sdf_decoder(p_final); x = x.reshape(B, -1, 1)
    p_flat = p_final.reshape(B * (N + O), DIM).astype(jnp.float32)
    x = sdf_decoder_pallas(p_flat, kernel_params)              # (B*(N+O), 1)
    return x.reshape(B, -1, 1)


def decoder_reference(inp, on_data, params_f32):
    """Pure-JAX reference of the same forward (bf16 operands, f32 accumulation)."""
    (wpos, bpos, w0, b0, w1, b1, w2, b2, w3, b3, wc, bc) = params_f32
    p = jnp.concatenate([inp, on_data], axis=1).astype(jnp.float32)
    B = p.shape[0]
    x = p.reshape(-1, DIM).astype(jnp.bfloat16)

    def layer(x_bf16, w, b):
        h = jnp.dot(x_bf16, w.astype(jnp.bfloat16),
                    preferred_element_type=jnp.float32) + b
        return jnp.maximum(h, 0.0).astype(jnp.bfloat16)

    net = layer(x, wpos, bpos)
    for w, b in ((w0, b0), (w1, b1), (w2, b2), (w3, b3)):
        net = layer(net, w, b)
    c = jnp.tanh(jnp.sum(net.astype(jnp.float32) * wc.T, axis=-1, keepdims=True) + bc)
    return c.reshape(B, -1, 1)


if __name__ == "__main__":
    key = jax.random.PRNGKey(0)
    k_params, k_in, k_on = jax.random.split(key, 3)

    B, N, O = 2, 96, 32                   # N + O = 128 points per batch -> M = 256
    inp = jax.random.normal(k_in, (B, N, DIM), jnp.float32)
    on_data = jax.random.normal(k_on, (B, O, DIM), jnp.float32)

    params_f32 = init_sdf_decoder_params(k_params)
    kernel_params = prepare_kernel_params(params_f32)

    out = decoder_forward(inp, on_data, kernel_params)
    out = jax.block_until_ready(out)

    ref = decoder_reference(inp, on_data, params_f32)
    assert out.shape == (B, N + O, 1), out.shape
    max_err = float(jnp.max(jnp.abs(out - ref)))
    assert max_err < 2e-2, f"mismatch vs pure-JAX reference (max abs err {max_err})"

    print("KERNEL_OK")
</pallas_src>

<mosaic_0001>
module attributes {stable_mosaic.version = 11 : i64} {
  func.func @_sdf_mlp_kernel(%arg0: i32, %arg1: memref<512x8xbf16, #tpu.memory_space<vmem>>, %arg2: memref<8x256xbf16, #tpu.memory_space<vmem>>, %arg3: memref<1x256xf32, #tpu.memory_space<vmem>>, %arg4: memref<256x256xbf16, #tpu.memory_space<vmem>>, %arg5: memref<1x256xf32, #tpu.memory_space<vmem>>, %arg6: memref<256x256xbf16, #tpu.memory_space<vmem>>, %arg7: memref<1x256xf32, #tpu.memory_space<vmem>>, %arg8: memref<256x256xbf16, #tpu.memory_space<vmem>>, %arg9: memref<1x256xf32, #tpu.memory_space<vmem>>, %arg10: memref<256x256xbf16, #tpu.memory_space<vmem>>, %arg11: memref<1x256xf32, #tpu.memory_space<vmem>>, %arg12: memref<1x256xf32, #tpu.memory_space<vmem>>, %arg13: memref<1x1xf32, #tpu.memory_space<vmem>>, %arg14: memref<512x1xf32, #tpu.memory_space<vmem>>) attributes {dimension_semantics = [#tpu.dimension_semantics<parallel>], iteration_bounds = array<i64: 1>, scalar_prefetch = 0 : i64, scratch_operands = 0 : i64, tpu.core_type = #tpu.core_type<tc>, window_params = [{transform_indices = @transform_0, window_bounds = array<i64: 512, 8>}, {pipeline_mode = #tpu.pipeline_mode<synchronous>, transform_indices = @transform_1, window_bounds = array<i64: 8, 256>}, {pipeline_mode = #tpu.pipeline_mode<synchronous>, transform_indices = @transform_2, window_bounds = array<i64: 1, 256>}, {pipeline_mode = #tpu.pipeline_mode<synchronous>, transform_indices = @transform_3, window_bounds = array<i64: 256, 256>}, {pipeline_mode = #tpu.pipeline_mode<synchronous>, transform_indices = @transform_4, window_bounds = array<i64: 1, 256>}, {pipeline_mode = #tpu.pipeline_mode<synchronous>, transform_indices = @transform_5, window_bounds = array<i64: 256, 256>}, {pipeline_mode = #tpu.pipeline_mode<synchronous>, transform_indices = @transform_6, window_bounds = array<i64: 1, 256>}, {pipeline_mode = #tpu.pipeline_mode<synchronous>, transform_indices = @transform_7, window_bounds = array<i64: 256, 256>}, {pipeline_mode = #tpu.pipeline_mode<synchronous>, transform_indices = @transform_8, window_bounds = array<i64: 1, 256>}, {pipeline_mode = #tpu.pipeline_mode<synchronous>, transform_indices = @transform_9, window_bounds = array<i64: 256, 256>}, {pipeline_mode = #tpu.pipeline_mode<synchronous>, transform_indices = @transform_10, window_bounds = array<i64: 1, 256>}, {pipeline_mode = #tpu.pipeline_mode<synchronous>, transform_indices = @transform_11, window_bounds = array<i64: 1, 256>}, {pipeline_mode = #tpu.pipeline_mode<synchronous>, transform_indices = @transform_12, window_bounds = array<i64: 1, 1>}, {transform_indices = @transform_13, window_bounds = array<i64: 512, 1>}]} {
    %c0 = arith.constant 0 : index
    %c0_0 = arith.constant 0 : index
    %0 = vector.load %arg1[%c0, %c0_0] : memref<512x8xbf16, #tpu.memory_space<vmem>>, vector<512x8xbf16>
    %c0_1 = arith.constant 0 : index
    %c0_2 = arith.constant 0 : index
    %1 = vector.load %arg2[%c0_1, %c0_2] : memref<8x256xbf16, #tpu.memory_space<vmem>>, vector<8x256xbf16>
    %cst = arith.constant dense<0.000000e+00> : vector<512x256xf32>
    %2 = tpu.matmul %0, %1, %cst {dimension_numbers = #tpu.dot_dimension_numbers<[1], [0], [0], [1], [0, 0, 1, 1], [], []>} : vector<512x8xbf16>, vector<8x256xbf16>, vector<512x256xf32> -> vector<512x256xf32>
    %c0_3 = arith.constant 0 : index
    %c0_4 = arith.constant 0 : index
    %3 = vector.load %arg3[%c0_3, %c0_4] : memref<1x256xf32, #tpu.memory_space<vmem>>, vector<1x256xf32>
    %4 = vector.broadcast %3 : vector<1x256xf32> to vector<512x256xf32>
    %5 = arith.addf %2, %4 : vector<512x256xf32>
    %6 = arith.truncf %5 : vector<512x256xf32> to vector<512x256xbf16>
    %cst_5 = arith.constant 0.000000e+00 : bf16
    %7 = vector.broadcast %cst_5 : bf16 to vector<512x256xbf16>
    %8 = arith.maximumf %6, %7 : vector<512x256xbf16>
    %c0_6 = arith.constant 0 : index
    %c0_7 = arith.constant 0 : index
    %9 = vector.load %arg4[%c0_6, %c0_7] : memref<256x256xbf16, #tpu.memory_space<vmem>>, vector<256x256xbf16>
    %cst_8 = arith.constant dense<0.000000e+00> : vector<512x256xf32>
    %10 = tpu.matmul %8, %9, %cst_8 {dimension_numbers = #tpu.dot_dimension_numbers<[1], [0], [0], [1], [0, 0, 1, 1], [], []>} : vector<512x256xbf16>, vector<256x256xbf16>, vector<512x256xf32> -> vector<512x256xf32>
    %c0_9 = arith.constant 0 : index
    %c0_10 = arith.constant 0 : index
    %11 = vector.load %arg5[%c0_9, %c0_10] : memref<1x256xf32, #tpu.memory_space<vmem>>, vector<1x256xf32>
    %12 = vector.broadcast %11 : vector<1x256xf32> to vector<512x256xf32>
    %13 = arith.addf %10, %12 : vector<512x256xf32>
    %14 = arith.truncf %13 : vector<512x256xf32> to vector<512x256xbf16>
    %cst_11 = arith.constant 0.000000e+00 : bf16
    %15 = vector.broadcast %cst_11 : bf16 to vector<512x256xbf16>
    %16 = arith.maximumf %14, %15 : vector<512x256xbf16>
    %c0_12 = arith.constant 0 : index
    %c0_13 = arith.constant 0 : index
    %17 = vector.load %arg6[%c0_12, %c0_13] : memref<256x256xbf16, #tpu.memory_space<vmem>>, vector<256x256xbf16>
    %cst_14 = arith.constant dense<0.000000e+00> : vector<512x256xf32>
    %18 = tpu.matmul %16, %17, %cst_14 {dimension_numbers = #tpu.dot_dimension_numbers<[1], [0], [0], [1], [0, 0, 1, 1], [], []>} : vector<512x256xbf16>, vector<256x256xbf16>, vector<512x256xf32> -> vector<512x256xf32>
    %c0_15 = arith.constant 0 : index
    %c0_16 = arith.constant 0 : index
    %19 = vector.load %arg7[%c0_15, %c0_16] : memref<1x256xf32, #tpu.memory_space<vmem>>, vector<1x256xf32>
    %20 = vector.broadcast %19 : vector<1x256xf32> to vector<512x256xf32>
    %21 = arith.addf %18, %20 : vector<512x256xf32>
    %22 = arith.truncf %21 : vector<512x256xf32> to vector<512x256xbf16>
    %cst_17 = arith.constant 0.000000e+00 : bf16
    %23 = vector.broadcast %cst_17 : bf16 to vector<512x256xbf16>
    %24 = arith.maximumf %22, %23 : vector<512x256xbf16>
    %c0_18 = arith.constant 0 : index
    %c0_19 = arith.constant 0 : index
    %25 = vector.load %arg8[%c0_18, %c0_19] : memref<256x256xbf16, #tpu.memory_space<vmem>>, vector<256x256xbf16>
    %cst_20 = arith.constant dense<0.000000e+00> : vector<512x256xf32>
    %26 = tpu.matmul %24, %25, %cst_20 {dimension_numbers = #tpu.dot_dimension_numbers<[1], [0], [0], [1], [0, 0, 1, 1], [], []>} : vector<512x256xbf16>, vector<256x256xbf16>, vector<512x256xf32> -> vector<512x256xf32>
    %c0_21 = arith.constant 0 : index
    %c0_22 = arith.constant 0 : index
    %27 = vector.load %arg9[%c0_21, %c0_22] : memref<1x256xf32, #tpu.memory_space<vmem>>, vector<1x256xf32>
    %28 = vector.broadcast %27 : vector<1x256xf32> to vector<512x256xf32>
    %29 = arith.addf %26, %28 : vector<512x256xf32>
    %30 = arith.truncf %29 : vector<512x256xf32> to vector<512x256xbf16>
    %cst_23 = arith.constant 0.000000e+00 : bf16
    %31 = vector.broadcast %cst_23 : bf16 to vector<512x256xbf16>
    %32 = arith.maximumf %30, %31 : vector<512x256xbf16>
    %c0_24 = arith.constant 0 : index
    %c0_25 = arith.constant 0 : index
    %33 = vector.load %arg10[%c0_24, %c0_25] : memref<256x256xbf16, #tpu.memory_space<vmem>>, vector<256x256xbf16>
    %cst_26 = arith.constant dense<0.000000e+00> : vector<512x256xf32>
    %34 = tpu.matmul %32, %33, %cst_26 {dimension_numbers = #tpu.dot_dimension_numbers<[1], [0], [0], [1], [0, 0, 1, 1], [], []>} : vector<512x256xbf16>, vector<256x256xbf16>, vector<512x256xf32> -> vector<512x256xf32>
    %c0_27 = arith.constant 0 : index
    %c0_28 = arith.constant 0 : index
    %35 = vector.load %arg11[%c0_27, %c0_28] : memref<1x256xf32, #tpu.memory_space<vmem>>, vector<1x256xf32>
    %36 = vector.broadcast %35 : vector<1x256xf32> to vector<512x256xf32>
    %37 = arith.addf %34, %36 : vector<512x256xf32>
    %38 = arith.truncf %37 : vector<512x256xf32> to vector<512x256xbf16>
    %cst_29 = arith.constant 0.000000e+00 : bf16
    %39 = vector.broadcast %cst_29 : bf16 to vector<512x256xbf16>
    %40 = arith.maximumf %38, %39 : vector<512x256xbf16>
    %c0_30 = arith.constant 0 : index
    %c0_31 = arith.constant 0 : index
    %41 = vector.load %arg12[%c0_30, %c0_31] : memref<1x256xf32, #tpu.memory_space<vmem>>, vector<1x256xf32>
    %42 = arith.extf %40 : vector<512x256xbf16> to vector<512x256xf32>
    %43 = vector.broadcast %41 : vector<1x256xf32> to vector<512x256xf32>
    %44 = arith.mulf %42, %43 : vector<512x256xf32>
    %cst_32 = arith.constant dense<0.000000e+00> : vector<512xf32>
    %45 = vector.multi_reduction <add>, %44, %cst_32 [1] : vector<512x256xf32> to vector<512xf32>
    %46 = vector.shape_cast %45 : vector<512xf32> to vector<512x1xf32>
    %c0_33 = arith.constant 0 : index
    %c0_34 = arith.constant 0 : index
    %47 = vector.load %arg13[%c0_33, %c0_34] : memref<1x1xf32, #tpu.memory_space<vmem>>, vector<1x1xf32>
    %48 = vector.broadcast %47 : vector<1x1xf32> to vector<512x1xf32>
    %49 = arith.addf %46, %48 : vector<512x1xf32>
    %50 = math.tanh %49 : vector<512x1xf32>
    %c0_35 = arith.constant 0 : index
    %c0_36 = arith.constant 0 : index
    %51 = vector.load %arg14[%c0_35, %c0_36] : memref<512x1xf32, #tpu.memory_space<vmem>>, vector<512x1xf32>
    tpu.vector_store %arg14[%c0_35, %c0_36], %50 {strides = array<i32>} : memref<512x1xf32, #tpu.memory_space<vmem>>, vector<512x1xf32>,
    return
  }
  func.func @transform_0(%arg0: i32) -> (i32, i32) {
    %c0_i32 = arith.constant 0 : i32
    %c0_i32_0 = arith.constant 0 : i32
    return %arg0, %c0_i32 : i32, i32
  }
  func.func @transform_1(%arg0: i32) -> (i32, i32) {
    %c0_i32 = arith.constant 0 : i32
    %c0_i32_0 = arith.constant 0 : i32
    %c0_i32_1 = arith.constant 0 : i32
    return %c0_i32, %c0_i32_0 : i32, i32
  }
  func.func @transform_2(%arg0: i32) -> (i32, i32) {
    %c0_i32 = arith.constant 0 : i32
    %c0_i32_0 = arith.constant 0 : i32
    %c0_i32_1 = arith.constant 0 : i32
    return %c0_i32, %c0_i32_0 : i32, i32
  }
  func.func @transform_3(%arg0: i32) -> (i32, i32) {
    %c0_i32 = arith.constant 0 : i32
    %c0_i32_0 = arith.constant 0 : i32
    %c0_i32_1 = arith.constant 0 : i32
    return %c0_i32, %c0_i32_0 : i32, i32
  }
  func.func @transform_4(%arg0: i32) -> (i32, i32) {
    %c0_i32 = arith.constant 0 : i32
    %c0_i32_0 = arith.constant 0 : i32
    %c0_i32_1 = arith.constant 0 : i32
    return %c0_i32, %c0_i32_0 : i32, i32
  }
  func.func @transform_5(%arg0: i32) -> (i32, i32) {
    %c0_i32 = arith.constant 0 : i32
    %c0_i32_0 = arith.constant 0 : i32
    %c0_i32_1 = arith.constant 0 : i32
    return %c0_i32, %c0_i32_0 : i32, i32
  }
  func.func @transform_6(%arg0: i32) -> (i32, i32) {
    %c0_i32 = arith.constant 0 : i32
    %c0_i32_0 = arith.constant 0 : i32
    %c0_i32_1 = arith.constant 0 : i32
    return %c0_i32, %c0_i32_0 : i32, i32
  }
  func.func @transform_7(%arg0: i32) -> (i32, i32) {
    %c0_i32 = arith.constant 0 : i32
    %c0_i32_0 = arith.constant 0 : i32
    %c0_i32_1 = arith.constant 0 : i32
    return %c0_i32, %c0_i32_0 : i32, i32
  }
  func.func @transform_8(%arg0: i32) -> (i32, i32) {
    %c0_i32 = arith.constant 0 : i32
    %c0_i32_0 = arith.constant 0 : i32
    %c0_i32_1 = arith.constant 0 : i32
    return %c0_i32, %c0_i32_0 : i32, i32
  }
  func.func @transform_9(%arg0: i32) -> (i32, i32) {
    %c0_i32 = arith.constant 0 : i32
    %c0_i32_0 = arith.constant 0 : i32
    %c0_i32_1 = arith.constant 0 : i32
    return %c0_i32, %c0_i32_0 : i32, i32
  }
  func.func @transform_10(%arg0: i32) -> (i32, i32) {
    %c0_i32 = arith.constant 0 : i32
    %c0_i32_0 = arith.constant 0 : i32
    %c0_i32_1 = arith.constant 0 : i32
    return %c0_i32, %c0_i32_0 : i32, i32
  }
  func.func @transform_11(%arg0: i32) -> (i32, i32) {
    %c0_i32 = arith.constant 0 : i32
    %c0_i32_0 = arith.constant 0 : i32
    %c0_i32_1 = arith.constant 0 : i32
    return %c0_i32, %c0_i32_0 : i32, i32
  }
  func.func @transform_12(%arg0: i32) -> (i32, i32) {
    %c0_i32 = arith.constant 0 : i32
    %c0_i32_0 = arith.constant 0 : i32
    %c0_i32_1 = arith.constant 0 : i32
    return %c0_i32, %c0_i32_0 : i32, i32
  }
  func.func @transform_13(%arg0: i32) -> (i32, i32) {
    %c0_i32 = arith.constant 0 : i32
    %c0_i32_0 = arith.constant 0 : i32
    return %arg0, %c0_i32 : i32, i32
  }
}

</mosaic_0001>

<bundles_post_ra>
// kernel: tpu_custom_call.1
= control target key start
LH: loop header
LB: loop body
LE: loop exit
PB: predicated region body
PF: predicated region fallthrough
CT: control target
= control target key end

     0   :  { %s6953_s0 = inlined_call_operand.vmem [shape: bf16[512,8], index: 0, kind: input, shape index: {}]   ;;  %s6954_s1 = inlined_call_operand.vmem [shape: bf16[8,256], index: 1, kind: input, shape index: {}]   ;;  %s6955_s2 = inlined_call_operand.vmem [shape: f32[1,256], index: 2, kind: input, shape index: {}]   ;;  %s6956_s3 = inlined_call_operand.vmem [shape: bf16[256,256], index: 3, kind: input, shape index: {}]   ;;  %s6957_s4 = inlined_call_operand.vmem [shape: f32[1,256], index: 4, kind: input, shape index: {}]   ;;  %s6958_s5 = inlined_call_operand.hbm [shape: bf16[256,256], index: 5, kind: input, shape index: {}]   ;;  %s6959_s6 = inlined_call_operand.vmem [shape: f32[1,256], index: 6, kind: input, shape index: {}]   ;;  %s6960_s7 = inlined_call_operand.hbm [shape: bf16[256,256], index: 7, kind: input, shape index: {}]   ;;  %s6961_s8 = inlined_call_operand.vmem [shape: f32[1,256], index: 8, kind: input, shape index: {}]   ;;  %s6962_s9 = inlined_call_operand.hbm [shape: bf16[256,256], index: 9, kind: input, shape index: {}]   ;;  %s6963_s10 = inlined_call_operand.vmem [shape: f32[1,256], index: 10, kind: input, shape index: {}]   ;;  %s6964_s11 = inlined_call_operand.vmem [shape: f32[1,256], index: 11, kind: input, shape index: {}]   ;;  %s6965_s12 = inlined_call_operand.<no memory space> [shape: f32[1,1], index: 12, kind: input, shape index: {}]   ;;  %s6966_s13 = inlined_call_operand.vmem [shape: f32[512,1], index: 13, kind: output, shape index: {}]  }
   0x1   :  { %v18_v0 = vstv %s6965_s12 }
   0x2   :  { %19 = vst [vmem:[#allocation2] sm:$0x1] %v18_v0 }
   0x3   :  { %20 = vsyncpa [#allocation4], 0 }
   0x4   :  { %21 = vsyncpa [#allocation6], 0  ;;  %s4944_s27 = smov [#allocation5]   ;;  %s4945_s29 = smov [#allocation3]  }
   0x5   :  { %s51_s28 = sshll.u32 %s4944_s27, 4  ;;  %s37_s30 = sshll.u32 %s4945_s29, 4  ;;  %s52_s28 = int_to_ptr.vmem [resolvable:$true] %s51_s28  ;;  %s38_s30 = int_to_ptr.vmem [resolvable:$true] %s37_s30 }
   0x6   :  { %s4888_s14 = scalar_lea.vmem %s52_s28, 4096  ;;  %p4893_p1 = scmp.lt.s32.totalorder %s52_s28, %s52_s28 }
   0x7   :  { %p4889_p0 = scmp.ne.s32.totalorder %s52_s28, %s4888_s14  ;;  %p4894_p2 = scmp.lt.s32.totalorder %s4888_s14, %s4888_s14 }
   0x9   :  { %p4895_p3 = por %p4894_p2, %p4893_p1 }
   0xb   :  { %p4896_p4 = pnand %p4895_p3, %p4889_p0 }
   0xd   :  { %4899 = shalt.err (!%p4896_p4)
}
   0xe   :  { %s4946_s15 = smov 128   ;;  %s4947_s16 = smov 8  }
   0xf   :  { %57 = dma.hbm_to_vmem [thread:$0]  %s6960_s7, 4096, %s52_s28, [#allocation6], %s4946_s15, %s4946_s15, %s4947_s16  }
  0x10   :  { %s4908_s18 = scalar_lea.vmem %s38_s30, 4096  ;;  %p4913_p6 = scmp.lt.s32.totalorder %s38_s30, %s38_s30 }
  0x11   :  { %p4909_p5 = scmp.ne.s32.totalorder %s38_s30, %s4908_s18  ;;  %p4914_p7 = scmp.lt.s32.totalorder %s4908_s18, %s4908_s18 }
  0x13   :  { %p4915_p8 = por %p4914_p7, %p4913_p6 }
  0x15   :  { %p4916_p9 = pnand %p4915_p8, %p4909_p5 }
  0x17   :  { %4919 = shalt.err (!%p4916_p9)
}
  0x18   :  { %43 = dma.hbm_to_vmem [thread:$0]  %s6958_s5, 4096, %s38_s30, [#allocation4], %s4946_s15, %s4946_s15, %s4947_s16  }
  0x19   :  { %s4948_s21 = smov [#allocation7]  }
  0x1a   :  { %s65_s22 = sshll.u32 %s4948_s21, 4  ;;  %s66_s22 = int_to_ptr.vmem [resolvable:$true] %s65_s22 }
  0x1b   :  { %s4928_s23 = scalar_lea.vmem %s66_s22, 4096  ;;  %p4933_p11 = scmp.lt.s32.totalorder %s66_s22, %s66_s22 }
  0x1c   :  { %p4929_p10 = scmp.ne.s32.totalorder %s66_s22, %s4928_s23  ;;  %p4934_p12 = scmp.lt.s32.totalorder %s4928_s23, %s4928_s23 }
  0x1e   :  { %p4935_p13 = por %p4934_p12, %p4933_p11 }
  0x20   :  { %p4936_p0 = pnand %p4935_p13, %p4929_p10 }
  0x22   :  { %4939 = shalt.err (!%p4936_p0)
}
  0x23   :  { %71 = dma.hbm_to_vmem [thread:$0]  %s6962_s9, 4096, %s66_s22, [#allocation6], %s4946_s15, %s4946_s15, %s4947_s16  }
  0x24   :  { %4940 = dma.done.wait [#allocation4], 4096  }
  0x25   :  { %4941 = vsyncadd [#allocation4], 4294963200 }
  0x26   :  { %4942 = dma.done.wait [#allocation6], 8192  }
  0x27   :  { %4943 = vsyncadd [#allocation6], 4294959104  ;;  %v4949_v1 = vmov 0   ;;  %v152_v2 = vld [vmem:[%s6954_s1] sm:$0xff]  ;;  %vm427_vm0 = vcmask 1043456   ;;  %vm330_vm1 = vcmask 64512  }
  0x28   :  { %466 = vmatprep.mubr.bf16.mxu0 %v4949_v1  ;;  %626 = vmatprep.mubr.bf16.mxu1 %v4949_v1  ;;  %v4354_v3 = vcombine.high %v152_v2, %v152_v2  ;;  %v4353_v4 = vcombine.low %v152_v2, %v152_v2  ;;  %v4527_v6 = vld [vmem:[%s6953_s0] sm:$0xff]   ;;  %v4528_v7 = vld [vmem:[%s6953_s0 + $0x8] sm:$0xff]   ;;  %v4538_v9 = vld [vmem:[%s6956_s3 + $0x70] ss:$8 sps:$4 sm:$0xff]   ;;  %vm4250_vm2 = vcmask 7168  }
  0x29   :  { %v4537_v8 = vld [vmem:[%s6953_s0 + $0x80] sm:$0xff]   ;;  %v4540_v10 = vld [vmem:[%s6956_s3 + $0x74] ss:$8 sps:$4 sm:$0xff]   ;;  %v4542_v14 = vld [vmem:[%s6953_s0 + $0x88] sm:$0xff]  }
  0x2a   :  { %4355 = vmatprep.subr.msk.bf16.mxu0 %vm427_vm0, %v4354_v3  ;;  %v429_v5 = vsel %vm427_vm0, %v4353_v4, 0  ;;  %4517 = vmatprep.subr.msk.bf16.mxu1 %vm427_vm0, %v4354_v3  ;;  %v4543_v11 = vld [vmem:[%s6956_s3 + $0x60] ss:$8 sps:$4 sm:$0xff]   ;;  %v4545_v12 = vld [vmem:[%s6956_s3 + $0x64] ss:$8 sps:$4 sm:$0xff]   ;;  %v4529_v13 = vld [vmem:[%s6953_s0 + $0x10] sm:$0xff]  }
  0x2b   :  { %449 = vmatpush1.bf16.msra.mxu0 %v429_v5  ;;  %4518 = vmatpush1.bf16.msra.mxu1 %v429_v5  ;;  %v4548_v15 = vld [vmem:[%s6956_s3 + $0x50] ss:$8 sps:$4 sm:$0xff]   ;;  %v4550_v16 = vld [vmem:[%s6956_s3 + $0x54] ss:$8 sps:$4 sm:$0xff]   ;;  %v4555_v17 = vld [vmem:[%s6956_s3 + $0x44] ss:$8 sps:$4 sm:$0xff]  }
  0x2c   :  { %1119 = vmatprep.subr.bf16.mxu1 %v4540_v10  ;;  %v4553_v18 = vld [vmem:[%s6956_s3 + $0x40] ss:$8 sps:$4 sm:$0xff]   ;;  %v4547_v19 = vld [vmem:[%s6953_s0 + $0x90] sm:$0xff]   ;;  %v4530_v21 = vld [vmem:[%s6953_s0 + $0x18] sm:$0xff]  }
  0x2d   :  { %v4560_v20 = vld [vmem:[%s6956_s3 + $0x34] ss:$8 sps:$4 sm:$0xff]   ;;  %v4558_v22 = vld [vmem:[%s6956_s3 + $0x30] ss:$8 sps:$4 sm:$0xff]   ;;  %v4565_v23 = vld [vmem:[%s6956_s3 + $0x24] ss:$8 sps:$4 sm:$0xff]  }
  0x2e   :  { %4356 = vmatmul.mubr.msk.bf16.vlgmr.msra.gmra.mxu0 %vm330_vm1, %v4527_v6  ;;  %4372 = vmatmul.mubr.msk.bf16.vlgmr.msra.gmra.mxu1 %vm330_vm1, %v4537_v8  ;;  %v4563_v24 = vld [vmem:[%s6956_s3 + $0x20] ss:$8 sps:$4 sm:$0xff]   ;;  %v4570_v25 = vld [vmem:[%s6956_s3 + $0x14] ss:$8 sps:$4 sm:$0xff]   ;;  %v4568_v28 = vld [vmem:[%s6956_s3 + $0x10] ss:$8 sps:$4 sm:$0xff]  }
  0x2f   :  { %476 = vmatprep.mubr.bf16.mxu0 %v4949_v1  ;;  %636 = vmatprep.mubr.bf16.mxu1 %v4949_v1  ;;  %v4552_v26 = vld [vmem:[%s6953_s0 + $0x98] sm:$0xff]   ;;  %v4531_v27 = vld [vmem:[%s6953_s0 + $0x20] sm:$0xff]   ;;  %v4532_v33 = vld [vmem:[%s6953_s0 + $0x28] sm:$0xff]  }
  0x30   :  { %1120 = vmatpush1.bf16.msra.mxu1 %v4538_v9  ;;  %v4574_v29 = vld [vmem:[%s6956_s3 + $0x4] ss:$8 sps:$4 sm:$0xff]   ;;  %v4572_v30 = vld [vmem:[%s6956_s3] ss:$8 sps:$4 sm:$0xff]   ;;  %v4578_v31 = vld [vmem:[%s6956_s3 + $0xf4] ss:$8 sps:$4 sm:$0xff]  }
  0x31   :  { %1121 = vmatprep.subr.bf16.mxu1 %v4545_v12  ;;  %v4557_v32 = vld [vmem:[%s6953_s0 + $0xa0] sm:$0xff]   ;;  %v4576_v34 = vld [vmem:[%s6956_s3 + $0xf0] ss:$8 sps:$4 sm:$0xff]   ;;  %v4586_v37 = vld [vmem:[%s6956_s3 + $0xd4] ss:$8 sps:$4 sm:$0xff]  }
  0x32   :  { %v4582_v35 = vld [vmem:[%s6956_s3 + $0xe4] ss:$8 sps:$4 sm:$0xff]   ;;  %v4580_v36 = vld [vmem:[%s6956_s3 + $0xe0] ss:$8 sps:$4 sm:$0xff]   ;;  %v4533_v39 = vld [vmem:[%s6953_s0 + $0x30] sm:$0xff]  }
  0x33   :  { %v4562_v38 = vld [vmem:[%s6953_s0 + $0xa8] sm:$0xff]   ;;  %v4584_v40 = vld [vmem:[%s6956_s3 + $0xd0] ss:$8 sps:$4 sm:$0xff]   ;;  %v4594_v43 = vld [vmem:[%s6956_s3 + $0xb4] ss:$8 sps:$4 sm:$0xff]  }
  0x34   :  { %1122 = vmatpush1.bf16.msra.mxu1 %v4543_v11  ;;  %v4590_v41 = vld [vmem:[%s6956_s3 + $0xc4] ss:$8 sps:$4 sm:$0xff]   ;;  %v4588_v42 = vld [vmem:[%s6956_s3 + $0xc0] ss:$8 sps:$4 sm:$0xff]   ;;  %v4567_v44 = vld [vmem:[%s6953_s0 + $0xb0] sm:$0xff]  }
  0x35   :  { %1123 = vmatprep.subr.bf16.mxu1 %v4550_v16  ;;  %v4534_v45 = vld [vmem:[%s6953_s0 + $0x38] sm:$0xff]   ;;  %v4598_v47 = vld [vmem:[%s6956_s3 + $0xa4] ss:$8 sps:$4 sm:$0xff]   ;;  %v4596_v48 = vld [vmem:[%s6956_s3 + $0xa0] ss:$8 sps:$4 sm:$0xff]  }
  0x36   :  { %4357 = vmatmul.mubr.msk.bf16.gmra.mxu0 %vm330_vm1, %v4528_v7  ;;  %4373 = vmatmul.mubr.msk.bf16.gmra.mxu1 %vm330_vm1, %v4542_v14  ;;  %v4592_v46 = vld [vmem:[%s6956_s3 + $0xb0] ss:$8 sps:$4 sm:$0xff]   ;;  %v4602_v49 = vld [vmem:[%s6956_s3 + $0x94] ss:$8 sps:$4 sm:$0xff]   ;;  %v4535_v51 = vld [vmem:[%s6953_s0 + $0x40] sm:$0xff]  }
  0x37   :  { %486 = vmatprep.mubr.bf16.mxu0 %v4949_v1  ;;  %646 = vmatprep.mubr.bf16.mxu1 %v4949_v1  ;;  %v4571_v50 = vld [vmem:[%s6953_s0 + $0xb8] sm:$0xff]   ;;  %v4575_v53 = vld [vmem:[%s6953_s0 + $0xc0] sm:$0xff]   ;;  %v4536_v54 = vld [vmem:[%s6953_s0 + $0x48] sm:$0xff]  }
  0x38   :  { %1124 = vmatpush1.bf16.msra.mxu1 %v4548_v15  ;;  %v4600_v52 = vld [vmem:[%s6956_s3 + $0x90] ss:$8 sps:$4 sm:$0xff]   ;;  %v4579_v55 = vld [vmem:[%s6953_s0 + $0xc8] sm:$0xff]   ;;  %v4551_v62 = vld [vmem:[%s6953_s0 + $0x60] sm:$0xff]   ;;  %v155_v15 = vlaneseq }
  0x39   :  { %1125 = vmatprep.subr.bf16.mxu1 %v4555_v17  ;;  %v4606_v56 = vld [vmem:[%s6956_s3 + $0x84] ss:$8 sps:$4 sm:$0xff]   ;;  %v4604_v57 = vld [vmem:[%s6956_s3 + $0x80] ss:$8 sps:$4 sm:$0xff]   ;;  %v4541_v58 = vld [vmem:[%s6953_s0 + $0x50] sm:$0xff]  }
  0x3a   :  { %v4583_v59 = vld [vmem:[%s6953_s0 + $0xd0] sm:$0xff]   ;;  %v4546_v60 = vld [vmem:[%s6953_s0 + $0x58] sm:$0xff]   ;;  %v4591_v63 = vld [vmem:[%s6953_s0 + $0xe0] sm:$0xff]   ;;  %v156_v16 = vshrl.u32 %v155_v15, 7 }
  0x3b   :  { %v4587_v61 = vld [vmem:[%s6953_s0 + $0xd8] sm:$0xff]   ;;  %v4556_v0 = vld [vmem:[%s6953_s0 + $0x68] sm:$0xff]   ;;  %v4561_v3 = vld [vmem:[%s6953_s0 + $0x70] sm:$0xff]  }
  0x3c   :  { %1126 = vmatpush1.bf16.msra.mxu1 %v4553_v18  ;;  %v4595_v2 = vld [vmem:[%s6953_s0 + $0xe8] sm:$0xff]   ;;  %v4599_v4 = vld [vmem:[%s6953_s0 + $0xf0] sm:$0xff]   ;;  %v4566_v5 = vld [vmem:[%s6953_s0 + $0x78] sm:$0xff]  }
  0x3d   :  { %1127 = vmatprep.subr.bf16.mxu1 %v4560_v20  ;;  %v4603_v6 = vld [vmem:[%s6953_s0 + $0xf8] sm:$0xff]   ;;  %v4610_v9 = vld [vmem:[#allocation3 + $0x60] ss:$8 sps:$4 sm:$0xff]   ;;  %v4612_v10 = vld [vmem:[#allocation3 + $0x64] ss:$8 sps:$4 sm:$0xff]  }
  0x3e   :  { %4358 = vmatmul.mubr.msk.bf16.gmra.mxu0 %vm330_vm1, %v4529_v13  ;;  %4374 = vmatmul.mubr.msk.bf16.gmra.mxu1 %vm330_vm1, %v4547_v19  ;;  %v4607_v7 = vld [vmem:[#allocation3 + $0x70] ss:$8 sps:$4 sm:$0xff]   ;;  %v4609_v8 = vld [vmem:[#allocation3 + $0x74] ss:$8 sps:$4 sm:$0xff]   ;;  %v4616_v13 = vld [vmem:[#allocation3 + $0x40] ss:$8 sps:$4 sm:$0xff]  }
  0x3f   :  { %496 = vmatprep.mubr.bf16.mxu0 %v4949_v1  ;;  %656 = vmatprep.mubr.bf16.mxu1 %v4949_v1  ;;  %v4613_v11 = vld [vmem:[#allocation3 + $0x50] ss:$8 sps:$4 sm:$0xff]   ;;  %v4615_v12 = vld [vmem:[#allocation3 + $0x54] ss:$8 sps:$4 sm:$0xff]   ;;  %v4618_v14 = vld [vmem:[#allocation3 + $0x44] ss:$8 sps:$4 sm:$0xff]  }
  0x40   :  { %1128 = vmatpush1.bf16.msra.mxu1 %v4558_v22  ;;  %1804 = vmatprep.subr.bf16.mxu0 %v4609_v8  ;;  %v4619_v17 = vld [vmem:[#allocation3 + $0x30] ss:$8 sps:$4 sm:$0xff]   ;;  %v4621_v18 = vld [vmem:[#allocation3 + $0x34] ss:$8 sps:$4 sm:$0xff]   ;;  %v5291_v19 = vsub.s32 0, %v156_v16 }
  0x41   :  { %1129 = vmatprep.subr.bf16.mxu1 %v4565_v23  ;;  %1805 = vmatpush1.bf16.msra.mxu0 %v4607_v7  ;;  %v153_v20 = vld [vmem:[%s6955_s2] sm:$0x3]  ;;  %v4631_v8 = vld [vmem:[#allocation3 + $0xf0] ss:$8 sps:$4 sm:$0xff]  }
  0x42   :  { %1806 = vmatprep.subr.bf16.mxu0 %v4612_v10  ;;  %v4622_v23 = vld [vmem:[#allocation3 + $0x20] ss:$8 sps:$4 sm:$0xff]  }
  0x44   :  { %1130 = vmatpush1.bf16.msra.mxu1 %v4563_v24  ;;  %v4624_v24 = vld [vmem:[#allocation3 + $0x24] ss:$8 sps:$4 sm:$0xff]  }
  0x45   :  { %1131 = vmatprep.subr.bf16.mxu1 %v4570_v25  ;;  %1807 = vmatpush1.bf16.msra.mxu0 %v4610_v9  ;;  %v5299_v25 = vrot.slane %v153_v20, %v5291_v19  ;;  %v4633_v9 = vld [vmem:[#allocation3 + $0xf4] ss:$8 sps:$4 sm:$0xff]  }
  0x46   :  { %4359 = vmatmul.mubr.msk.bf16.gmra.mxu0 %vm330_vm1, %v4530_v21  ;;  %4375 = vmatmul.mubr.msk.bf16.gmra.mxu1 %vm330_vm1, %v4552_v26  ;;  %v5296_v21 = vsub.s32 1, %v156_v16 }
  0x47   :  { %506 = vmatprep.mubr.bf16.mxu0 %v4949_v1  ;;  %666 = vmatprep.mubr.bf16.mxu1 %v4949_v1 }
  0x48   :  { %1132 = vmatpush1.bf16.msra.mxu1 %v4568_v28  ;;  %1808 = vmatprep.subr.bf16.mxu0 %v4615_v12 }
  0x49   :  { %1133 = vmatprep.subr.bf16.mxu1 %v4574_v29  ;;  %1809 = vmatpush1.bf16.msra.mxu0 %v4613_v11 }
  0x4a   :  { %1810 = vmatprep.subr.bf16.mxu0 %v4618_v14 }
  0x4c   :  { %1134 = vmatpush1.bf16.msra.mxu1 %v4572_v30 }
  0x4d   :  { %1135 = vmatprep.subr.bf16.mxu1 %v4578_v31  ;;  %1811 = vmatpush1.bf16.msra.mxu0 %v4616_v13 }
  0x4e   :  { %4360 = vmatmul.mubr.msk.bf16.gmra.mxu0 %vm330_vm1, %v4531_v27  ;;  %4376 = vmatmul.mubr.msk.bf16.gmra.mxu1 %vm330_vm1, %v4557_v32  ;;  %v5302_v27 = vrot.slane %v153_v20, %v5296_v21 }
  0x4f   :  { %516 = vmatprep.mubr.bf16.mxu0 %v4949_v1  ;;  %676 = vmatprep.mubr.bf16.mxu1 %v4949_v1 }
  0x50   :  { %1136 = vmatpush2.bf16.msra.mxu1 %v4576_v34  ;;  %1812 = vmatprep.subr.bf16.mxu0 %v4621_v18 }
  0x51   :  { %1137 = vmatprep.subr.bf16.mxu1 %v4582_v35  ;;  %1813 = vmatpush1.bf16.msra.mxu0 %v4619_v17  ;;  %v4625_v35 = vld [vmem:[#allocation3 + $0x10] ss:$8 sps:$4 sm:$0xff]  }
  0x52   :  { %1814 = vmatprep.subr.bf16.mxu0 %v4624_v24 }
  0x54   :  { %1138 = vmatpush2.bf16.msra.mxu1 %v4580_v36  ;;  %v4627_v36 = vld [vmem:[#allocation3 + $0x14] ss:$8 sps:$4 sm:$0xff]  }
  0x55   :  { %1139 = vmatprep.subr.bf16.mxu1 %v4586_v37  ;;  %1815 = vmatpush1.bf16.msra.mxu0 %v4622_v23 }
  0x56   :  { %4361 = vmatmul.mubr.msk.bf16.gmra.mxu0 %vm330_vm1, %v4532_v33  ;;  %4377 = vmatmul.mubr.msk.bf16.gmra.mxu1 %vm330_vm1, %v4562_v38 }
  0x57   :  { %526 = vmatprep.mubr.bf16.mxu0 %v4949_v1  ;;  %686 = vmatprep.mubr.bf16.mxu1 %v4949_v1 }
  0x58   :  { %1140 = vmatpush2.bf16.msra.mxu1 %v4584_v40  ;;  %1816 = vmatprep.subr.bf16.mxu0 %v4627_v36 }
  0x59   :  { %1141 = vmatprep.subr.bf16.mxu1 %v4590_v41  ;;  %1817 = vmatpush1.bf16.msra.mxu0 %v4625_v35 }
  0x5c   :  { %1142 = vmatpush2.bf16.msra.mxu1 %v4588_v42 }
  0x5d   :  { %1143 = vmatprep.subr.bf16.mxu1 %v4594_v43 }
  0x5e   :  { %4362 = vmatmul.mubr.msk.bf16.gmra.mxu0 %vm330_vm1, %v4533_v39  ;;  %4378 = vmatmul.mubr.msk.bf16.gmra.mxu1 %vm330_vm1, %v4567_v44 }
  0x5f   :  { %536 = vmatprep.mubr.bf16.mxu0 %v4949_v1  ;;  %696 = vmatprep.mubr.bf16.mxu1 %v4949_v1 }
  0x60   :  { %1144 = vmatpush2.bf16.msra.mxu1 %v4592_v46 }
  0x61   :  { %1145 = vmatprep.subr.bf16.mxu1 %v4598_v47 }
  0x64   :  { %1146 = vmatpush2.bf16.msra.mxu1 %v4596_v48 }
  0x65   :  { %1147 = vmatprep.subr.bf16.mxu1 %v4602_v49 }
  0x66   :  { %4363 = vmatmul.mubr.msk.bf16.gmra.mxu0 %vm330_vm1, %v4534_v45  ;;  %4379 = vmatmul.mubr.msk.bf16.gmra.mxu1 %vm330_vm1, %v4571_v50 }
  0x67   :  { %546 = vmatprep.mubr.bf16.mxu0 %v4949_v1  ;;  %706 = vmatprep.mubr.bf16.mxu1 %v4949_v1 }
  0x68   :  { %1148 = vmatpush2.bf16.msra.mxu1 %v4600_v52 }
  0x69   :  { %1149 = vmatprep.subr.bf16.mxu1 %v4606_v56 }
  0x6c   :  { %1150 = vmatpush2.bf16.msra.mxu1 %v4604_v57 }
  0x6e   :  { %4364 = vmatmul.mubr.msk.bf16.gmra.mxu0 %vm330_vm1, %v4535_v51  ;;  %4380 = vmatmul.mubr.msk.bf16.gmra.mxu1 %vm330_vm1, %v4575_v53  ;;  %v4628_v53 = vld [vmem:[#allocation3] ss:$8 sps:$4 sm:$0xff]  }
  0x6f   :  { %556 = vmatprep.mubr.bf16.mxu0 %v4949_v1  ;;  %716 = vmatprep.mubr.bf16.mxu1 %v4949_v1 }
  0x76   :  { %4365 = vmatmul.mubr.msk.bf16.gmra.mxu0 %vm330_vm1, %v4536_v54  ;;  %4381 = vmatmul.mubr.msk.bf16.gmra.mxu1 %vm330_vm1, %v4579_v55  ;;  %v4630_v54 = vld [vmem:[#allocation3 + $0x4] ss:$8 sps:$4 sm:$0xff]  }
  0x77   :  { %566 = vmatprep.mubr.bf16.mxu0 %v4949_v1  ;;  %726 = vmatprep.mubr.bf16.mxu1 %v4949_v1 }
  0x78   :  { %1818 = vmatprep.subr.bf16.mxu0 %v4630_v54  ;;  %v4639_v54 = vld [vmem:[#allocation5 + $0x74] ss:$8 sps:$4 sm:$0xff]  }
  0x79   :  { %1819 = vmatpush1.bf16.msra.mxu0 %v4628_v53  ;;  %v4637_v53 = vld [vmem:[#allocation5 + $0x70] ss:$8 sps:$4 sm:$0xff]   ;;  %2489 = vmatprep.subr.bf16.mxu1 %v4639_v54 }
  0x7a   :  { %1820 = vmatprep.subr.bf16.mxu0 %v4633_v9 }
  0x7d   :  { %1821 = vmatpush2.bf16.msra.mxu0 %v4631_v8 }
  0x7e   :  { %4366 = vmatmul.mubr.msk.bf16.gmra.mxu0 %vm330_vm1, %v4541_v58  ;;  %4382 = vmatmul.mubr.msk.bf16.gmra.mxu1 %vm330_vm1, %v4583_v59 }
  0x7f   :  { %576 = vmatprep.mubr.bf16.mxu0 %v4949_v1  ;;  %736 = vmatprep.mubr.bf16.mxu1 %v4949_v1 }
  0x86   :  { %4367 = vmatmul.mubr.msk.bf16.gmra.mxu0 %vm330_vm1, %v4546_v60  ;;  %4383 = vmatmul.mubr.msk.bf16.gmra.mxu1 %vm330_vm1, %v4587_v61 }
  0x87   :  { %586 = vmatprep.mubr.bf16.mxu0 %v4949_v1  ;;  %746 = vmatprep.mubr.bf16.mxu1 %v4949_v1 }
  0x8e   :  { %4368 = vmatmul.mubr.msk.bf16.gmra.mxu0 %vm330_vm1, %v4551_v62  ;;  %4384 = vmatmul.mubr.msk.bf16.gmra.mxu1 %vm330_vm1, %v4591_v63 }
  0x8f   :  { %596 = vmatprep.mubr.bf16.mxu0 %v4949_v1  ;;  %756 = vmatprep.mubr.bf16.mxu1 %v4949_v1 }
  0x96   :  { %4369 = vmatmul.mubr.msk.bf16.gmra.mxu0 %vm330_vm1, %v4556_v0  ;;  %4385 = vmatmul.mubr.msk.bf16.gmra.mxu1 %vm330_vm1, %v4595_v2 }
  0x97   :  { %606 = vmatprep.mubr.bf16.mxu0 %v4949_v1  ;;  %766 = vmatprep.mubr.bf16.mxu1 %v4949_v1 }
  0x9e   :  { %4370 = vmatmul.mubr.msk.bf16.gmra.mxu0 %vm330_vm1, %v4561_v3  ;;  %4386 = vmatmul.mubr.msk.bf16.gmra.mxu1 %vm330_vm1, %v4599_v4 }
  0x9f   :  { %616 = vmatprep.mubr.bf16.mxu0 %v4949_v1  ;;  %776 = vmatprep.mubr.bf16.mxu1 %v4949_v1 }
  0xa6   :  { %4371 = vmatmul.mubr.msk.bf16.gmra.mxu0 %vm330_vm1, %v4566_v5  ;;  %4387 = vmatmul.mubr.msk.bf16.gmra.mxu1 %vm330_vm1, %v4603_v6 }
  0xee   :  { %v468_v22 = vpop.f32.mrf.mxu0  ;;  %v5306_v32 = vpop.f32.mrf.mxu1 }
  0xef   :  { %v469_v30 = vadd.f32 %v468_v22, %v5299_v25 }
  0xf0   :  { %v470_v26 = vpop.f32.mrf.mxu0  ;;  %v5310_v39 = vpop.f32.mrf.mxu1 }
  0xf1   :  { %v471_v33 = vadd.f32 %v470_v26, %v5302_v27 }
  0xf2   :  { %v472_v28 = vpop.f32.mrf.mxu0  ;;  %v5312_v42 = vpop.f32.mrf.mxu1 }
  0xf3   :  { %v473_v29 = vadd.f32 %v472_v28, %v5299_v25 }
  0xf4   :  { %v474_v31 = vpop.f32.mrf.mxu0  ;;  %v5316_v46 = vpop.f32.mrf.mxu1 }
  0xf5   :  { %v475_v34 = vadd.f32 %v474_v31, %v5302_v27  ;;  %v787_v37 = vpack.c.bf16 %v473_v29, %v469_v30  ;;  %v4634_v30 = vld [vmem:[#allocation3 + $0xe0] ss:$8 sps:$4 sm:$0xff]   ;;  %v4636_v31 = vld [vmem:[#allocation3 + $0xe4] ss:$8 sps:$4 sm:$0xff]  }
  0xf6   :  { %v478_v38 = vpop.f32.mrf.mxu0  ;;  %v5320_v50 = vpop.f32.mrf.mxu1  ;;  %1822 = vmatprep.subr.bf16.mxu0 %v4636_v31 }
  0xf7   :  { %v788_v40 = vpack.c.bf16 %v475_v34, %v471_v33  ;;  %v851_v44 = vmax.bf16 %v4949_v1, %v787_v37  ;;  %v479_v48 = vadd.f32 %v478_v38, %v5299_v25  ;;  %1823 = vmatpush2.bf16.msra.mxu0 %v4634_v30 }
  0xf8   :  { %v480_v41 = vpop.f32.mrf.mxu0  ;;  %v5324_v57 = vpop.f32.mrf.mxu1 }
  0xf9   :  { %v852_v43 = vmax.bf16 %v4949_v1, %v788_v40  ;;  %v481_v51 = vadd.f32 %v480_v41, %v5302_v27 }
  0xfa   :  { %v482_v45 = vpop.f32.mrf.mxu0  ;;  %v5326_v60 = vpop.f32.mrf.mxu1 }
  0xfb   :  { %v483_v47 = vadd.f32 %v482_v45, %v5299_v25  ;;  %1151 = vmatprep.mubr.bf16.mxu1 %v852_v43 }
  0xfc   :  { %v484_v49 = vpop.f32.mrf.mxu0  ;;  %1152 = vmatmul.mubr.bf16.vlgmr.msra.gmra.mxu1 %v851_v44  ;;  %v5330_v0 = vpop.f32.mrf.mxu1 }
  0xfd   :  { %v485_v52 = vadd.f32 %v484_v49, %v5302_v27  ;;  %v789_v55 = vpack.c.bf16 %v483_v47, %v479_v48  ;;  %2490 = vmatpush1.bf16.msra.mxu1 %v4637_v53 }
  0xfe   :  { %v488_v56 = vpop.f32.mrf.mxu0  ;;  %v5334_v5 = vpop.f32.mrf.mxu1 }
  0xff   :  { %v790_v58 = vpack.c.bf16 %v485_v52, %v481_v51  ;;  %v853_v63 = vmax.bf16 %v4949_v1, %v789_v55  ;;  %v489_v3 = vadd.f32 %v488_v56, %v5299_v25  ;;  %v4640_v55 = vld [vmem:[#allocation3 + $0xd0] ss:$8 sps:$4 sm:$0xff]  }
 0x100   :  { %v490_v59 = vpop.f32.mrf.mxu0  ;;  %v5338_v12 = vpop.f32.mrf.mxu1 }
 0x101   :  { %v854_v61 = vmax.bf16 %v4949_v1, %v790_v58  ;;  %v491_v6 = vadd.f32 %v490_v59, %v5302_v27 }
 0x102   :  { %v492_v62 = vpop.f32.mrf.mxu0  ;;  %v5340_v15 = vpop.f32.mrf.mxu1 }
 0x103   :  { %v493_v2 = vadd.f32 %v492_v62, %v5299_v25  ;;  %1161 = vmatprep.mubr.bf16.mxu1 %v854_v61  ;;  %v4642_v61 = vld [vmem:[#allocation3 + $0xd4] ss:$8 sps:$4 sm:$0xff]  }
 0x104   :  { %v494_v4 = vpop.f32.mrf.mxu0  ;;  %1162 = vmatmul.mubr.bf16.gmra.mxu1 %v853_v63  ;;  %v5344_v20 = vpop.f32.mrf.mxu1  ;;  %1824 = vmatprep.subr.bf16.mxu0 %v4642_v61 }
 0x105   :  { %v495_v7 = vadd.f32 %v494_v4, %v5302_v27  ;;  %v791_v10 = vpack.c.bf16 %v493_v2, %v489_v3  ;;  %1825 = vmatpush2.bf16.msra.mxu0 %v4640_v55  ;;  %v4651_v55 = vld [vmem:[#allocation3 + $0xb4] ss:$8 sps:$4 sm:$0xff]  }
 0x106   :  { %v498_v11 = vpop.f32.mrf.mxu0  ;;  %v5348_v26 = vpop.f32.mrf.mxu1 }
 0x107   :  { %v792_v13 = vpack.c.bf16 %v495_v7, %v491_v6  ;;  %v855_v18 = vmax.bf16 %v4949_v1, %v791_v10  ;;  %v499_v23 = vadd.f32 %v498_v11, %v5299_v25 }
 0x108   :  { %v500_v14 = vpop.f32.mrf.mxu0  ;;  %v5352_v35 = vpop.f32.mrf.mxu1 }
 0x109   :  { %v856_v16 = vmax.bf16 %v4949_v1, %v792_v13  ;;  %v501_v28 = vadd.f32 %v500_v14, %v5302_v27 }
 0x10a   :  { %v502_v17 = vpop.f32.mrf.mxu0  ;;  %v5354_v38 = vpop.f32.mrf.mxu1 }
 0x10b   :  { %v503_v22 = vadd.f32 %v502_v17, %v5299_v25  ;;  %1171 = vmatprep.mubr.bf16.mxu1 %v856_v16  ;;  %v4643_v16 = vld [vmem:[#allocation3 + $0xc0] ss:$8 sps:$4 sm:$0xff]   ;;  %v4645_v17 = vld [vmem:[#allocation3 + $0xc4] ss:$8 sps:$4 sm:$0xff]  }
 0x10c   :  { %v504_v24 = vpop.f32.mrf.mxu0  ;;  %1172 = vmatmul.mubr.bf16.gmra.mxu1 %v855_v18  ;;  %v5358_v44 = vpop.f32.mrf.mxu1  ;;  %1826 = vmatprep.subr.bf16.mxu0 %v4645_v17 }
 0x10d   :  { %v505_v29 = vadd.f32 %v504_v24, %v5302_v27  ;;  %v793_v33 = vpack.c.bf16 %v503_v22, %v499_v23  ;;  %1827 = vmatpush2.bf16.msra.mxu0 %v4643_v16  ;;  %v4654_v16 = vld [vmem:[#allocation3 + $0xa4] ss:$8 sps:$4 sm:$0xff]  }
 0x10e   :  { %v508_v34 = vpop.f32.mrf.mxu0  ;;  %v5362_v49 = vpop.f32.mrf.mxu1  ;;  %1828 = vmatprep.subr.bf16.mxu0 %v4651_v55 }
 0x10f   :  { %v794_v36 = vpack.c.bf16 %v505_v29, %v501_v28  ;;  %v857_v43 = vmax.bf16 %v4949_v1, %v793_v33  ;;  %v509_v47 = vadd.f32 %v508_v34, %v5299_v25 }
 0x110   :  { %v510_v37 = vpop.f32.mrf.mxu0  ;;  %v5366_v59 = vpop.f32.mrf.mxu1 }
 0x111   :  { %v858_v40 = vmax.bf16 %v4949_v1, %v794_v36  ;;  %v511_v51 = vadd.f32 %v510_v37, %v5302_v27 }
 0x112   :  { %v512_v41 = vpop.f32.mrf.mxu0  ;;  %v5368_v2 = vpop.f32.mrf.mxu1 }
 0x113   :  { %v513_v45 = vadd.f32 %v512_v41, %v5299_v25  ;;  %1181 = vmatprep.mubr.bf16.mxu1 %v858_v40 }
 0x114   :  { %v514_v48 = vpop.f32.mrf.mxu0  ;;  %1182 = vmatmul.mubr.bf16.gmra.mxu1 %v857_v43  ;;  %v5372_v7 = vpop.f32.mrf.mxu1 }
 0x115   :  { %v515_v52 = vadd.f32 %v514_v48, %v5302_v27  ;;  %v795_v56 = vpack.c.bf16 %v513_v45, %v509_v47  ;;  %v4646_v47 = vld [vmem:[#allocation5 + $0x60] ss:$8 sps:$4 sm:$0xff]   ;;  %v4648_v48 = vld [vmem:[#allocation5 + $0x64] ss:$8 sps:$4 sm:$0xff]  }
 0x116   :  { %v518_v58 = vpop.f32.mrf.mxu0  ;;  %v5376_v11 = vpop.f32.mrf.mxu1  ;;  %2491 = vmatprep.subr.bf16.mxu1 %v4648_v48  ;;  %v4655_v48 = vld [vmem:[#allocation5 + $0x50] ss:$8 sps:$4 sm:$0xff]  }
 0x117   :  { %v796_v62 = vpack.c.bf16 %v515_v52, %v511_v51  ;;  %v859_v6 = vmax.bf16 %v4949_v1, %v795_v56  ;;  %v519_v9 = vadd.f32 %v518_v58, %v5299_v25  ;;  %v4649_v51 = vld [vmem:[#allocation3 + $0xb0] ss:$8 sps:$4 sm:$0xff]   ;;  %2492 = vmatpush1.bf16.msra.mxu1 %v4646_v47 }
 0x118   :  { %v520_v63 = vpop.f32.mrf.mxu0  ;;  %v5380_v23 = vpop.f32.mrf.mxu1  ;;  %1829 = vmatpush2.bf16.msra.mxu0 %v4649_v51  ;;  %v4657_v51 = vld [vmem:[#allocation5 + $0x54] ss:$8 sps:$4 sm:$0xff]  }
 0x119   :  { %v860_v3 = vmax.bf16 %v4949_v1, %v796_v62  ;;  %v521_v13 = vadd.f32 %v520_v63, %v5302_v27  ;;  %1830 = vmatprep.subr.bf16.mxu0 %v4654_v16  ;;  %2493 = vmatprep.subr.bf16.mxu1 %v4657_v51  ;;  %v4663_v51 = vld [vmem:[#allocation3 + $0x84] ss:$8 sps:$4 sm:$0xff]  }
 0x11a   :  { %v522_v4 = vpop.f32.mrf.mxu0  ;;  %v5382_v29 = vpop.f32.mrf.mxu1 }
 0x11b   :  { %v523_v8 = vadd.f32 %v522_v4, %v5299_v25  ;;  %1191 = vmatprep.mubr.bf16.mxu1 %v860_v3  ;;  %2494 = vmatpush1.bf16.msra.mxu1 %v4655_v48 }
 0x11c   :  { %v524_v10 = vpop.f32.mrf.mxu0  ;;  %1192 = vmatmul.mubr.bf16.gmra.mxu1 %v859_v6  ;;  %v5386_v34 = vpop.f32.mrf.mxu1 }
 0x11d   :  { %v525_v14 = vadd.f32 %v524_v10, %v5302_v27  ;;  %v797_v18 = vpack.c.bf16 %v523_v8, %v519_v9 }
 0x11e   :  { %v528_v22 = vpop.f32.mrf.mxu0  ;;  %v5390_v41 = vpop.f32.mrf.mxu1 }
 0x11f   :  { %v798_v24 = vpack.c.bf16 %v525_v14, %v521_v13  ;;  %v861_v33 = vmax.bf16 %v4949_v1, %v797_v18  ;;  %v529_v37 = vadd.f32 %v528_v22, %v5299_v25  ;;  %v4652_v14 = vld [vmem:[#allocation3 + $0xa0] ss:$8 sps:$4 sm:$0xff]  }
 0x120   :  { %v530_v28 = vpop.f32.mrf.mxu0  ;;  %v5394_v54 = vpop.f32.mrf.mxu1  ;;  %1831 = vmatpush2.bf16.msra.mxu0 %v4652_v14 }
 0x121   :  { %v862_v30 = vmax.bf16 %v4949_v1, %v798_v24  ;;  %v531_v43 = vadd.f32 %v530_v28, %v5302_v27 }
 0x122   :  { %v532_v31 = vpop.f32.mrf.mxu0  ;;  %v5396_v61 = vpop.f32.mrf.mxu1 }
 0x123   :  { %v533_v36 = vadd.f32 %v532_v31, %v5299_v25  ;;  %1201 = vmatprep.mubr.bf16.mxu1 %v862_v30 }
 0x124   :  { %v534_v40 = vpop.f32.mrf.mxu0  ;;  %1202 = vmatmul.mubr.bf16.gmra.mxu1 %v861_v33  ;;  %v5400_v4 = vpop.f32.mrf.mxu1 }
 0x125   :  { %v535_v45 = vadd.f32 %v534_v40, %v5302_v27  ;;  %v799_v52 = vpack.c.bf16 %v533_v36, %v529_v37 }
 0x126   :  { %v538_v53 = vpop.f32.mrf.mxu0  ;;  %v5406_v22 = vpop.f32.mrf.mxu1 }
 0x127   :  { %v800_v56 = vpack.c.bf16 %v535_v45, %v531_v43  ;;  %v863_v3 = vmax.bf16 %v4949_v1, %v799_v52  ;;  %v539_v8 = vadd.f32 %v538_v53, %v5299_v25  ;;  %v4658_v52 = vld [vmem:[#allocation3 + $0x90] ss:$8 sps:$4 sm:$0xff]  }
 0x128   :  { %v540_v58 = vpop.f32.mrf.mxu0  ;;  %v5410_v36 = vpop.f32.mrf.mxu1 }
 0x129   :  { %v864_v62 = vmax.bf16 %v4949_v1, %v800_v56  ;;  %v541_v10 = vadd.f32 %v540_v58, %v5302_v27  ;;  %v4660_v58 = vld [vmem:[#allocation3 + $0x94] ss:$8 sps:$4 sm:$0xff]  }
 0x12a   :  { %v542_v63 = vpop.f32.mrf.mxu0  ;;  %v5416_v56 = vpop.f32.mrf.mxu1  ;;  %1832 = vmatprep.subr.bf16.mxu0 %v4660_v58 }
 0x12b   :  { %v543_v6 = vadd.f32 %v542_v63, %v5299_v25  ;;  %1211 = vmatprep.mubr.bf16.mxu1 %v864_v62  ;;  %1833 = vmatpush2.bf16.msra.mxu0 %v4658_v52 }
 0x12c   :  { %v544_v9 = vpop.f32.mrf.mxu0  ;;  %1212 = vmatmul.mubr.bf16.gmra.mxu1 %v863_v3  ;;  %1834 = vmatprep.subr.bf16.mxu0 %v4663_v51 }
 0x12d   :  { %v545_v13 = vadd.f32 %v544_v9, %v5302_v27  ;;  %v801_v17 = vpack.c.bf16 %v543_v6, %v539_v8  ;;  %v5420_v9 = vpop.f32.mrf.mxu1 }
 0x12e   :  { %v548_v18 = vpop.f32.mrf.mxu0 }
 0x12f   :  { %v802_v24 = vpack.c.bf16 %v545_v13, %v541_v10  ;;  %v865_v33 = vmax.bf16 %v4949_v1, %v801_v17  ;;  %v549_v40 = vadd.f32 %v548_v18, %v5299_v25 }
 0x130   :  { %v550_v28 = vpop.f32.mrf.mxu0 }
 0x131   :  { %v866_v30 = vmax.bf16 %v4949_v1, %v802_v24  ;;  %v551_v45 = vadd.f32 %v550_v28, %v5302_v27  ;;  %v5426_v28 = vpop.f32.mrf.mxu1 }
 0x132   :  { %v552_v31 = vpop.f32.mrf.mxu0 }
 0x133   :  { %v553_v37 = vadd.f32 %v552_v31, %v5299_v25  ;;  %1221 = vmatprep.mubr.bf16.mxu1 %v866_v30 }
 0x134   :  { %v554_v43 = vpop.f32.mrf.mxu0  ;;  %1222 = vmatmul.mubr.bf16.gmra.mxu1 %v865_v33 }
 0x135   :  { %v555_v47 = vadd.f32 %v554_v43, %v5302_v27  ;;  %v803_v53 = vpack.c.bf16 %v553_v37, %v549_v40  ;;  %v5430_v43 = vpop.f32.mrf.mxu1 }
 0x136   :  { %v558_v55 = vpop.f32.mrf.mxu0 }
 0x137   :  { %v804_v62 = vpack.c.bf16 %v555_v47, %v551_v45  ;;  %v867_v8 = vmax.bf16 %v4949_v1, %v803_v53  ;;  %v559_v13 = vadd.f32 %v558_v55, %v5299_v25  ;;  %v4661_v55 = vld [vmem:[#allocation3 + $0x80] ss:$8 sps:$4 sm:$0xff]  }
 0x138   :  { %v560_v63 = vpop.f32.mrf.mxu0  ;;  %1835 = vmatpush2.bf16.msra.mxu0 %v4661_v55 }
 0x139   :  { %v868_v3 = vmax.bf16 %v4949_v1, %v804_v62  ;;  %v561_v16 = vadd.f32 %v560_v63, %v5302_v27  ;;  %v5436_v63 = vpop.f32.mrf.mxu1 }
 0x13a   :  { %v562_v6 = vpop.f32.mrf.mxu0 }
 0x13b   :  { %v563_v10 = vadd.f32 %v562_v6, %v5299_v25  ;;  %1231 = vmatprep.mubr.bf16.mxu1 %v868_v3  ;;  %v4664_v6 = vld [vmem:[#allocation5 + $0x40] ss:$8 sps:$4 sm:$0xff]  }
 0x13c   :  { %v564_v14 = vpop.f32.mrf.mxu0  ;;  %1232 = vmatmul.mubr.bf16.gmra.mxu1 %v867_v8  ;;  %v4666_v8 = vld [vmem:[#allocation5 + $0x44] ss:$8 sps:$4 sm:$0xff]  }
 0x13d   :  { %v565_v17 = vadd.f32 %v564_v14, %v5302_v27  ;;  %v805_v18 = vpack.c.bf16 %v563_v10, %v559_v13  ;;  %2495 = vmatprep.subr.bf16.mxu1 %v4666_v8 }
 0x13e   :  { %v568_v24 = vpop.f32.mrf.mxu0  ;;  %2496 = vmatpush1.bf16.msra.mxu1 %v4664_v6 }
 0x13f   :  { %v806_v30 = vpack.c.bf16 %v565_v17, %v561_v16  ;;  %v869_v40 = vmax.bf16 %v4949_v1, %v805_v18  ;;  %v569_v47 = vadd.f32 %v568_v24, %v5299_v25  ;;  %v5440_v17 = vpop.f32.mrf.mxu1 }
 0x140   :  { %v570_v31 = vpop.f32.mrf.mxu0 }
 0x141   :  { %v870_v33 = vmax.bf16 %v4949_v1, %v806_v30  ;;  %v571_v52 = vadd.f32 %v570_v31, %v5302_v27 }
 0x142   :  { %v572_v37 = vpop.f32.mrf.mxu0 }
 0x143   :  { %v573_v45 = vadd.f32 %v572_v37, %v5299_v25  ;;  %1241 = vmatprep.mubr.bf16.mxu1 %v870_v33 }
 0x144   :  { %v574_v48 = vpop.f32.mrf.mxu0  ;;  %1242 = vmatmul.mubr.bf16.gmra.mxu1 %v869_v40 }
 0x145   :  { %v575_v53 = vadd.f32 %v574_v48, %v5302_v27  ;;  %v807_v58 = vpack.c.bf16 %v573_v45, %v569_v47  ;;  %v5446_v45 = vpop.f32.mrf.mxu1 }
 0x146   :  { %v578_v62 = vpop.f32.mrf.mxu0 }
 0x147   :  { %v808_v3 = vpack.c.bf16 %v575_v53, %v571_v52  ;;  %v871_v16 = vmax.bf16 %v4949_v1, %v807_v58  ;;  %v579_v24 = vadd.f32 %v578_v62, %v5299_v25  ;;  %v5450_v55 = vpop.f32.mrf.mxu1 }
 0x148   :  { %v580_v10 = vpop.f32.mrf.mxu0 }
 0x149   :  { %v872_v13 = vmax.bf16 %v4949_v1, %v808_v3  ;;  %v581_v31 = vadd.f32 %v580_v10, %v5302_v27 }
 0x14a   :  { %v582_v14 = vpop.f32.mrf.mxu0 }
 0x14b   :  { %v583_v18 = vadd.f32 %v582_v14, %v5299_v25  ;;  %1251 = vmatprep.mubr.bf16.mxu1 %v872_v13  ;;  %v5456_v14 = vpop.f32.mrf.mxu1 }
 0x14c   :  { %v584_v30 = vpop.f32.mrf.mxu0  ;;  %1252 = vmatmul.mubr.bf16.gmra.mxu1 %v871_v16 }
 0x14d   :  { %v585_v33 = vadd.f32 %v584_v30, %v5302_v27  ;;  %v809_v37 = vpack.c.bf16 %v583_v18, %v579_v24  ;;  %v4667_v18 = vld [vmem:[#allocation5 + $0x30] ss:$8 sps:$4 sm:$0xff]   ;;  %v4669_v24 = vld [vmem:[#allocation5 + $0x34] ss:$8 sps:$4 sm:$0xff]  }
 0x14e   :  { %v588_v40 = vpop.f32.mrf.mxu0  ;;  %2497 = vmatprep.subr.bf16.mxu1 %v4669_v24 }
 0x14f   :  { %v810_v47 = vpack.c.bf16 %v585_v33, %v581_v31  ;;  %v873_v53 = vmax.bf16 %v4949_v1, %v809_v37  ;;  %v589_v62 = vadd.f32 %v588_v40, %v5299_v25  ;;  %v5460_v40 = vpop.f32.mrf.mxu1  ;;  %2498 = vmatpush1.bf16.msra.mxu1 %v4667_v18 }
 0x150   :  { %v590_v48 = vpop.f32.mrf.mxu0 }
 0x151   :  { %v874_v51 = vmax.bf16 %v4949_v1, %v810_v47  ;;  %v591_v6 = vadd.f32 %v590_v48, %v5302_v27 }
 0x152   :  { %v592_v52 = vpop.f32.mrf.mxu0 }
 0x153   :  { %v593_v58 = vadd.f32 %v592_v52, %v5299_v25  ;;  %1261 = vmatprep.mubr.bf16.mxu1 %v874_v51 }
 0x154   :  { %v594_v3 = vpop.f32.mrf.mxu0  ;;  %1262 = vmatmul.mubr.bf16.gmra.mxu1 %v873_v53 }
 0x155   :  { %v595_v8 = vadd.f32 %v594_v3, %v5302_v27  ;;  %v811_v10 = vpack.c.bf16 %v593_v58, %v589_v62  ;;  %v5466_v3 = vpop.f32.mrf.mxu1 }
 0x156   :  { %v598_v13 = vpop.f32.mrf.mxu0  ;;  %6967 = vst [vmem:[#allocation10_spill] sm:$0xff] %v5466_v3 }
 0x157   :  { %v812_v16 = vpack.c.bf16 %v595_v8, %v591_v6  ;;  %v875_v33 = vmax.bf16 %v4949_v1, %v811_v10  ;;  %v599_v48 = vadd.f32 %v598_v13, %v5299_v25  ;;  %v5470_v24 = vpop.f32.mrf.mxu1 }
 0x158   :  { %v600_v30 = vpop.f32.mrf.mxu0 }
 0x159   :  { %v876_v31 = vmax.bf16 %v4949_v1, %v812_v16  ;;  %v601_v52 = vadd.f32 %v600_v30, %v5302_v27 }
 0x15a   :  { %v602_v37 = vpop.f32.mrf.mxu0 }
 0x15b   :  { %v603_v47 = vadd.f32 %v602_v37, %v5299_v25  ;;  %1271 = vmatprep.mubr.bf16.mxu1 %v876_v31 }
 0x15c   :  { %v604_v51 = vpop.f32.mrf.mxu0  ;;  %1272 = vmatmul.mubr.bf16.gmra.mxu1 %v875_v33 }
 0x15d   :  { %v605_v53 = vadd.f32 %v604_v51, %v5302_v27  ;;  %v813_v58 = vpack.c.bf16 %v603_v47, %v599_v48  ;;  %v5476_v51 = vpop.f32.mrf.mxu1 }
 0x15e   :  { %v608_v62 = vpop.f32.mrf.mxu0 }
 0x15f   :  { %v814_v6 = vpack.c.bf16 %v605_v53, %v601_v52  ;;  %v877_v16 = vmax.bf16 %v4949_v1, %v813_v58  ;;  %v609_v30 = vadd.f32 %v608_v62, %v5299_v25  ;;  %v4670_v53 = vld [vmem:[#allocation5 + $0x20] ss:$8 sps:$4 sm:$0xff]   ;;  %v4672_v58 = vld [vmem:[#allocation5 + $0x24] ss:$8 sps:$4 sm:$0xff]  }
 0x160   :  { %v610_v8 = vpop.f32.mrf.mxu0  ;;  %2499 = vmatprep.subr.bf16.mxu1 %v4672_v58 }
 0x161   :  { %v878_v10 = vmax.bf16 %v4949_v1, %v814_v6  ;;  %v611_v33 = vadd.f32 %v610_v8, %v5302_v27  ;;  %2500 = vmatpush1.bf16.msra.mxu1 %v4670_v53  ;;  %v631_v8 = vadd.f32 %v5310_v39, %v5302_v27 }
 0x162   :  { %v612_v18 = vpop.f32.mrf.mxu0 }
 0x163   :  { %v613_v13 = vadd.f32 %v612_v18, %v5299_v25  ;;  %1281 = vmatprep.mubr.bf16.mxu1 %v878_v10  ;;  %v5480_v18 = vpop.f32.mrf.mxu1 }
 0x164   :  { %v614_v31 = vpop.f32.mrf.mxu0  ;;  %1282 = vmatmul.mubr.bf16.gmra.mxu1 %v877_v16  ;;  %v635_v16 = vadd.f32 %v5316_v46, %v5302_v27  ;;  %v629_v46 = vadd.f32 %v5306_v32, %v5299_v25 }
 0x165   :  { %v615_v37 = vadd.f32 %v614_v31, %v5302_v27  ;;  %v815_v47 = vpack.c.bf16 %v613_v13, %v609_v30 }
 0x166   :  { %v618_v48 = vpop.f32.mrf.mxu0  ;;  %v820_v53 = vpack.c.bf16 %v635_v16, %v631_v8 }
 0x167   :  { %v816_v52 = vpack.c.bf16 %v615_v37, %v611_v33  ;;  %v879_v10 = vmax.bf16 %v4949_v1, %v815_v47  ;;  %v619_v30 = vadd.f32 %v618_v48, %v5299_v25 }
 0x168   :  { %v620_v6 = vpop.f32.mrf.mxu0  ;;  %v884_v8 = vmax.bf16 %v4949_v1, %v820_v53 }
 0x169   :  { %v880_v3 = vmax.bf16 %v4949_v1, %v816_v52  ;;  %v621_v33 = vadd.f32 %v620_v6, %v5302_v27  ;;  %v5490_v52 = vpop.f32.mrf.mxu1  ;;  %v641_v6 = vadd.f32 %v5324_v57, %v5302_v27  ;;  %v639_v57 = vadd.f32 %v5320_v50, %v5299_v25 }
 0x16a   :  { %v622_v62 = vpop.f32.mrf.mxu0 }
 0x16b   :  { %v623_v13 = vadd.f32 %v622_v62, %v5299_v25  ;;  %1291 = vmatprep.mubr.bf16.mxu1 %v880_v3  ;;  %v633_v3 = vadd.f32 %v5312_v42, %v5299_v25  ;;  %v645_v62 = vadd.f32 %v5330_v0, %v5302_v27  ;;  %v4673_v42 = vld [vmem:[#allocation5 + $0x10] ss:$8 sps:$4 sm:$0xff]   ;;  %v643_v0 = vadd.f32 %v5326_v60, %v5299_v25 }
 0x16c   :  { %v624_v31 = vpop.f32.mrf.mxu0  ;;  %1292 = vmatmul.mubr.bf16.gmra.mxu1 %v879_v10  ;;  %v5498_v10 = vpop.f32.mrf.mxu1  ;;  %v649_v60 = vadd.f32 %v5334_v5, %v5299_v25  ;;  %v4676_v5 = vld [vmem:[#allocation5] ss:$8 sps:$4 sm:$0xff]  }
 0x16d   :  { %v625_v37 = vadd.f32 %v624_v31, %v5302_v27  ;;  %v817_v47 = vpack.c.bf16 %v623_v13, %v619_v30  ;;  %v819_v16 = vpack.c.bf16 %v633_v3, %v629_v46  ;;  %v822_v13 = vpack.c.bf16 %v645_v62, %v641_v6  ;;  %v4675_v30 = vld [vmem:[#allocation5 + $0x14] ss:$8 sps:$4 sm:$0xff]  }
 0x16e   :  { %v5505_v32 = vpop.f32.mrf.mxu1  ;;  %2501 = vmatprep.subr.bf16.mxu1 %v4675_v30  ;;  %v653_v3 = vadd.f32 %v5340_v15, %v5299_v25  ;;  %v671_v30 = vadd.f32 %v5366_v59, %v5302_v27 }
 0x16f   :  { %v818_v58 = vpack.c.bf16 %v625_v37, %v621_v33  ;;  %v881_v48 = vmax.bf16 %v4949_v1, %v817_v47  ;;  %v883_v31 = vmax.bf16 %v4949_v1, %v819_v16  ;;  %2502 = vmatpush1.bf16.msra.mxu1 %v4673_v42  ;;  %v651_v37 = vadd.f32 %v5338_v12, %v5302_v27 }
 0x170   :  { %v5512_v33 = vpop.f32.mrf.mxu1  ;;  %v655_v47 = vadd.f32 %v5344_v20, %v5302_v27  ;;  %v886_v53 = vmax.bf16 %v4949_v1, %v822_v13  ;;  %v661_v20 = vadd.f32 %v5352_v35, %v5302_v27  ;;  %v823_v62 = vpack.c.bf16 %v653_v3, %v649_v60  ;;  %v4678_v13 = vld [vmem:[#allocation5 + $0x4] ss:$8 sps:$4 sm:$0xff]  }
 0x171   :  { %v882_v39 = vmax.bf16 %v4949_v1, %v818_v58  ;;  %v821_v58 = vpack.c.bf16 %v643_v0, %v639_v57  ;;  %2503 = vmatprep.subr.bf16.mxu1 %v4678_v13  ;;  %v659_v42 = vadd.f32 %v5348_v26, %v5299_v25  ;;  %v663_v35 = vadd.f32 %v5354_v38, %v5299_v25 }
 0x172   :  { %v824_v50 = vpack.c.bf16 %v655_v47, %v651_v37  ;;  %v887_v15 = vmax.bf16 %v4949_v1, %v823_v62  ;;  %v669_v38 = vadd.f32 %v5362_v49, %v5299_v25  ;;  %v4679_v49 = vld [vmem:[#allocation5 + $0xf0] ss:$8 sps:$4 sm:$0xff]   ;;  %v695_v62 = vadd.f32 %v5400_v4, %v5302_v27 }
 0x173   :  { %1301 = vmatprep.mubr.bf16.mxu1 %v882_v39  ;;  %v5519_v39 = vpop.f32.mrf.mxu1  ;;  %v885_v46 = vmax.bf16 %v4949_v1, %v821_v58  ;;  %2504 = vmatpush1.bf16.msra.mxu1 %v4676_v5  ;;  %v825_v0 = vpack.c.bf16 %v663_v35, %v659_v42  ;;  %v685_v58 = vadd.f32 %v5386_v34, %v5302_v27 }
 0x174   :  { %1302 = vmatmul.mubr.bf16.gmra.mxu1 %v881_v48  ;;  %v665_v48 = vadd.f32 %v5358_v44, %v5302_v27  ;;  %v888_v6 = vmax.bf16 %v4949_v1, %v824_v50  ;;  %v693_v42 = vadd.f32 %v5396_v61, %v5299_v25  ;;  %v701_v4 = vadd.f32 %v5410_v36, %v5302_v27 }
 0x175   :  { %1311 = vmatprep.mubr.bf16.mxu1 %v884_v8  ;;  %v5526_v12 = vpop.f32.mrf.mxu1  ;;  %v889_v47 = vmax.bf16 %v4949_v1, %v825_v0  ;;  %v705_v35 = vadd.f32 %v5420_v9, %v5302_v27  ;;  %v703_v36 = vadd.f32 %v5416_v56, %v5299_v25  ;;  %v709_v56 = vadd.f32 %v5426_v28, %v5299_v25  ;;  %v4685_v28 = vld [vmem:[#allocation5 + $0xd0] ss:$8 sps:$4 sm:$0xff]  }
 0x176   :  { %v826_v16 = vpack.c.bf16 %v665_v48, %v661_v20  ;;  %v4681_v20 = vld [vmem:[#allocation5 + $0xf4] ss:$8 sps:$4 sm:$0xff]   ;;  %v679_v48 = vadd.f32 %v5376_v11, %v5299_v25 }
 0x177   :  { %v5533_v8 = vpop.f32.mrf.mxu1  ;;  %2505 = vmatprep.subr.bf16.mxu1 %v4681_v20  ;;  %v834_v0 = vpack.c.bf16 %v705_v35, %v701_v4 }
 0x178   :  { %v890_v57 = vmax.bf16 %v4949_v1, %v826_v16  ;;  %2506 = vmatpush2.bf16.msra.mxu1 %v4679_v49  ;;  %v725_v49 = vadd.f32 %v5460_v40, %v5302_v27 }
 0x179   :  { %v5540_v44 = vpop.f32.mrf.mxu1 }
 0x17b   :  { %v5547_v37 = vpop.f32.mrf.mxu1 }
 0x17c   :  { %1312 = vmatmul.mubr.bf16.gmra.mxu1 %v883_v31  ;;  %v675_v31 = vadd.f32 %v5372_v7, %v5302_v27  ;;  %v681_v7 = vadd.f32 %v5380_v23, %v5302_v27  ;;  %v683_v23 = vadd.f32 %v5382_v29, %v5299_v25  ;;  %v689_v29 = vadd.f32 %v5390_v41, %v5299_v25  ;;  %v4682_v41 = vld [vmem:[#allocation5 + $0xe0] ss:$8 sps:$4 sm:$0xff]  }
 0x17d   :  { %1321 = vmatprep.mubr.bf16.mxu1 %v886_v53  ;;  %v673_v53 = vadd.f32 %v5368_v2, %v5299_v25  ;;  %v5554_v59 = vpop.f32.mrf.mxu1 }
 0x17e   :  { %v828_v26 = vpack.c.bf16 %v675_v31, %v671_v30  ;;  %v830_v3 = vpack.c.bf16 %v685_v58, %v681_v7  ;;  %v829_v5 = vpack.c.bf16 %v683_v23, %v679_v48  ;;  %v831_v31 = vpack.c.bf16 %v693_v42, %v689_v29 }
 0x17f   :  { %v5561_v60 = vpop.f32.mrf.mxu1  ;;  %v898_v7 = vmax.bf16 %v4949_v1, %v834_v0 }
 0x180   :  { %v892_v50 = vmax.bf16 %v4949_v1, %v828_v26  ;;  %v894_v16 = vmax.bf16 %v4949_v1, %v830_v3  ;;  %v4684_v26 = vld [vmem:[#allocation5 + $0xe4] ss:$8 sps:$4 sm:$0xff]   ;;  %v895_v61 = vmax.bf16 %v4949_v1, %v831_v31  ;;  %v713_v3 = vadd.f32 %v5436_v63, %v5299_v25 }
 0x181   :  { %v5568_v34 = vpop.f32.mrf.mxu1  ;;  %2507 = vmatprep.subr.bf16.mxu1 %v4684_v26  ;;  %v733_v31 = vadd.f32 %v5476_v51, %v5299_v25  ;;  %v741_v26 = vadd.f32 %v5498_v10, %v5302_v27 }
 0x182   :  { %2508 = vmatpush2.bf16.msra.mxu1 %v4682_v41 }
 0x183   :  { %v5575_v13 = vpop.f32.mrf.mxu1 }
 0x184   :  { %1322 = vmatmul.mubr.bf16.gmra.mxu1 %v885_v46  ;;  %v827_v46 = vpack.c.bf16 %v673_v53, %v669_v38  ;;  %v711_v38 = vadd.f32 %v5430_v43, %v5302_v27  ;;  %v715_v53 = vadd.f32 %v5440_v17, %v5302_v27  ;;  %v721_v17 = vadd.f32 %v5450_v55, %v5302_v27 }
 0x185   :  { %1331 = vmatprep.mubr.bf16.mxu1 %v888_v6  ;;  %v691_v6 = vadd.f32 %v5394_v54, %v5302_v27  ;;  %v5582_v54 = vpop.f32.mrf.mxu1  ;;  %v723_v55 = vadd.f32 %v5456_v14, %v5299_v25 }
 0x186   :  { %v891_v2 = vmax.bf16 %v4949_v1, %v827_v46  ;;  %v838_v23 = vpack.c.bf16 %v725_v49, %v721_v17  ;;  %v4688_v17 = vld [vmem:[#allocation5 + $0xc0] ss:$8 sps:$4 sm:$0xff]   ;;  %v4690_v49 = vld [vmem:[#allocation5 + $0xc4] ss:$8 sps:$4 sm:$0xff]  }
 0x187   :  { %v832_v11 = vpack.c.bf16 %v695_v62, %v691_v6  ;;  %v4687_v6 = vld [vmem:[#allocation5 + $0xd4] ss:$8 sps:$4 sm:$0xff]   ;;  %v719_v62 = vadd.f32 %v5446_v45, %v5299_v25 }
 0x188   :  { %2509 = vmatprep.subr.bf16.mxu1 %v4687_v6  ;;  %v743_v6 = vadd.f32 %v5505_v32, %v5299_v25 }
 0x189   :  { %v896_v30 = vmax.bf16 %v4949_v1, %v832_v11  ;;  %2510 = vmatpush2.bf16.msra.mxu1 %v4685_v28  ;;  %v947_v11 = vld [vmem:[%s6957_s4] sm:$0x3]  ;;  %v837_v45 = vpack.c.bf16 %v723_v55, %v719_v62 }
 0x18a   :  { %v5635_v14 = vrot.slane %v947_v11, %v5291_v19  ;;  %2511 = vmatprep.subr.bf16.mxu1 %v4690_v49 }
 0x18b   :  { %v901_v41 = vmax.bf16 %v4949_v1, %v837_v45 }
 0x18c   :  { %1332 = vmatmul.mubr.bf16.gmra.mxu1 %v887_v15  ;;  %v893_v15 = vmax.bf16 %v4949_v1, %v829_v5  ;;  %v735_v5 = vadd.f32 %v5480_v18, %v5302_v27  ;;  %v6968_v18 = vld [vmem:[#allocation10_spill] sm:$0xff] }
 0x18d   :  { %1341 = vmatprep.mubr.bf16.mxu1 %v890_v57  ;;  %v5589_v57 = vpop.f32.mrf.mxu1  ;;  %2512 = vmatpush2.bf16.msra.mxu1 %v4688_v17  ;;  %v759_v17 = vadd.f32 %v5547_v37, %v5299_v25 }
 0x18f   :  { %v5596_v9 = vpop.f32.mrf.mxu1 }
 0x194   :  { %1342 = vmatmul.mubr.bf16.gmra.mxu1 %v889_v47  ;;  %v699_v47 = vadd.f32 %v5406_v22, %v5299_v25  ;;  %v836_v22 = vpack.c.bf16 %v715_v53, %v711_v38 }
 0x195   :  { %1351 = vmatprep.mubr.bf16.mxu1 %v892_v50  ;;  %v5603_v50 = vpop.f32.mrf.mxu1 }
 0x196   :  { %v833_v58 = vpack.c.bf16 %v703_v36, %v699_v47  ;;  %v900_v20 = vmax.bf16 %v4949_v1, %v836_v22  ;;  %v745_v36 = vadd.f32 %v5512_v33, %v5302_v27 }
 0x197   :  { %v5610_v43 = vpop.f32.mrf.mxu1 }
 0x198   :  { %v897_v46 = vmax.bf16 %v4949_v1, %v833_v58  ;;  %v842_v10 = vpack.c.bf16 %v745_v36, %v741_v26 }
 0x199   :  { %v5617_v48 = vpop.f32.mrf.mxu1 }
 0x19b   :  { %v5624_v40 = vpop.f32.mrf.mxu1 }
 0x19c   :  { %1352 = vmatmul.mubr.bf16.gmra.mxu1 %v891_v2  ;;  %v835_v2 = vpack.c.bf16 %v713_v3, %v709_v56 }
 0x19d   :  { %1361 = vmatprep.mubr.bf16.mxu1 %v894_v16  ;;  %v731_v16 = vadd.f32 %v5470_v24, %v5302_v27  ;;  %v5638_v24 = vrot.slane %v947_v11, %v5296_v21  ;;  %v906_v11 = vmax.bf16 %v4949_v1, %v842_v10 }
 0x19e   :  { %v899_v63 = vmax.bf16 %v4949_v1, %v835_v2 }
 0x19f   :  { %v840_v4 = vpack.c.bf16 %v735_v5, %v731_v16  ;;  %v755_v16 = vadd.f32 %v5540_v44, %v5302_v27  ;;  %v749_v44 = vadd.f32 %v5519_v39, %v5299_v25 }
 0x1a4   :  { %1362 = vmatmul.mubr.bf16.gmra.mxu1 %v893_v15  ;;  %v902_v15 = vmax.bf16 %v4949_v1, %v838_v23  ;;  %v739_v23 = vadd.f32 %v5490_v52, %v5299_v25 }
 0x1a5   :  { %1371 = vmatprep.mubr.bf16.mxu1 %v896_v30  ;;  %v729_v30 = vadd.f32 %v6968_v18, %v5299_v25 }
 0x1a7   :  { %v839_v22 = vpack.c.bf16 %v733_v31, %v729_v30  ;;  %v753_v30 = vadd.f32 %v5533_v8, %v5299_v25 }
 0x1a9   :  { %v903_v2 = vmax.bf16 %v4949_v1, %v839_v22 }
 0x1ac   :  { %1372 = vmatmul.mubr.bf16.gmra.mxu1 %v895_v61 }
 0x1ad   :  { %1381 = vmatprep.mubr.bf16.mxu1 %v898_v7  ;;  %v904_v7 = vmax.bf16 %v4949_v1, %v840_v4 }
 0x1b4   :  { %1382 = vmatmul.mubr.bf16.gmra.mxu1 %v897_v46 }
 0x1b5   :  { %1391 = vmatprep.mubr.bf16.mxu1 %v900_v20 }
 0x1bc   :  { %v1153_v29 = vpop.f32.mrf.mxu1  ;;  %1392 = vmatmul.mubr.bf16.gmra.mxu1 %v899_v63  ;;  %v751_v63 = vadd.f32 %v5526_v12, %v5302_v27  ;;  %v841_v12 = vpack.c.bf16 %v743_v6, %v739_v23 }
 0x1bd   :  { %1401 = vmatprep.mubr.bf16.mxu1 %v902_v15  ;;  %v1154_v61 = vadd.f32 %v1153_v29, %v5635_v14 }
 0x1be   :  { %v1155_v42 = vpop.f32.mrf.mxu1 }
 0x1bf   :  { %v1156_v38 = vadd.f32 %v1155_v42, %v5638_v24  ;;  %v844_v42 = vpack.c.bf16 %v755_v16, %v751_v63 }
 0x1c0   :  { %v1157_v35 = vpop.f32.mrf.mxu1 }
 0x1c1   :  { %v1158_v0 = vadd.f32 %v1157_v35, %v5635_v14  ;;  %v908_v8 = vmax.bf16 %v4949_v1, %v844_v42 }
 0x1c2   :  { %v1159_v47 = vpop.f32.mrf.mxu1 }
 0x1c3   :  { %v1160_v53 = vadd.f32 %v1159_v47, %v5638_v24  ;;  %v1472_v51 = vpack.c.bf16 %v1158_v0, %v1154_v61  ;;  %v905_v0 = vmax.bf16 %v4949_v1, %v841_v12  ;;  %v765_v47 = vadd.f32 %v5568_v34, %v5302_v27 }
 0x1c4   :  { %v1163_v58 = vpop.f32.mrf.mxu1  ;;  %1402 = vmatmul.mubr.bf16.gmra.mxu1 %v901_v41  ;;  %v761_v41 = vadd.f32 %v5554_v59, %v5302_v27 }
 0x1c5   :  { %v1473_v46 = vpack.c.bf16 %v1160_v53, %v1156_v38  ;;  %1411 = vmatprep.mubr.bf16.mxu1 %v904_v7  ;;  %v1536_v33 = vmax.bf16 %v4949_v1, %v1472_v51  ;;  %v1164_v62 = vadd.f32 %v1163_v58, %v5635_v14  ;;  %v843_v7 = vpack.c.bf16 %v753_v30, %v749_v44 }
 0x1c6   :  { %v1165_v56 = vpop.f32.mrf.mxu1  ;;  %v846_v58 = vpack.c.bf16 %v765_v47, %v761_v41  ;;  %v4696_v41 = vld [vmem:[#allocation7 + $0x74] ss:$8 sps:$4 sm:$0xff]  }
 0x1c7   :  { %v1537_v3 = vmax.bf16 %v4949_v1, %v1473_v46  ;;  %v1166_v52 = vadd.f32 %v1165_v56, %v5638_v24  ;;  %v4691_v46 = vld [vmem:[#allocation5 + $0xb0] ss:$8 sps:$4 sm:$0xff]   ;;  %v4693_v56 = vld [vmem:[#allocation5 + $0xb4] ss:$8 sps:$4 sm:$0xff]   ;;  %3174 = vmatprep.subr.bf16.mxu0 %v4696_v41 }
 0x1c8   :  { %v1167_v20 = vpop.f32.mrf.mxu1  ;;  %2513 = vmatprep.subr.bf16.mxu1 %v4693_v56  ;;  %v910_v63 = vmax.bf16 %v4949_v1, %v846_v58 }
 0x1c9   :  { %v1168_v28 = vadd.f32 %v1167_v20, %v5635_v14  ;;  %1836 = vmatprep.mubr.bf16.mxu0 %v1537_v3  ;;  %v907_v3 = vmax.bf16 %v4949_v1, %v843_v7  ;;  %v771_v20 = vadd.f32 %v5582_v54, %v5302_v27  ;;  %2514 = vmatpush2.bf16.msra.mxu1 %v4691_v46 }
 0x1ca   :  { %v1169_v55 = vpop.f32.mrf.mxu1  ;;  %1837 = vmatmul.mubr.bf16.vlgmr.msra.gmra.mxu0 %v1536_v33  ;;  %v763_v33 = vadd.f32 %v5561_v60, %v5299_v25  ;;  %v783_v7 = vadd.f32 %v5617_v48, %v5299_v25 }
 0x1cb   :  { %v1170_v5 = vadd.f32 %v1169_v55, %v5638_v24  ;;  %v1474_v15 = vpack.c.bf16 %v1168_v28, %v1164_v62  ;;  %v775_v28 = vadd.f32 %v5596_v9, %v5302_v27  ;;  %v769_v9 = vadd.f32 %v5575_v13, %v5299_v25 }
 0x1cc   :  { %v1173_v29 = vpop.f32.mrf.mxu1  ;;  %1412 = vmatmul.mubr.bf16.gmra.mxu1 %v903_v2  ;;  %v845_v54 = vpack.c.bf16 %v763_v33, %v759_v17 }
 0x1cd   :  { %v1475_v32 = vpack.c.bf16 %v1170_v5, %v1166_v52  ;;  %1421 = vmatprep.mubr.bf16.mxu1 %v906_v11  ;;  %v1538_v18 = vmax.bf16 %v4949_v1, %v1474_v15  ;;  %v1174_v26 = vadd.f32 %v1173_v29, %v5635_v14  ;;  %v848_v52 = vpack.c.bf16 %v775_v28, %v771_v20 }
 0x1ce   :  { %v1175_v45 = vpop.f32.mrf.mxu1  ;;  %v773_v29 = vadd.f32 %v5589_v57, %v5299_v25  ;;  %v909_v12 = vmax.bf16 %v4949_v1, %v845_v54 }
 0x1cf   :  { %v1539_v4 = vmax.bf16 %v4949_v1, %v1475_v32  ;;  %v1176_v39 = vadd.f32 %v1175_v45, %v5638_v24  ;;  %v781_v45 = vadd.f32 %v5610_v43, %v5302_v27  ;;  %v912_v57 = vmax.bf16 %v4949_v1, %v848_v52  ;;  %v4694_v43 = vld [vmem:[#allocation7 + $0x70] ss:$8 sps:$4 sm:$0xff]   ;;  %v4705_v52 = vld [vmem:[#allocation5 + $0x94] ss:$8 sps:$4 sm:$0xff]  }
 0x1d0   :  { %v1177_v35 = vpop.f32.mrf.mxu1  ;;  %3175 = vmatpush1.bf16.msra.mxu0 %v4694_v43 }
 0x1d1   :  { %v1178_v31 = vadd.f32 %v1177_v35, %v5635_v14  ;;  %1846 = vmatprep.mubr.bf16.mxu0 %v1539_v4  ;;  %v785_v35 = vadd.f32 %v5624_v40, %v5302_v27  ;;  %v4697_v27 = vld [vmem:[#allocation5 + $0xa0] ss:$8 sps:$4 sm:$0xff]   ;;  %v4699_v40 = vld [vmem:[#allocation5 + $0xa4] ss:$8 sps:$4 sm:$0xff]  }
 0x1d2   :  { %v1179_v61 = vpop.f32.mrf.mxu1  ;;  %1847 = vmatmul.mubr.bf16.gmra.mxu0 %v1538_v18  ;;  %2515 = vmatprep.subr.bf16.mxu1 %v4699_v40 }
 0x1d3   :  { %v1180_v36 = vadd.f32 %v1179_v61, %v5638_v24  ;;  %v1476_v38 = vpack.c.bf16 %v1178_v31, %v1174_v26  ;;  %v847_v31 = vpack.c.bf16 %v773_v29, %v769_v9  ;;  %v850_v61 = vpack.c.bf16 %v785_v35, %v781_v45  ;;  %2516 = vmatpush2.bf16.msra.mxu1 %v4697_v27  ;;  %v4708_v27 = vld [vmem:[#allocation7 + $0x54] ss:$8 sps:$4 sm:$0xff]  }
 0x1d4   :  { %v1183_v53 = vpop.f32.mrf.mxu1  ;;  %1422 = vmatmul.mubr.bf16.gmra.mxu1 %v905_v0  ;;  %2517 = vmatprep.subr.bf16.mxu1 %v4705_v52 }
 0x1d5   :  { %v1477_v51 = vpack.c.bf16 %v1180_v36, %v1176_v39  ;;  %1431 = vmatprep.mubr.bf16.mxu1 %v908_v8  ;;  %v1540_v34 = vmax.bf16 %v4949_v1, %v1476_v38  ;;  %v1184_v2 = vadd.f32 %v1183_v53, %v5635_v14  ;;  %v911_v8 = vmax.bf16 %v4949_v1, %v847_v31 }
 0x1d6   :  { %v1185_v59 = vpop.f32.mrf.mxu1  ;;  %v779_v53 = vadd.f32 %v5603_v50, %v5299_v25  ;;  %v914_v46 = vmax.bf16 %v4949_v1, %v850_v61 }
 0x1d7   :  { %v1541_v22 = vmax.bf16 %v4949_v1, %v1477_v51  ;;  %v1186_v37 = vadd.f32 %v1185_v59, %v5638_v24 }
 0x1d8   :  { %v1187_v10 = vpop.f32.mrf.mxu1  ;;  %v849_v50 = vpack.c.bf16 %v783_v7, %v779_v53 }
 0x1d9   :  { %v1188_v49 = vadd.f32 %v1187_v10, %v5635_v14  ;;  %1856 = vmatprep.mubr.bf16.mxu0 %v1541_v22 }
 0x1da   :  { %v1189_v23 = vpop.f32.mrf.mxu1  ;;  %1857 = vmatmul.mubr.bf16.gmra.mxu0 %v1540_v34  ;;  %v913_v33 = vmax.bf16 %v4949_v1, %v849_v50 }
 0x1db   :  { %v1190_v6 = vadd.f32 %v1189_v23, %v5638_v24  ;;  %v1478_v62 = vpack.c.bf16 %v1188_v49, %v1184_v2 }
 0x1dc   :  { %v1193_v55 = vpop.f32.mrf.mxu1  ;;  %1432 = vmatmul.mubr.bf16.gmra.mxu1 %v907_v3 }
 0x1dd   :  { %v1479_v60 = vpack.c.bf16 %v1190_v6, %v1186_v37  ;;  %1441 = vmatprep.mubr.bf16.mxu1 %v910_v63  ;;  %v1542_v15 = vmax.bf16 %v4949_v1, %v1478_v62  ;;  %v1194_v42 = vadd.f32 %v1193_v55, %v5635_v14  ;;  %v4700_v62 = vld [vmem:[#allocation7 + $0x60] ss:$8 sps:$4 sm:$0xff]   ;;  %v4702_v55 = vld [vmem:[#allocation7 + $0x64] ss:$8 sps:$4 sm:$0xff]  }
 0x1de   :  { %v1195_v16 = vpop.f32.mrf.mxu1  ;;  %3176 = vmatprep.subr.bf16.mxu0 %v4702_v55 }
 0x1df   :  { %v1543_v5 = vmax.bf16 %v4949_v1, %v1479_v60  ;;  %v1196_v13 = vadd.f32 %v1195_v16, %v5638_v24  ;;  %v4703_v16 = vld [vmem:[#allocation5 + $0x90] ss:$8 sps:$4 sm:$0xff]   ;;  %3177 = vmatpush1.bf16.msra.mxu0 %v4700_v62 }
 0x1e0   :  { %v1197_v11 = vpop.f32.mrf.mxu1  ;;  %2518 = vmatpush2.bf16.msra.mxu1 %v4703_v16  ;;  %3178 = vmatprep.subr.bf16.mxu0 %v4708_v27 }
 0x1e1   :  { %v1198_v32 = vadd.f32 %v1197_v11, %v5635_v14  ;;  %1866 = vmatprep.mubr.bf16.mxu0 %v1543_v5 }
 0x1e2   :  { %v1199_v4 = vpop.f32.mrf.mxu1  ;;  %1867 = vmatmul.mubr.bf16.gmra.mxu0 %v1542_v15 }
 0x1e3   :  { %v1200_v18 = vadd.f32 %v1199_v4, %v5638_v24  ;;  %v1480_v44 = vpack.c.bf16 %v1198_v32, %v1194_v42 }
 0x1e4   :  { %v1203_v30 = vpop.f32.mrf.mxu1  ;;  %1442 = vmatmul.mubr.bf16.gmra.mxu1 %v909_v12 }
 0x1e5   :  { %v1481_v0 = vpack.c.bf16 %v1200_v18, %v1196_v13  ;;  %1451 = vmatprep.mubr.bf16.mxu1 %v912_v57  ;;  %v1544_v36 = vmax.bf16 %v4949_v1, %v1480_v44  ;;  %v1204_v51 = vadd.f32 %v1203_v30, %v5635_v14 }
 0x1e6   :  { %v1205_v26 = vpop.f32.mrf.mxu1 }
 0x1e7   :  { %v1545_v47 = vmax.bf16 %v4949_v1, %v1481_v0  ;;  %v1206_v58 = vadd.f32 %v1205_v26, %v5638_v24 }
 0x1e8   :  { %v1207_v39 = vpop.f32.mrf.mxu1 }
 0x1e9   :  { %v1208_v38 = vadd.f32 %v1207_v39, %v5635_v14  ;;  %1876 = vmatprep.mubr.bf16.mxu0 %v1545_v47  ;;  %v4706_v47 = vld [vmem:[#allocation7 + $0x50] ss:$8 sps:$4 sm:$0xff]  }
 0x1ea   :  { %v1209_v59 = vpop.f32.mrf.mxu1  ;;  %1877 = vmatmul.mubr.bf16.gmra.mxu0 %v1544_v36  ;;  %v4709_v36 = vld [vmem:[#allocation5 + $0x80] ss:$8 sps:$4 sm:$0xff]  }
 0x1eb   :  { %v1210_v22 = vadd.f32 %v1209_v59, %v5638_v24  ;;  %v1482_v56 = vpack.c.bf16 %v1208_v38, %v1204_v51  ;;  %3179 = vmatpush1.bf16.msra.mxu0 %v4706_v47 }
 0x1ec   :  { %v1213_v10 = vpop.f32.mrf.mxu1  ;;  %1452 = vmatmul.mubr.bf16.gmra.mxu1 %v911_v8  ;;  %v4711_v8 = vld [vmem:[#allocation5 + $0x84] ss:$8 sps:$4 sm:$0xff]  }
 0x1ed   :  { %v1483_v34 = vpack.c.bf16 %v1210_v22, %v1206_v58  ;;  %1461 = vmatprep.mubr.bf16.mxu1 %v914_v46  ;;  %v1546_v17 = vmax.bf16 %v4949_v1, %v1482_v56  ;;  %v1214_v20 = vadd.f32 %v1213_v10, %v5635_v14  ;;  %2519 = vmatprep.subr.bf16.mxu1 %v4711_v8 }
 0x1ee   :  { %v1215_v3 = vpop.f32.mrf.mxu1  ;;  %2520 = vmatpush2.bf16.msra.mxu1 %v4709_v36 }
 0x1ef   :  { %v1547_v25 = vmax.bf16 %v4949_v1, %v1483_v34  ;;  %v1216_v23 = vadd.f32 %v1215_v3, %v5638_v24 }
 0x1f0   :  { %v1217_v48 = vpop.f32.mrf.mxu1 }
 0x1f1   :  { %v1218_v49 = vadd.f32 %v1217_v48, %v5635_v14  ;;  %1886 = vmatprep.mubr.bf16.mxu0 %v1547_v25 }
 0x1f2   :  { %v1219_v2 = vpop.f32.mrf.mxu1  ;;  %1887 = vmatmul.mubr.bf16.gmra.mxu0 %v1546_v17 }
 0x1f3   :  { %v1220_v28 = vadd.f32 %v1219_v2, %v5638_v24  ;;  %v1484_v37 = vpack.c.bf16 %v1218_v49, %v1214_v20 }
 0x1f4   :  { %v1223_v6 = vpop.f32.mrf.mxu1  ;;  %1462 = vmatmul.mubr.bf16.gmra.mxu1 %v913_v33 }
 0x1f5   :  { %v1485_v63 = vpack.c.bf16 %v1220_v28, %v1216_v23  ;;  %v1548_v11 = vmax.bf16 %v4949_v1, %v1484_v37  ;;  %v1224_v9 = vadd.f32 %v1223_v6, %v5635_v14  ;;  %v4712_v37 = vld [vmem:[#allocation7 + $0x40] ss:$8 sps:$4 sm:$0xff]   ;;  %v4714_v6 = vld [vmem:[#allocation7 + $0x44] ss:$8 sps:$4 sm:$0xff]  }
 0x1f6   :  { %v1225_v60 = vpop.f32.mrf.mxu1  ;;  %3180 = vmatprep.subr.bf16.mxu0 %v4714_v6 }
 0x1f7   :  { %v1549_v54 = vmax.bf16 %v4949_v1, %v1485_v63  ;;  %v1226_v32 = vadd.f32 %v1225_v60, %v5638_v24  ;;  %3181 = vmatpush1.bf16.msra.mxu0 %v4712_v37 }
 0x1f8   :  { %v1227_v5 = vpop.f32.mrf.mxu1 }
 0x1f9   :  { %v1228_v15 = vadd.f32 %v1227_v5, %v5635_v14  ;;  %1896 = vmatprep.mubr.bf16.mxu0 %v1549_v54 }
 0x1fa   :  { %v1229_v29 = vpop.f32.mrf.mxu1  ;;  %1897 = vmatmul.mubr.bf16.gmra.mxu0 %v1548_v11 }
 0x1fb   :  { %v1230_v12 = vadd.f32 %v1229_v29, %v5638_v24  ;;  %v1486_v45 = vpack.c.bf16 %v1228_v15, %v1224_v9 }
 0x1fc   :  { %v1233_v42 = vpop.f32.mrf.mxu1 }
 0x1fd   :  { %v1487_v4 = vpack.c.bf16 %v1230_v12, %v1226_v32  ;;  %v1550_v57 = vmax.bf16 %v4949_v1, %v1486_v45  ;;  %v1234_v30 = vadd.f32 %v1233_v42, %v5635_v14 }
 0x1fe   :  { %v1235_v35 = vpop.f32.mrf.mxu1 }
 0x1ff   :  { %v1551_v13 = vmax.bf16 %v4949_v1, %v1487_v4  ;;  %v1236_v0 = vadd.f32 %v1235_v35, %v5638_v24 }
 0x200   :  { %v1237_v18 = vpop.f32.mrf.mxu1 }
 0x201   :  { %v1238_v44 = vadd.f32 %v1237_v18, %v5635_v14  ;;  %1906 = vmatprep.mubr.bf16.mxu0 %v1551_v13 }
 0x202   :  { %v1239_v31 = vpop.f32.mrf.mxu1  ;;  %1907 = vmatmul.mubr.bf16.gmra.mxu0 %v1550_v57 }
 0x203   :  { %v1240_v43 = vadd.f32 %v1239_v31, %v5638_v24  ;;  %v1488_v41 = vpack.c.bf16 %v1238_v44, %v1234_v30 }
 0x204   :  { %v1243_v26 = vpop.f32.mrf.mxu1 }
 0x205   :  { %v1489_v61 = vpack.c.bf16 %v1240_v43, %v1236_v0  ;;  %v1552_v53 = vmax.bf16 %v4949_v1, %v1488_v41  ;;  %v1244_v51 = vadd.f32 %v1243_v26, %v5635_v14  ;;  %v4715_v0 = vld [vmem:[#allocation7 + $0x30] ss:$8 sps:$4 sm:$0xff]   ;;  %v4717_v43 = vld [vmem:[#allocation7 + $0x34] ss:$8 sps:$4 sm:$0xff]  }
 0x206   :  { %v1245_v40 = vpop.f32.mrf.mxu1  ;;  %3182 = vmatprep.subr.bf16.mxu0 %v4717_v43 }
 0x207   :  { %v1553_v39 = vmax.bf16 %v4949_v1, %v1489_v61  ;;  %v1246_v58 = vadd.f32 %v1245_v40, %v5638_v24  ;;  %3183 = vmatpush1.bf16.msra.mxu0 %v4715_v0 }
 0x208   :  { %v1247_v38 = vpop.f32.mrf.mxu1 }
 0x209   :  { %v1248_v7 = vadd.f32 %v1247_v38, %v5635_v14  ;;  %1916 = vmatprep.mubr.bf16.mxu0 %v1553_v39 }
 0x20a   :  { %v1249_v59 = vpop.f32.mrf.mxu1  ;;  %1917 = vmatmul.mubr.bf16.gmra.mxu0 %v1552_v53 }
 0x20b   :  { %v1250_v22 = vadd.f32 %v1249_v59, %v5638_v24  ;;  %v1490_v46 = vpack.c.bf16 %v1248_v7, %v1244_v51 }
 0x20c   :  { %v1253_v56 = vpop.f32.mrf.mxu1 }
 0x20d   :  { %v1491_v10 = vpack.c.bf16 %v1250_v22, %v1246_v58  ;;  %v1554_v25 = vmax.bf16 %v4949_v1, %v1490_v46  ;;  %v1254_v17 = vadd.f32 %v1253_v56, %v5635_v14 }
 0x20e   :  { %v1255_v34 = vpop.f32.mrf.mxu1 }
 0x20f   :  { %v1555_v50 = vmax.bf16 %v4949_v1, %v1491_v10  ;;  %v1256_v33 = vadd.f32 %v1255_v34, %v5638_v24 }
 0x210   :  { %v1257_v3 = vpop.f32.mrf.mxu1 }
 0x211   :  { %v1258_v48 = vadd.f32 %v1257_v3, %v5635_v14  ;;  %1926 = vmatprep.mubr.bf16.mxu0 %v1555_v50 }
 0x212   :  { %v1259_v49 = vpop.f32.mrf.mxu1  ;;  %1927 = vmatmul.mubr.bf16.gmra.mxu0 %v1554_v25 }
 0x213   :  { %v1260_v20 = vadd.f32 %v1259_v49, %v5638_v24  ;;  %v1492_v2 = vpack.c.bf16 %v1258_v48, %v1254_v17  ;;  %v4718_v17 = vld [vmem:[#allocation7 + $0x20] ss:$8 sps:$4 sm:$0xff]   ;;  %v4720_v49 = vld [vmem:[#allocation7 + $0x24] ss:$8 sps:$4 sm:$0xff]  }
 0x214   :  { %v1263_v23 = vpop.f32.mrf.mxu1  ;;  %3184 = vmatprep.subr.bf16.mxu0 %v4720_v49 }
 0x215   :  { %v1493_v28 = vpack.c.bf16 %v1260_v20, %v1256_v33  ;;  %v1556_v60 = vmax.bf16 %v4949_v1, %v1492_v2  ;;  %v1264_v16 = vadd.f32 %v1263_v23, %v5635_v14  ;;  %3185 = vmatpush1.bf16.msra.mxu0 %v4718_v17 }
 0x216   :  { %v1265_v63 = vpop.f32.mrf.mxu1 }
 0x217   :  { %v1557_v62 = vmax.bf16 %v4949_v1, %v1493_v28  ;;  %v1266_v5 = vadd.f32 %v1265_v63, %v5638_v24 }
 0x218   :  { %v1267_v55 = vpop.f32.mrf.mxu1 }
 0x219   :  { %v1268_v54 = vadd.f32 %v1267_v55, %v5635_v14  ;;  %1936 = vmatprep.mubr.bf16.mxu0 %v1557_v62 }
 0x21a   :  { %v1269_v52 = vpop.f32.mrf.mxu1  ;;  %1937 = vmatmul.mubr.bf16.gmra.mxu0 %v1556_v60 }
 0x21b   :  { %v1270_v11 = vadd.f32 %v1269_v52, %v5638_v24  ;;  %v1494_v15 = vpack.c.bf16 %v1268_v54, %v1264_v16 }
 0x21c   :  { %v1273_v9 = vpop.f32.mrf.mxu1 }
 0x21d   :  { %v1495_v29 = vpack.c.bf16 %v1270_v11, %v1266_v5  ;;  %v1558_v42 = vmax.bf16 %v4949_v1, %v1494_v15  ;;  %v1274_v35 = vadd.f32 %v1273_v9, %v5635_v14 }
 0x21e   :  { %v1275_v32 = vpop.f32.mrf.mxu1 }
 0x21f   :  { %v1559_v12 = vmax.bf16 %v4949_v1, %v1495_v29  ;;  %v1276_v18 = vadd.f32 %v1275_v32, %v5638_v24 }
 0x220   :  { %v1277_v45 = vpop.f32.mrf.mxu1 }
 0x221   :  { %v1278_v4 = vadd.f32 %v1277_v45, %v5635_v14  ;;  %1946 = vmatprep.mubr.bf16.mxu0 %v1559_v12 }
 0x222   :  { %v1279_v13 = vpop.f32.mrf.mxu1  ;;  %1947 = vmatmul.mubr.bf16.gmra.mxu0 %v1558_v42 }
 0x223   :  { %v1280_v57 = vadd.f32 %v1279_v13, %v5638_v24  ;;  %v1496_v44 = vpack.c.bf16 %v1278_v4, %v1274_v35  ;;  %v4721_v35 = vld [vmem:[#allocation7 + $0x10] ss:$8 sps:$4 sm:$0xff]   ;;  %v4723_v13 = vld [vmem:[#allocation7 + $0x14] ss:$8 sps:$4 sm:$0xff]  }
 0x224   :  { %v1283_v30 = vpop.f32.mrf.mxu1  ;;  %3186 = vmatprep.subr.bf16.mxu0 %v4723_v13 }
 0x225   :  { %v1497_v31 = vpack.c.bf16 %v1280_v57, %v1276_v18  ;;  %v1560_v61 = vmax.bf16 %v4949_v1, %v1496_v44  ;;  %v1284_v40 = vadd.f32 %v1283_v30, %v5635_v14  ;;  %3187 = vmatpush1.bf16.msra.mxu0 %v4721_v35 }
 0x226   :  { %v1285_v41 = vpop.f32.mrf.mxu1 }
 0x227   :  { %v1561_v26 = vmax.bf16 %v4949_v1, %v1497_v31  ;;  %v1286_v36 = vadd.f32 %v1285_v41, %v5638_v24 }
 0x228   :  { %v1287_v47 = vpop.f32.mrf.mxu1 }
 0x229   :  { %v1288_v27 = vadd.f32 %v1287_v47, %v5635_v14  ;;  %1956 = vmatprep.mubr.bf16.mxu0 %v1561_v26 }
 0x22a   :  { %v1289_v39 = vpop.f32.mrf.mxu1  ;;  %1957 = vmatmul.mubr.bf16.gmra.mxu0 %v1560_v61 }
 0x22b   :  { %v1290_v8 = vadd.f32 %v1289_v39, %v5638_v24  ;;  %v1498_v38 = vpack.c.bf16 %v1288_v27, %v1284_v40 }
 0x22c   :  { %v1293_v53 = vpop.f32.mrf.mxu1 }
 0x22d   :  { %v1499_v7 = vpack.c.bf16 %v1290_v8, %v1286_v36  ;;  %v1562_v58 = vmax.bf16 %v4949_v1, %v1498_v38  ;;  %v1294_v56 = vadd.f32 %v1293_v53, %v5635_v14 }
 0x22e   :  { %v1295_v51 = vpop.f32.mrf.mxu1 }
 0x22f   :  { %v1563_v59 = vmax.bf16 %v4949_v1, %v1499_v7  ;;  %v1296_v34 = vadd.f32 %v1295_v51, %v5638_v24 }
 0x230   :  { %v1297_v22 = vpop.f32.mrf.mxu1 }
 0x231   :  { %v1298_v46 = vadd.f32 %v1297_v22, %v5635_v14  ;;  %1966 = vmatprep.mubr.bf16.mxu0 %v1563_v59 }
 0x232   :  { %v1299_v10 = vpop.f32.mrf.mxu1  ;;  %1967 = vmatmul.mubr.bf16.gmra.mxu0 %v1562_v58 }
 0x233   :  { %v1300_v50 = vadd.f32 %v1299_v10, %v5638_v24  ;;  %v1500_v3 = vpack.c.bf16 %v1298_v46, %v1294_v56  ;;  %v4724_v56 = vld [vmem:[#allocation7] ss:$8 sps:$4 sm:$0xff]   ;;  %v4726_v10 = vld [vmem:[#allocation7 + $0x4] ss:$8 sps:$4 sm:$0xff]  }
 0x234   :  { %v1303_v25 = vpop.f32.mrf.mxu1  ;;  %3188 = vmatprep.subr.bf16.mxu0 %v4726_v10 }
 0x235   :  { %v1501_v48 = vpack.c.bf16 %v1300_v50, %v1296_v34  ;;  %v1564_v2 = vmax.bf16 %v4949_v1, %v1500_v3  ;;  %v1304_v37 = vadd.f32 %v1303_v25, %v5635_v14  ;;  %3189 = vmatpush1.bf16.msra.mxu0 %v4724_v56 }
 0x236   :  { %v1305_v33 = vpop.f32.mrf.mxu1 }
 0x237   :  { %v1565_v20 = vmax.bf16 %v4949_v1, %v1501_v48  ;;  %v1306_v63 = vadd.f32 %v1305_v33, %v5638_v24 }
 0x238   :  { %v1307_v23 = vpop.f32.mrf.mxu1 }
 0x239   :  { %v1308_v28 = vadd.f32 %v1307_v23, %v5635_v14  ;;  %1976 = vmatprep.mubr.bf16.mxu0 %v1565_v20 }
 0x23a   :  { %v1309_v6 = vpop.f32.mrf.mxu1  ;;  %1977 = vmatmul.mubr.bf16.gmra.mxu0 %v1564_v2 }
 0x23b   :  { %v1310_v62 = vadd.f32 %v1309_v6, %v5638_v24  ;;  %v1502_v55 = vpack.c.bf16 %v1308_v28, %v1304_v37 }
 0x23c   :  { %v1313_v60 = vpop.f32.mrf.mxu1 }
 0x23d   :  { %v1503_v54 = vpack.c.bf16 %v1310_v62, %v1306_v63  ;;  %v1566_v5 = vmax.bf16 %v4949_v1, %v1502_v55  ;;  %v1314_v9 = vadd.f32 %v1313_v60, %v5635_v14 }
 0x23e   :  { %v1315_v16 = vpop.f32.mrf.mxu1 }
 0x23f   :  { %v1567_v52 = vmax.bf16 %v4949_v1, %v1503_v54  ;;  %v1316_v32 = vadd.f32 %v1315_v16, %v5638_v24 }
 0x240   :  { %v1317_v11 = vpop.f32.mrf.mxu1 }
 0x241   :  { %v1318_v15 = vadd.f32 %v1317_v11, %v5635_v14  ;;  %1986 = vmatprep.mubr.bf16.mxu0 %v1567_v52 }
 0x242   :  { %v1319_v29 = vpop.f32.mrf.mxu1  ;;  %1987 = vmatmul.mubr.bf16.gmra.mxu0 %v1566_v5 }
 0x243   :  { %v1320_v12 = vadd.f32 %v1319_v29, %v5638_v24  ;;  %v1504_v45 = vpack.c.bf16 %v1318_v15, %v1314_v9  ;;  %v4727_v9 = vld [vmem:[#allocation7 + $0xf0] ss:$8 sps:$4 sm:$0xff]   ;;  %v4729_v29 = vld [vmem:[#allocation7 + $0xf4] ss:$8 sps:$4 sm:$0xff]  }
 0x244   :  { %v1323_v42 = vpop.f32.mrf.mxu1  ;;  %3190 = vmatprep.subr.bf16.mxu0 %v4729_v29 }
 0x245   :  { %v1505_v4 = vpack.c.bf16 %v1320_v12, %v1316_v32  ;;  %v1568_v44 = vmax.bf16 %v4949_v1, %v1504_v45  ;;  %v1324_v0 = vadd.f32 %v1323_v42, %v5635_v14  ;;  %3191 = vmatpush2.bf16.msra.mxu0 %v4727_v9 }
 0x246   :  { %v1325_v18 = vpop.f32.mrf.mxu1 }
 0x247   :  { %v1569_v57 = vmax.bf16 %v4949_v1, %v1505_v4  ;;  %v1326_v41 = vadd.f32 %v1325_v18, %v5638_v24 }
 0x248   :  { %v1327_v30 = vpop.f32.mrf.mxu1 }
 0x249   :  { %v1328_v31 = vadd.f32 %v1327_v30, %v5635_v14  ;;  %1996 = vmatprep.mubr.bf16.mxu0 %v1569_v57 }
 0x24a   :  { %v1329_v43 = vpop.f32.mrf.mxu1  ;;  %1997 = vmatmul.mubr.bf16.gmra.mxu0 %v1568_v44 }
 0x24b   :  { %v1330_v26 = vadd.f32 %v1329_v43, %v5638_v24  ;;  %v1506_v61 = vpack.c.bf16 %v1328_v31, %v1324_v0 }
 0x24c   :  { %v1333_v47 = vpop.f32.mrf.mxu1 }
 0x24d   :  { %v1507_v27 = vpack.c.bf16 %v1330_v26, %v1326_v41  ;;  %v1570_v36 = vmax.bf16 %v4949_v1, %v1506_v61  ;;  %v1334_v53 = vadd.f32 %v1333_v47, %v5635_v14 }
 0x24e   :  { %v1335_v40 = vpop.f32.mrf.mxu1 }
 0x24f   :  { %v1571_v39 = vmax.bf16 %v4949_v1, %v1507_v27  ;;  %v1336_v51 = vadd.f32 %v1335_v40, %v5638_v24 }
 0x250   :  { %v1337_v8 = vpop.f32.mrf.mxu1 }
 0x251   :  { %v1338_v38 = vadd.f32 %v1337_v8, %v5635_v14  ;;  %2006 = vmatprep.mubr.bf16.mxu0 %v1571_v39 }
 0x252   :  { %v1339_v7 = vpop.f32.mrf.mxu1  ;;  %2007 = vmatmul.mubr.bf16.gmra.mxu0 %v1570_v36 }
 0x253   :  { %v1340_v59 = vadd.f32 %v1339_v7, %v5638_v24  ;;  %v1508_v58 = vpack.c.bf16 %v1338_v38, %v1334_v53  ;;  %v4730_v53 = vld [vmem:[#allocation7 + $0xe0] ss:$8 sps:$4 sm:$0xff]   ;;  %v4732_v7 = vld [vmem:[#allocation7 + $0xe4] ss:$8 sps:$4 sm:$0xff]  }
 0x254   :  { %v1343_v22 = vpop.f32.mrf.mxu1  ;;  %3192 = vmatprep.subr.bf16.mxu0 %v4732_v7 }
 0x255   :  { %v1509_v46 = vpack.c.bf16 %v1340_v59, %v1336_v51  ;;  %v1572_v3 = vmax.bf16 %v4949_v1, %v1508_v58  ;;  %v1344_v17 = vadd.f32 %v1343_v22, %v5635_v14  ;;  %3193 = vmatpush2.bf16.msra.mxu0 %v4730_v53 }
 0x256   :  { %v1345_v34 = vpop.f32.mrf.mxu1 }
 0x257   :  { %v1573_v50 = vmax.bf16 %v4949_v1, %v1509_v46  ;;  %v1346_v33 = vadd.f32 %v1345_v34, %v5638_v24 }
 0x258   :  { %v1347_v25 = vpop.f32.mrf.mxu1 }
 0x259   :  { %v1348_v48 = vadd.f32 %v1347_v25, %v5635_v14  ;;  %2016 = vmatprep.mubr.bf16.mxu0 %v1573_v50 }
 0x25a   :  { %v1349_v49 = vpop.f32.mrf.mxu1  ;;  %2017 = vmatmul.mubr.bf16.gmra.mxu0 %v1572_v3 }
 0x25b   :  { %v1350_v20 = vadd.f32 %v1349_v49, %v5638_v24  ;;  %v1510_v2 = vpack.c.bf16 %v1348_v48, %v1344_v17 }
 0x25c   :  { %v1353_v23 = vpop.f32.mrf.mxu1 }
 0x25d   :  { %v1511_v28 = vpack.c.bf16 %v1350_v20, %v1346_v33  ;;  %v1574_v63 = vmax.bf16 %v4949_v1, %v1510_v2  ;;  %v1354_v60 = vadd.f32 %v1353_v23, %v5635_v14 }
 0x25e   :  { %v1355_v37 = vpop.f32.mrf.mxu1 }
 0x25f   :  { %v1575_v6 = vmax.bf16 %v4949_v1, %v1511_v28  ;;  %v1356_v16 = vadd.f32 %v1355_v37, %v5638_v24 }
 0x260   :  { %v1357_v62 = vpop.f32.mrf.mxu1 }
 0x261   :  { %v1358_v55 = vadd.f32 %v1357_v62, %v5635_v14  ;;  %2026 = vmatprep.mubr.bf16.mxu0 %v1575_v6 }
 0x262   :  { %v1359_v54 = vpop.f32.mrf.mxu1  ;;  %2027 = vmatmul.mubr.bf16.gmra.mxu0 %v1574_v63 }
 0x263   :  { %v1360_v52 = vadd.f32 %v1359_v54, %v5638_v24  ;;  %v1512_v5 = vpack.c.bf16 %v1358_v55, %v1354_v60  ;;  %v4733_v60 = vld [vmem:[#allocation7 + $0xd0] ss:$8 sps:$4 sm:$0xff]   ;;  %v4735_v54 = vld [vmem:[#allocation7 + $0xd4] ss:$8 sps:$4 sm:$0xff]  }
 0x264   :  { %v1363_v11 = vpop.f32.mrf.mxu1  ;;  %3194 = vmatprep.subr.bf16.mxu0 %v4735_v54 }
 0x265   :  { %v1513_v15 = vpack.c.bf16 %v1360_v52, %v1356_v16  ;;  %v1576_v45 = vmax.bf16 %v4949_v1, %v1512_v5  ;;  %v1364_v35 = vadd.f32 %v1363_v11, %v5635_v14  ;;  %3195 = vmatpush2.bf16.msra.mxu0 %v4733_v60 }
 0x266   :  { %v1365_v32 = vpop.f32.mrf.mxu1 }
 0x267   :  { %v1577_v12 = vmax.bf16 %v4949_v1, %v1513_v15  ;;  %v1366_v18 = vadd.f32 %v1365_v32, %v5638_v24  ;;  %v1632_v32 = vld [vmem:[%s6959_s6] sm:$0x3] }
 0x268   :  { %v1367_v42 = vpop.f32.mrf.mxu1 }
 0x269   :  { %v1368_v4 = vadd.f32 %v1367_v42, %v5635_v14  ;;  %2036 = vmatprep.mubr.bf16.mxu0 %v1577_v12 }
 0x26a   :  { %v1369_v13 = vpop.f32.mrf.mxu1  ;;  %2037 = vmatmul.mubr.bf16.gmra.mxu0 %v1576_v45 }
 0x26b   :  { %v1370_v57 = vadd.f32 %v1369_v13, %v5638_v24  ;;  %v1514_v44 = vpack.c.bf16 %v1368_v4, %v1364_v35 }
 0x26c   :  { %v1373_v30 = vpop.f32.mrf.mxu1 }
 0x26d   :  { %v1515_v31 = vpack.c.bf16 %v1370_v57, %v1366_v18  ;;  %v1578_v41 = vmax.bf16 %v4949_v1, %v1514_v44  ;;  %v1374_v47 = vadd.f32 %v1373_v30, %v5635_v14  ;;  %v5855_v57 = vrot.slane %v1632_v32, %v5291_v19 }
 0x26e   :  { %v1375_v0 = vpop.f32.mrf.mxu1  ;;  %v5858_v44 = vrot.slane %v1632_v32, %v5296_v21 }
 0x26f   :  { %v1579_v43 = vmax.bf16 %v4949_v1, %v1515_v31  ;;  %v1376_v40 = vadd.f32 %v1375_v0, %v5638_v24 }
 0x270   :  { %v1377_v26 = vpop.f32.mrf.mxu1 }
 0x271   :  { %v1378_v61 = vadd.f32 %v1377_v26, %v5635_v14  ;;  %2046 = vmatprep.mubr.bf16.mxu0 %v1579_v43 }
 0x272   :  { %v1379_v27 = vpop.f32.mrf.mxu1  ;;  %2047 = vmatmul.mubr.bf16.gmra.mxu0 %v1578_v41 }
 0x273   :  { %v1380_v39 = vadd.f32 %v1379_v27, %v5638_v24  ;;  %v1516_v36 = vpack.c.bf16 %v1378_v61, %v1374_v47 }
 0x274   :  { %v1383_v8 = vpop.f32.mrf.mxu1 }
 0x275   :  { %v1517_v38 = vpack.c.bf16 %v1380_v39, %v1376_v40  ;;  %v1580_v58 = vmax.bf16 %v4949_v1, %v1516_v36  ;;  %v1384_v56 = vadd.f32 %v1383_v8, %v5635_v14 }
 0x276   :  { %v1385_v51 = vpop.f32.mrf.mxu1 }
 0x277   :  { %v1581_v59 = vmax.bf16 %v4949_v1, %v1517_v38  ;;  %v1386_v34 = vadd.f32 %v1385_v51, %v5638_v24 }
 0x278   :  { %v1387_v22 = vpop.f32.mrf.mxu1 }
 0x279   :  { %v1388_v46 = vadd.f32 %v1387_v22, %v5635_v14  ;;  %2056 = vmatprep.mubr.bf16.mxu0 %v1581_v59 }
 0x27a   :  { %v1389_v10 = vpop.f32.mrf.mxu1  ;;  %2057 = vmatmul.mubr.bf16.gmra.mxu0 %v1580_v58 }
 0x27b   :  { %v1390_v50 = vadd.f32 %v1389_v10, %v5638_v24  ;;  %v1518_v3 = vpack.c.bf16 %v1388_v46, %v1384_v56  ;;  %v4736_v10 = vld [vmem:[#allocation7 + $0xc0] ss:$8 sps:$4 sm:$0xff]  }
 0x27c   :  { %v1393_v25 = vpop.f32.mrf.mxu1 }
 0x27d   :  { %v1519_v48 = vpack.c.bf16 %v1390_v50, %v1386_v34  ;;  %v1582_v33 = vmax.bf16 %v4949_v1, %v1518_v3  ;;  %v1394_v23 = vadd.f32 %v1393_v25, %v5635_v14  ;;  %v4738_v34 = vld [vmem:[#allocation7 + $0xc4] ss:$8 sps:$4 sm:$0xff]  }
 0x27e   :  { %v1395_v17 = vpop.f32.mrf.mxu1  ;;  %3196 = vmatprep.subr.bf16.mxu0 %v4738_v34 }
 0x27f   :  { %v1583_v49 = vmax.bf16 %v4949_v1, %v1519_v48  ;;  %v1396_v37 = vadd.f32 %v1395_v17, %v5638_v24  ;;  %3197 = vmatpush2.bf16.msra.mxu0 %v4736_v10 }
 0x280   :  { %v1397_v20 = vpop.f32.mrf.mxu1 }
 0x281   :  { %v1398_v2 = vadd.f32 %v1397_v20, %v5635_v14  ;;  %2066 = vmatprep.mubr.bf16.mxu0 %v1583_v49 }
 0x282   :  { %v1399_v28 = vpop.f32.mrf.mxu1  ;;  %2067 = vmatmul.mubr.bf16.gmra.mxu0 %v1582_v33 }
 0x283   :  { %v1400_v6 = vadd.f32 %v1399_v28, %v5638_v24  ;;  %v1520_v63 = vpack.c.bf16 %v1398_v2, %v1394_v23 }
 0x284   :  { %v1403_v62 = vpop.f32.mrf.mxu1 }
 0x285   :  { %v1521_v55 = vpack.c.bf16 %v1400_v6, %v1396_v37  ;;  %v1584_v5 = vmax.bf16 %v4949_v1, %v1520_v63  ;;  %v1404_v9 = vadd.f32 %v1403_v62, %v5635_v14 }
 0x286   :  { %v1405_v16 = vpop.f32.mrf.mxu1 }
 0x287   :  { %v1585_v52 = vmax.bf16 %v4949_v1, %v1521_v55  ;;  %v1406_v45 = vadd.f32 %v1405_v16, %v5638_v24 }
 0x288   :  { %v1407_v11 = vpop.f32.mrf.mxu1 }
 0x289   :  { %v1408_v15 = vadd.f32 %v1407_v11, %v5635_v14  ;;  %2076 = vmatprep.mubr.bf16.mxu0 %v1585_v52 }
 0x28a   :  { %v1409_v29 = vpop.f32.mrf.mxu1  ;;  %v1838_v12 = vpop.f32.mrf.mxu0  ;;  %2077 = vmatmul.mubr.bf16.gmra.mxu0 %v1584_v5 }
 0x28b   :  { %v1410_v42 = vadd.f32 %v1409_v29, %v5638_v24  ;;  %v1522_v4 = vpack.c.bf16 %v1408_v15, %v1404_v9  ;;  %v1839_v47 = vadd.f32 %v1838_v12, %v5855_v57 }
 0x28c   :  { %v1413_v35 = vpop.f32.mrf.mxu1  ;;  %v1840_v13 = vpop.f32.mrf.mxu0 }
 0x28d   :  { %v1523_v18 = vpack.c.bf16 %v1410_v42, %v1406_v45  ;;  %v1586_v41 = vmax.bf16 %v4949_v1, %v1522_v4  ;;  %v1841_v27 = vadd.f32 %v1840_v13, %v5858_v44  ;;  %v1414_v36 = vadd.f32 %v1413_v35, %v5635_v14 }
 0x28e   :  { %v1415_v30 = vpop.f32.mrf.mxu1  ;;  %v1842_v31 = vpop.f32.mrf.mxu0 }
 0x28f   :  { %v1843_v0 = vadd.f32 %v1842_v31, %v5855_v57  ;;  %v1587_v43 = vmax.bf16 %v4949_v1, %v1523_v18  ;;  %v1416_v53 = vadd.f32 %v1415_v30, %v5638_v24 }
 0x290   :  { %v1417_v26 = vpop.f32.mrf.mxu1  ;;  %v1844_v61 = vpop.f32.mrf.mxu0 }
 0x291   :  { %v1418_v40 = vadd.f32 %v1417_v26, %v5635_v14  ;;  %v1845_v39 = vadd.f32 %v1844_v61, %v5858_v44  ;;  %2086 = vmatprep.mubr.bf16.mxu0 %v1587_v43  ;;  %v2157_v7 = vpack.c.bf16 %v1843_v0, %v1839_v47 }
 0x292   :  { %v1419_v8 = vpop.f32.mrf.mxu1  ;;  %v1848_v38 = vpop.f32.mrf.mxu0  ;;  %2087 = vmatmul.mubr.bf16.gmra.mxu0 %v1586_v41 }
 0x293   :  { %v2158_v51 = vpack.c.bf16 %v1845_v39, %v1841_v27  ;;  %v1420_v59 = vadd.f32 %v1419_v8, %v5638_v24  ;;  %v1524_v58 = vpack.c.bf16 %v1418_v40, %v1414_v36  ;;  %v2221_v48 = vmax.bf16 %v4949_v1, %v2157_v7  ;;  %v4739_v7 = vld [vmem:[#allocation7 + $0xb0] ss:$8 sps:$4 sm:$0xff]  }
 0x294   :  { %v1423_v22 = vpop.f32.mrf.mxu1  ;;  %v1850_v46 = vpop.f32.mrf.mxu0  ;;  %v1849_v20 = vadd.f32 %v1848_v38, %v5855_v57 }
 0x295   :  { %v1525_v56 = vpack.c.bf16 %v1420_v59, %v1416_v53  ;;  %v2222_v25 = vmax.bf16 %v4949_v1, %v2158_v51  ;;  %v1588_v33 = vmax.bf16 %v4949_v1, %v1524_v58  ;;  %v1851_v28 = vadd.f32 %v1850_v46, %v5858_v44  ;;  %v4741_v51 = vld [vmem:[#allocation7 + $0xb4] ss:$8 sps:$4 sm:$0xff]  }
 0x296   :  { %v1425_v50 = vpop.f32.mrf.mxu1  ;;  %v1852_v3 = vpop.f32.mrf.mxu0  ;;  %v1424_v63 = vadd.f32 %v1423_v22, %v5635_v14  ;;  %3198 = vmatprep.subr.bf16.mxu0 %v4741_v51 }
 0x297   :  { %v1853_v17 = vadd.f32 %v1852_v3, %v5855_v57  ;;  %v1589_v49 = vmax.bf16 %v4949_v1, %v1525_v56  ;;  %2521 = vmatprep.mubr.bf16.mxu1 %v2222_v25  ;;  %v1426_v60 = vadd.f32 %v1425_v50, %v5638_v24  ;;  %3199 = vmatpush2.bf16.msra.mxu0 %v4739_v7 }
 0x298   :  { %v1427_v2 = vpop.f32.mrf.mxu1  ;;  %v1854_v23 = vpop.f32.mrf.mxu0  ;;  %2522 = vmatmul.mubr.bf16.vlgmr.msra.gmra.mxu1 %v2221_v48 }
 0x299   :  { %v1428_v37 = vadd.f32 %v1427_v2, %v5635_v14  ;;  %v1855_v6 = vadd.f32 %v1854_v23, %v5858_v44  ;;  %2096 = vmatprep.mubr.bf16.mxu0 %v1589_v49  ;;  %v2159_v54 = vpack.c.bf16 %v1853_v17, %v1849_v20 }
 0x29a   :  { %v1429_v62 = vpop.f32.mrf.mxu1  ;;  %v1858_v55 = vpop.f32.mrf.mxu0  ;;  %2097 = vmatmul.mubr.bf16.gmra.mxu0 %v1588_v33 }
 0x29b   :  { %v2160_v16 = vpack.c.bf16 %v1855_v6, %v1851_v28  ;;  %v1430_v52 = vadd.f32 %v1429_v62, %v5638_v24  ;;  %v1526_v5 = vpack.c.bf16 %v1428_v37, %v1424_v63  ;;  %v2223_v45 = vmax.bf16 %v4949_v1, %v2159_v54 }
 0x29c   :  { %v1433_v11 = vpop.f32.mrf.mxu1  ;;  %v1860_v15 = vpop.f32.mrf.mxu0  ;;  %v1859_v13 = vadd.f32 %v1858_v55, %v5855_v57 }
 0x29d   :  { %v1527_v9 = vpack.c.bf16 %v1430_v52, %v1426_v60  ;;  %v2224_v12 = vmax.bf16 %v4949_v1, %v2160_v16  ;;  %v1590_v35 = vmax.bf16 %v4949_v1, %v1526_v5  ;;  %v1861_v31 = vadd.f32 %v1860_v15, %v5858_v44 }
 0x29e   :  { %v1435_v29 = vpop.f32.mrf.mxu1  ;;  %v1862_v32 = vpop.f32.mrf.mxu0  ;;  %v1434_v41 = vadd.f32 %v1433_v11, %v5635_v14 }
 0x29f   :  { %v1863_v42 = vadd.f32 %v1862_v32, %v5855_v57  ;;  %v1591_v4 = vmax.bf16 %v4949_v1, %v1527_v9  ;;  %2531 = vmatprep.mubr.bf16.mxu1 %v2224_v12  ;;  %v1436_v47 = vadd.f32 %v1435_v29, %v5638_v24 }
 0x2a0   :  { %v1437_v18 = vpop.f32.mrf.mxu1  ;;  %v1864_v30 = vpop.f32.mrf.mxu0  ;;  %2532 = vmatmul.mubr.bf16.gmra.mxu1 %v2223_v45 }
 0x2a1   :  { %v1438_v0 = vadd.f32 %v1437_v18, %v5635_v14  ;;  %v1865_v43 = vadd.f32 %v1864_v30, %v5858_v44  ;;  %2106 = vmatprep.mubr.bf16.mxu0 %v1591_v4  ;;  %v2161_v27 = vpack.c.bf16 %v1863_v42, %v1859_v13 }
 0x2a2   :  { %v1439_v26 = vpop.f32.mrf.mxu1  ;;  %v1868_v61 = vpop.f32.mrf.mxu0  ;;  %2107 = vmatmul.mubr.bf16.gmra.mxu0 %v1590_v35 }
 0x2a3   :  { %v2162_v40 = vpack.c.bf16 %v1865_v43, %v1861_v31  ;;  %v1440_v39 = vadd.f32 %v1439_v26, %v5638_v24  ;;  %v1528_v36 = vpack.c.bf16 %v1438_v0, %v1434_v41  ;;  %v2225_v46 = vmax.bf16 %v4949_v1, %v2161_v27  ;;  %v4742_v27 = vld [vmem:[#allocation7 + $0xa0] ss:$8 sps:$4 sm:$0xff]  }
 0x2a4   :  { %v1443_v8 = vpop.f32.mrf.mxu1  ;;  %v1870_v38 = vpop.f32.mrf.mxu0  ;;  %v1869_v50 = vadd.f32 %v1868_v61, %v5855_v57 }
 0x2a5   :  { %v1529_v53 = vpack.c.bf16 %v1440_v39, %v1436_v47  ;;  %v2226_v22 = vmax.bf16 %v4949_v1, %v2162_v40  ;;  %v1592_v34 = vmax.bf16 %v4949_v1, %v1528_v36  ;;  %v1871_v48 = vadd.f32 %v1870_v38, %v5858_v44  ;;  %v4744_v40 = vld [vmem:[#allocation7 + $0xa4] ss:$8 sps:$4 sm:$0xff]  }
 0x2a6   :  { %v1445_v59 = vpop.f32.mrf.mxu1  ;;  %v1872_v58 = vpop.f32.mrf.mxu0  ;;  %v1444_v33 = vadd.f32 %v1443_v8, %v5635_v14  ;;  %3200 = vmatprep.subr.bf16.mxu0 %v4744_v40 }
 0x2a7   :  { %v1873_v56 = vadd.f32 %v1872_v58, %v5855_v57  ;;  %v1593_v10 = vmax.bf16 %v4949_v1, %v1529_v53  ;;  %2541 = vmatprep.mubr.bf16.mxu1 %v2226_v22  ;;  %v1446_v23 = vadd.f32 %v1445_v59, %v5638_v24  ;;  %3201 = vmatpush2.bf16.msra.mxu0 %v4742_v27 }
 0x2a8   :  { %v1447_v3 = vpop.f32.mrf.mxu1  ;;  %v1874_v25 = vpop.f32.mrf.mxu0  ;;  %2542 = vmatmul.mubr.bf16.gmra.mxu1 %v2225_v46 }
 0x2a9   :  { %v1448_v17 = vadd.f32 %v1447_v3, %v5635_v14  ;;  %v1875_v49 = vadd.f32 %v1874_v25, %v5858_v44  ;;  %2116 = vmatprep.mubr.bf16.mxu0 %v1593_v10  ;;  %v2163_v28 = vpack.c.bf16 %v1873_v56, %v1869_v50 }
 0x2aa   :  { %v1449_v20 = vpop.f32.mrf.mxu1  ;;  %v1878_v2 = vpop.f32.mrf.mxu0  ;;  %2117 = vmatmul.mubr.bf16.gmra.mxu0 %v1592_v34 }
 0x2ab   :  { %v2164_v37 = vpack.c.bf16 %v1875_v49, %v1871_v48  ;;  %v1450_v6 = vadd.f32 %v1449_v20, %v5638_v24  ;;  %v1530_v63 = vpack.c.bf16 %v1448_v17, %v1444_v33  ;;  %v2227_v5 = vmax.bf16 %v4949_v1, %v2163_v28 }
 0x2ac   :  { %v1453_v62 = vpop.f32.mrf.mxu1  ;;  %v1880_v55 = vpop.f32.mrf.mxu0  ;;  %v1879_v29 = vadd.f32 %v1878_v2, %v5855_v57 }
 0x2ad   :  { %v1531_v60 = vpack.c.bf16 %v1450_v6, %v1446_v23  ;;  %v2228_v52 = vmax.bf16 %v4949_v1, %v2164_v37  ;;  %v1594_v9 = vmax.bf16 %v4949_v1, %v1530_v63  ;;  %v1881_v45 = vadd.f32 %v1880_v55, %v5858_v44 }
 0x2ae   :  { %v1455_v54 = vpop.f32.mrf.mxu1  ;;  %v1882_v16 = vpop.f32.mrf.mxu0  ;;  %v1454_v35 = vadd.f32 %v1453_v62, %v5635_v14 }
 0x2af   :  { %v1883_v11 = vadd.f32 %v1882_v16, %v5855_v57  ;;  %v1595_v15 = vmax.bf16 %v4949_v1, %v1531_v60  ;;  %2551 = vmatprep.mubr.bf16.mxu1 %v2228_v52  ;;  %v1456_v30 = vadd.f32 %v1455_v54, %v5638_v24 }
 0x2b0   :  { %v1457_v32 = vpop.f32.mrf.mxu1  ;;  %v1884_v12 = vpop.f32.mrf.mxu0  ;;  %2552 = vmatmul.mubr.bf16.gmra.mxu1 %v2227_v5 }
 0x2b1   :  { %v1458_v42 = vadd.f32 %v1457_v32, %v5635_v14  ;;  %v1885_v4 = vadd.f32 %v1884_v12, %v5858_v44  ;;  %2126 = vmatprep.mubr.bf16.mxu0 %v1595_v15  ;;  %v2165_v31 = vpack.c.bf16 %v1883_v11, %v1879_v29  ;;  %v4745_v15 = vld [vmem:[#allocation7 + $0x90] ss:$8 sps:$4 sm:$0xff]  }
 0x2b2   :  { %v1459_v13 = vpop.f32.mrf.mxu1  ;;  %v1888_v18 = vpop.f32.mrf.mxu0  ;;  %2127 = vmatmul.mubr.bf16.gmra.mxu0 %v1594_v9  ;;  %v4747_v9 = vld [vmem:[#allocation7 + $0x94] ss:$8 sps:$4 sm:$0xff]  }
 0x2b3   :  { %v2166_v0 = vpack.c.bf16 %v1885_v4, %v1881_v45  ;;  %v1460_v43 = vadd.f32 %v1459_v13, %v5638_v24  ;;  %v1532_v41 = vpack.c.bf16 %v1458_v42, %v1454_v35  ;;  %v2229_v38 = vmax.bf16 %v4949_v1, %v2165_v31  ;;  %3202 = vmatprep.subr.bf16.mxu0 %v4747_v9 }
 0x2b4   :  { %v1463_v26 = vpop.f32.mrf.mxu1  ;;  %v1890_v61 = vpop.f32.mrf.mxu0  ;;  %v1889_v59 = vadd.f32 %v1888_v18, %v5855_v57  ;;  %3203 = vmatpush2.bf16.msra.mxu0 %v4745_v15 }
 0x2b5   :  { %v1533_v47 = vpack.c.bf16 %v1460_v43, %v1456_v30  ;;  %v2230_v8 = vmax.bf16 %v4949_v1, %v2166_v0  ;;  %v1596_v51 = vmax.bf16 %v4949_v1, %v1532_v41  ;;  %v1891_v46 = vadd.f32 %v1890_v61, %v5858_v44 }
 0x2b6   :  { %v1465_v39 = vpop.f32.mrf.mxu1  ;;  %v1892_v36 = vpop.f32.mrf.mxu0  ;;  %v1464_v34 = vadd.f32 %v1463_v26, %v5635_v14 }
 0x2b7   :  { %v1893_v53 = vadd.f32 %v1892_v36, %v5855_v57  ;;  %v1597_v7 = vmax.bf16 %v4949_v1, %v1533_v47  ;;  %2561 = vmatprep.mubr.bf16.mxu1 %v2230_v8  ;;  %v1466_v25 = vadd.f32 %v1465_v39, %v5638_v24 }
 0x2b8   :  { %v1467_v58 = vpop.f32.mrf.mxu1  ;;  %v1894_v22 = vpop.f32.mrf.mxu0  ;;  %2562 = vmatmul.mubr.bf16.gmra.mxu1 %v2229_v38 }
 0x2b9   :  { %v1468_v56 = vadd.f32 %v1467_v58, %v5635_v14  ;;  %v1895_v10 = vadd.f32 %v1894_v22, %v5858_v44  ;;  %2136 = vmatprep.mubr.bf16.mxu0 %v1597_v7  ;;  %v2167_v48 = vpack.c.bf16 %v1893_v53, %v1889_v59  ;;  %v4748_v7 = vld [vmem:[#allocation7 + $0x80] ss:$8 sps:$4 sm:$0xff]  }
 0x2ba   :  { %v1469_v50 = vpop.f32.mrf.mxu1  ;;  %v1898_v3 = vpop.f32.mrf.mxu0  ;;  %2137 = vmatmul.mubr.bf16.gmra.mxu0 %v1596_v51  ;;  %v4750_v51 = vld [vmem:[#allocation7 + $0x84] ss:$8 sps:$4 sm:$0xff]  }
 0x2bb   :  { %v2168_v17 = vpack.c.bf16 %v1895_v10, %v1891_v46  ;;  %v1470_v49 = vadd.f32 %v1469_v50, %v5638_v24  ;;  %v1534_v33 = vpack.c.bf16 %v1468_v56, %v1464_v34  ;;  %v2231_v37 = vmax.bf16 %v4949_v1, %v2167_v48  ;;  %3204 = vmatprep.subr.bf16.mxu0 %v4750_v51 }
 0x2bc   :  { %v1900_v20 = vpop.f32.mrf.mxu0  ;;  %v1899_v55 = vadd.f32 %v1898_v3, %v5855_v57  ;;  %3205 = vmatpush2.bf16.msra.mxu0 %v4748_v7 }
 0x2bd   :  { %v1535_v2 = vpack.c.bf16 %v1470_v49, %v1466_v25  ;;  %v2232_v23 = vmax.bf16 %v4949_v1, %v2168_v17  ;;  %v1598_v63 = vmax.bf16 %v4949_v1, %v1534_v33  ;;  %v1901_v24 = vadd.f32 %v1900_v20, %v5858_v44 }
 0x2be   :  { %v1902_v28 = vpop.f32.mrf.mxu0 }
 0x2bf   :  { %v1903_v6 = vadd.f32 %v1902_v28, %v5855_v57  ;;  %2571 = vmatprep.mubr.bf16.mxu1 %v2232_v23  ;;  %v1599_v14 = vmax.bf16 %v4949_v1, %v1535_v2 }
 0x2c0   :  { %v1904_v62 = vpop.f32.mrf.mxu0  ;;  %2572 = vmatmul.mubr.bf16.gmra.mxu1 %v2231_v37 }
 0x2c1   :  { %v1905_v60 = vadd.f32 %v1904_v62, %v5858_v44  ;;  %2146 = vmatprep.mubr.bf16.mxu0 %v1599_v14  ;;  %v2169_v16 = vpack.c.bf16 %v1903_v6, %v1899_v55 }
 0x2c2   :  { %v1908_v54 = vpop.f32.mrf.mxu0  ;;  %2147 = vmatmul.mubr.bf16.gmra.mxu0 %v1598_v63 }
 0x2c3   :  { %v2170_v52 = vpack.c.bf16 %v1905_v60, %v1901_v24  ;;  %v2233_v32 = vmax.bf16 %v4949_v1, %v2169_v16  ;;  %v1909_v42 = vadd.f32 %v1908_v54, %v5855_v57 }
 0x2c4   :  { %v1910_v5 = vpop.f32.mrf.mxu0 }
 0x2c5   :  { %v2234_v11 = vmax.bf16 %v4949_v1, %v2170_v52  ;;  %v1911_v4 = vadd.f32 %v1910_v5, %v5858_v44 }
 0x2c6   :  { %v1912_v29 = vpop.f32.mrf.mxu0 }
 0x2c7   :  { %v1913_v12 = vadd.f32 %v1912_v29, %v5855_v57  ;;  %2581 = vmatprep.mubr.bf16.mxu1 %v2234_v11 }
 0x2c8   :  { %v1914_v45 = vpop.f32.mrf.mxu0  ;;  %2582 = vmatmul.mubr.bf16.gmra.mxu1 %v2233_v32 }
 0x2c9   :  { %v1915_v35 = vadd.f32 %v1914_v45, %v5858_v44  ;;  %v2171_v18 = vpack.c.bf16 %v1913_v12, %v1909_v42 }
 0x2ca   :  { %v1918_v13 = vpop.f32.mrf.mxu0 }
 0x2cb   :  { %v2172_v30 = vpack.c.bf16 %v1915_v35, %v1911_v4  ;;  %v2235_v41 = vmax.bf16 %v4949_v1, %v2171_v18  ;;  %v1919_v47 = vadd.f32 %v1918_v13, %v5855_v57 }
 0x2cc   :  { %v1920_v31 = vpop.f32.mrf.mxu0 }
 0x2cd   :  { %v2236_v0 = vmax.bf16 %v4949_v1, %v2172_v30  ;;  %v1921_v27 = vadd.f32 %v1920_v31, %v5858_v44 }
 0x2ce   :  { %v1922_v43 = vpop.f32.mrf.mxu0 }
 0x2cf   :  { %v1923_v26 = vadd.f32 %v1922_v43, %v5855_v57  ;;  %2591 = vmatprep.mubr.bf16.mxu1 %v2236_v0 }
 0x2d0   :  { %v1924_v61 = vpop.f32.mrf.mxu0  ;;  %2592 = vmatmul.mubr.bf16.gmra.mxu1 %v2235_v41 }
 0x2d1   :  { %v1925_v40 = vadd.f32 %v1924_v61, %v5858_v44  ;;  %v2173_v36 = vpack.c.bf16 %v1923_v26, %v1919_v47 }
 0x2d2   :  { %v1928_v39 = vpop.f32.mrf.mxu0 }
 0x2d3   :  { %v2174_v8 = vpack.c.bf16 %v1925_v40, %v1921_v27  ;;  %v2237_v58 = vmax.bf16 %v4949_v1, %v2173_v36  ;;  %v1929_v56 = vadd.f32 %v1928_v39, %v5855_v57 }
 0x2d4   :  { %v1930_v38 = vpop.f32.mrf.mxu0 }
 0x2d5   :  { %v2238_v53 = vmax.bf16 %v4949_v1, %v2174_v8  ;;  %v1931_v10 = vadd.f32 %v1930_v38, %v5858_v44 }
 0x2d6   :  { %v1932_v59 = vpop.f32.mrf.mxu0 }
 0x2d7   :  { %v1933_v22 = vadd.f32 %v1932_v59, %v5855_v57  ;;  %2601 = vmatprep.mubr.bf16.mxu1 %v2238_v53 }
 0x2d8   :  { %v1934_v46 = vpop.f32.mrf.mxu0  ;;  %2602 = vmatmul.mubr.bf16.gmra.mxu1 %v2237_v58 }
 0x2d9   :  { %v1935_v34 = vadd.f32 %v1934_v46, %v5858_v44  ;;  %v2175_v3 = vpack.c.bf16 %v1933_v22, %v1929_v56 }
 0x2da   :  { %v1938_v50 = vpop.f32.mrf.mxu0 }
 0x2db   :  { %v2176_v25 = vpack.c.bf16 %v1935_v34, %v1931_v10  ;;  %v2239_v33 = vmax.bf16 %v4949_v1, %v2175_v3  ;;  %v1939_v23 = vadd.f32 %v1938_v50, %v5855_v57 }
 0x2dc   :  { %v1940_v48 = vpop.f32.mrf.mxu0 }
 0x2dd   :  { %v2240_v17 = vmax.bf16 %v4949_v1, %v2176_v25  ;;  %v1941_v28 = vadd.f32 %v1940_v48, %v5858_v44 }
 0x2de   :  { %v1942_v49 = vpop.f32.mrf.mxu0 }
 0x2df   :  { %v1943_v20 = vadd.f32 %v1942_v49, %v5855_v57  ;;  %2611 = vmatprep.mubr.bf16.mxu1 %v2240_v17 }
 0x2e0   :  { %v1944_v2 = vpop.f32.mrf.mxu0  ;;  %2612 = vmatmul.mubr.bf16.gmra.mxu1 %v2239_v33 }
 0x2e1   :  { %v1945_v37 = vadd.f32 %v1944_v2, %v5858_v44  ;;  %v2177_v14 = vpack.c.bf16 %v1943_v20, %v1939_v23 }
 0x2e2   :  { %v1948_v6 = vpop.f32.mrf.mxu0 }
 0x2e3   :  { %v2178_v63 = vpack.c.bf16 %v1945_v37, %v1941_v28  ;;  %v2241_v60 = vmax.bf16 %v4949_v1, %v2177_v14  ;;  %v1949_v52 = vadd.f32 %v1948_v6, %v5855_v57 }
 0x2e4   :  { %v1950_v62 = vpop.f32.mrf.mxu0 }
 0x2e5   :  { %v2242_v55 = vmax.bf16 %v4949_v1, %v2178_v63  ;;  %v1951_v5 = vadd.f32 %v1950_v62, %v5858_v44 }
 0x2e6   :  { %v1952_v24 = vpop.f32.mrf.mxu0 }
 0x2e7   :  { %v1953_v54 = vadd.f32 %v1952_v24, %v5855_v57  ;;  %2621 = vmatprep.mubr.bf16.mxu1 %v2242_v55 }
 0x2e8   :  { %v1954_v16 = vpop.f32.mrf.mxu0  ;;  %2622 = vmatmul.mubr.bf16.gmra.mxu1 %v2241_v60 }
 0x2e9   :  { %v1955_v11 = vadd.f32 %v1954_v16, %v5858_v44  ;;  %v2179_v9 = vpack.c.bf16 %v1953_v54, %v1949_v52 }
 0x2ea   :  { %v1958_v15 = vpop.f32.mrf.mxu0 }
 0x2eb   :  { %v2180_v29 = vpack.c.bf16 %v1955_v11, %v1951_v5  ;;  %v2243_v42 = vmax.bf16 %v4949_v1, %v2179_v9  ;;  %v1959_v13 = vadd.f32 %v1958_v15, %v5855_v57 }
 0x2ec   :  { %v1960_v32 = vpop.f32.mrf.mxu0 }
 0x2ed   :  { %v2244_v12 = vmax.bf16 %v4949_v1, %v2180_v29  ;;  %v1961_v18 = vadd.f32 %v1960_v32, %v5858_v44 }
 0x2ee   :  { %v1962_v45 = vpop.f32.mrf.mxu0 }
 0x2ef   :  { %v1963_v4 = vadd.f32 %v1962_v45, %v5855_v57  ;;  %2631 = vmatprep.mubr.bf16.mxu1 %v2244_v12 }
 0x2f0   :  { %v1964_v35 = vpop.f32.mrf.mxu0  ;;  %2632 = vmatmul.mubr.bf16.gmra.mxu1 %v2243_v42 }
 0x2f1   :  { %v1965_v30 = vadd.f32 %v1964_v35, %v5858_v44  ;;  %v2181_v0 = vpack.c.bf16 %v1963_v4, %v1959_v13 }
 0x2f2   :  { %v1968_v31 = vpop.f32.mrf.mxu0 }
 0x2f3   :  { %v2182_v43 = vpack.c.bf16 %v1965_v30, %v1961_v18  ;;  %v2245_v47 = vmax.bf16 %v4949_v1, %v2181_v0  ;;  %v1969_v39 = vadd.f32 %v1968_v31, %v5855_v57 }
 0x2f4   :  { %v1970_v41 = vpop.f32.mrf.mxu0 }
 0x2f5   :  { %v2246_v26 = vmax.bf16 %v4949_v1, %v2182_v43  ;;  %v1971_v36 = vadd.f32 %v1970_v41, %v5858_v44 }
 0x2f6   :  { %v1972_v61 = vpop.f32.mrf.mxu0 }
 0x2f7   :  { %v1973_v27 = vadd.f32 %v1972_v61, %v5855_v57  ;;  %2641 = vmatprep.mubr.bf16.mxu1 %v2246_v26 }
 0x2f8   :  { %v1974_v40 = vpop.f32.mrf.mxu0  ;;  %2642 = vmatmul.mubr.bf16.gmra.mxu1 %v2245_v47 }
 0x2f9   :  { %v1975_v8 = vadd.f32 %v1974_v40, %v5858_v44  ;;  %v2183_v53 = vpack.c.bf16 %v1973_v27, %v1969_v39 }
 0x2fa   :  { %v1978_v38 = vpop.f32.mrf.mxu0 }
 0x2fb   :  { %v2184_v7 = vpack.c.bf16 %v1975_v8, %v1971_v36  ;;  %v2247_v22 = vmax.bf16 %v4949_v1, %v2183_v53  ;;  %v1979_v10 = vadd.f32 %v1978_v38, %v5855_v57 }
 0x2fc   :  { %v1980_v51 = vpop.f32.mrf.mxu0 }
 0x2fd   :  { %v2248_v59 = vmax.bf16 %v4949_v1, %v2184_v7  ;;  %v1981_v34 = vadd.f32 %v1980_v51, %v5858_v44 }
 0x2fe   :  { %v1982_v58 = vpop.f32.mrf.mxu0 }
 0x2ff   :  { %v1983_v46 = vadd.f32 %v1982_v58, %v5855_v57  ;;  %2651 = vmatprep.mubr.bf16.mxu1 %v2248_v59 }
 0x300   :  { %v1984_v56 = vpop.f32.mrf.mxu0  ;;  %2652 = vmatmul.mubr.bf16.gmra.mxu1 %v2247_v22 }
 0x301   :  { %v1985_v50 = vadd.f32 %v1984_v56, %v5858_v44  ;;  %v2185_v25 = vpack.c.bf16 %v1983_v46, %v1979_v10 }
 0x302   :  { %v1988_v3 = vpop.f32.mrf.mxu0 }
 0x303   :  { %v2186_v48 = vpack.c.bf16 %v1985_v50, %v1981_v34  ;;  %v2249_v20 = vmax.bf16 %v4949_v1, %v2185_v25  ;;  %v1989_v28 = vadd.f32 %v1988_v3, %v5855_v57 }
 0x304   :  { %v1990_v17 = vpop.f32.mrf.mxu0 }
 0x305   :  { %v2250_v49 = vmax.bf16 %v4949_v1, %v2186_v48  ;;  %v1991_v37 = vadd.f32 %v1990_v17, %v5858_v44 }
 0x306   :  { %v1992_v33 = vpop.f32.mrf.mxu0 }
 0x307   :  { %v1993_v2 = vadd.f32 %v1992_v33, %v5855_v57  ;;  %2661 = vmatprep.mubr.bf16.mxu1 %v2250_v49 }
 0x308   :  { %v1994_v23 = vpop.f32.mrf.mxu0  ;;  %2662 = vmatmul.mubr.bf16.gmra.mxu1 %v2249_v20 }
 0x309   :  { %v1995_v6 = vadd.f32 %v1994_v23, %v5858_v44  ;;  %v2187_v63 = vpack.c.bf16 %v1993_v2, %v1989_v28 }
 0x30a   :  { %v1998_v14 = vpop.f32.mrf.mxu0 }
 0x30b   :  { %v2188_v62 = vpack.c.bf16 %v1995_v6, %v1991_v37  ;;  %v2251_v54 = vmax.bf16 %v4949_v1, %v2187_v63  ;;  %v1999_v5 = vadd.f32 %v1998_v14, %v5855_v57 }
 0x30c   :  { %v2000_v55 = vpop.f32.mrf.mxu0 }
 0x30d   :  { %v2252_v24 = vmax.bf16 %v4949_v1, %v2188_v62  ;;  %v2001_v11 = vadd.f32 %v2000_v55, %v5858_v44 }
 0x30e   :  { %v2002_v60 = vpop.f32.mrf.mxu0 }
 0x30f   :  { %v2003_v16 = vadd.f32 %v2002_v60, %v5855_v57  ;;  %2671 = vmatprep.mubr.bf16.mxu1 %v2252_v24 }
 0x310   :  { %v2004_v52 = vpop.f32.mrf.mxu0  ;;  %2672 = vmatmul.mubr.bf16.gmra.mxu1 %v2251_v54 }
 0x311   :  { %v2005_v15 = vadd.f32 %v2004_v52, %v5858_v44  ;;  %v2189_v29 = vpack.c.bf16 %v2003_v16, %v1999_v5 }
 0x312   :  { %v2008_v9 = vpop.f32.mrf.mxu0 }
 0x313   :  { %v2190_v32 = vpack.c.bf16 %v2005_v15, %v2001_v11  ;;  %v2253_v4 = vmax.bf16 %v4949_v1, %v2189_v29  ;;  %v2009_v18 = vadd.f32 %v2008_v9, %v5855_v57 }
 0x314   :  { %v2010_v12 = vpop.f32.mrf.mxu0 }
 0x315   :  { %v2254_v45 = vmax.bf16 %v4949_v1, %v2190_v32  ;;  %v2011_v30 = vadd.f32 %v2010_v12, %v5858_v44 }
 0x316   :  { %v2012_v42 = vpop.f32.mrf.mxu0 }
 0x317   :  { %v2013_v35 = vadd.f32 %v2012_v42, %v5855_v57  ;;  %2681 = vmatprep.mubr.bf16.mxu1 %v2254_v45 }
 0x318   :  { %v2014_v13 = vpop.f32.mrf.mxu0  ;;  %2682 = vmatmul.mubr.bf16.gmra.mxu1 %v2253_v4 }
 0x319   :  { %v2015_v31 = vadd.f32 %v2014_v13, %v5858_v44  ;;  %v2191_v43 = vpack.c.bf16 %v2013_v35, %v2009_v18 }
 0x31a   :  { %v2018_v0 = vpop.f32.mrf.mxu0 }
 0x31b   :  { %v2192_v41 = vpack.c.bf16 %v2015_v31, %v2011_v30  ;;  %v2255_v27 = vmax.bf16 %v4949_v1, %v2191_v43  ;;  %v2019_v36 = vadd.f32 %v2018_v0, %v5855_v57 }
 0x31c   :  { %v2020_v26 = vpop.f32.mrf.mxu0 }
 0x31d   :  { %v2256_v61 = vmax.bf16 %v4949_v1, %v2192_v41  ;;  %v2021_v8 = vadd.f32 %v2020_v26, %v5858_v44 }
 0x31e   :  { %v2022_v47 = vpop.f32.mrf.mxu0 }
 0x31f   :  { %v2023_v40 = vadd.f32 %v2022_v47, %v5855_v57  ;;  %2691 = vmatprep.mubr.bf16.mxu1 %v2256_v61 }
 0x320   :  { %v2024_v39 = vpop.f32.mrf.mxu0  ;;  %2692 = vmatmul.mubr.bf16.gmra.mxu1 %v2255_v27 }
 0x321   :  { %v2025_v38 = vadd.f32 %v2024_v39, %v5858_v44  ;;  %v2193_v7 = vpack.c.bf16 %v2023_v40, %v2019_v36 }
 0x322   :  { %v2028_v53 = vpop.f32.mrf.mxu0 }
 0x323   :  { %v2194_v51 = vpack.c.bf16 %v2025_v38, %v2021_v8  ;;  %v2257_v46 = vmax.bf16 %v4949_v1, %v2193_v7  ;;  %v2029_v34 = vadd.f32 %v2028_v53, %v5855_v57 }
 0x324   :  { %v2030_v59 = vpop.f32.mrf.mxu0 }
 0x325   :  { %v2258_v58 = vmax.bf16 %v4949_v1, %v2194_v51  ;;  %v2031_v50 = vadd.f32 %v2030_v59, %v5858_v44 }
 0x326   :  { %v2032_v22 = vpop.f32.mrf.mxu0 }
 0x327   :  { %v2033_v56 = vadd.f32 %v2032_v22, %v5855_v57  ;;  %2701 = vmatprep.mubr.bf16.mxu1 %v2258_v58 }
 0x328   :  { %v2034_v10 = vpop.f32.mrf.mxu0  ;;  %2702 = vmatmul.mubr.bf16.gmra.mxu1 %v2257_v46 }
 0x329   :  { %v2035_v3 = vadd.f32 %v2034_v10, %v5858_v44  ;;  %v2195_v48 = vpack.c.bf16 %v2033_v56, %v2029_v34 }
 0x32a   :  { %v2038_v25 = vpop.f32.mrf.mxu0 }
 0x32b   :  { %v2196_v17 = vpack.c.bf16 %v2035_v3, %v2031_v50  ;;  %v2259_v2 = vmax.bf16 %v4949_v1, %v2195_v48  ;;  %v2039_v37 = vadd.f32 %v2038_v25, %v5855_v57 }
 0x32c   :  { %v2040_v49 = vpop.f32.mrf.mxu0 }
 0x32d   :  { %v2260_v33 = vmax.bf16 %v4949_v1, %v2196_v17  ;;  %v2041_v6 = vadd.f32 %v2040_v49, %v5858_v44 }
 0x32e   :  { %v2042_v20 = vpop.f32.mrf.mxu0 }
 0x32f   :  { %v2043_v23 = vadd.f32 %v2042_v20, %v5855_v57  ;;  %2711 = vmatprep.mubr.bf16.mxu1 %v2260_v33 }
 0x330   :  { %v2044_v28 = vpop.f32.mrf.mxu0  ;;  %2712 = vmatmul.mubr.bf16.gmra.mxu1 %v2259_v2 }
 0x331   :  { %v2045_v14 = vadd.f32 %v2044_v28, %v5858_v44  ;;  %v2197_v62 = vpack.c.bf16 %v2043_v23, %v2039_v37 }
 0x332   :  { %v2048_v63 = vpop.f32.mrf.mxu0 }
 0x333   :  { %v2198_v55 = vpack.c.bf16 %v2045_v14, %v2041_v6  ;;  %v2261_v16 = vmax.bf16 %v4949_v1, %v2197_v62  ;;  %v2049_v11 = vadd.f32 %v2048_v63, %v5855_v57  ;;  %v2317_v6 = vld [vmem:[%s6961_s8] sm:$0x3] }
 0x334   :  { %v2050_v24 = vpop.f32.mrf.mxu0 }
 0x335   :  { %v2262_v60 = vmax.bf16 %v4949_v1, %v2198_v55  ;;  %v2051_v15 = vadd.f32 %v2050_v24, %v5858_v44 }
 0x336   :  { %v2052_v54 = vpop.f32.mrf.mxu0 }
 0x337   :  { %v2053_v52 = vadd.f32 %v2052_v54, %v5855_v57  ;;  %2721 = vmatprep.mubr.bf16.mxu1 %v2262_v60 }
 0x338   :  { %v2054_v5 = vpop.f32.mrf.mxu0  ;;  %2722 = vmatmul.mubr.bf16.gmra.mxu1 %v2261_v16  ;;  %v6056_v16 = vrot.slane %v2317_v6, %v5291_v19 }
 0x339   :  { %v2055_v9 = vadd.f32 %v2054_v5, %v5858_v44  ;;  %v2199_v32 = vpack.c.bf16 %v2053_v52, %v2049_v11  ;;  %v6059_v5 = vrot.slane %v2317_v6, %v5296_v21 }
 0x33a   :  { %v2058_v29 = vpop.f32.mrf.mxu0 }
 0x33b   :  { %v2200_v12 = vpack.c.bf16 %v2055_v9, %v2051_v15  ;;  %v2263_v35 = vmax.bf16 %v4949_v1, %v2199_v32  ;;  %v2059_v30 = vadd.f32 %v2058_v29, %v5855_v57 }
 0x33c   :  { %v2060_v45 = vpop.f32.mrf.mxu0 }
 0x33d   :  { %v2264_v42 = vmax.bf16 %v4949_v1, %v2200_v12  ;;  %v2061_v31 = vadd.f32 %v2060_v45, %v5858_v44 }
 0x33e   :  { %v2062_v4 = vpop.f32.mrf.mxu0 }
 0x33f   :  { %v2063_v13 = vadd.f32 %v2062_v4, %v5855_v57  ;;  %2731 = vmatprep.mubr.bf16.mxu1 %v2264_v42 }
 0x340   :  { %v2064_v18 = vpop.f32.mrf.mxu0  ;;  %2732 = vmatmul.mubr.bf16.gmra.mxu1 %v2263_v35 }
 0x341   :  { %v2065_v0 = vadd.f32 %v2064_v18, %v5858_v44  ;;  %v2201_v41 = vpack.c.bf16 %v2063_v13, %v2059_v30 }
 0x342   :  { %v2068_v43 = vpop.f32.mrf.mxu0 }
 0x343   :  { %v2202_v26 = vpack.c.bf16 %v2065_v0, %v2061_v31  ;;  %v2265_v40 = vmax.bf16 %v4949_v1, %v2201_v41  ;;  %v2069_v8 = vadd.f32 %v2068_v43, %v5855_v57 }
 0x344   :  { %v2070_v61 = vpop.f32.mrf.mxu0 }
 0x345   :  { %v2266_v47 = vmax.bf16 %v4949_v1, %v2202_v26  ;;  %v2071_v38 = vadd.f32 %v2070_v61, %v5858_v44 }
 0x346   :  { %v2072_v27 = vpop.f32.mrf.mxu0 }
 0x347   :  { %v2073_v39 = vadd.f32 %v2072_v27, %v5855_v57  ;;  %2741 = vmatprep.mubr.bf16.mxu1 %v2266_v47 }
 0x348   :  { %v2074_v36 = vpop.f32.mrf.mxu0  ;;  %2742 = vmatmul.mubr.bf16.gmra.mxu1 %v2265_v40 }
 0x349   :  { %v2075_v53 = vadd.f32 %v2074_v36, %v5858_v44  ;;  %v2203_v51 = vpack.c.bf16 %v2073_v39, %v2069_v8 }
 0x34a   :  { %v2078_v7 = vpop.f32.mrf.mxu0 }
 0x34b   :  { %v2204_v59 = vpack.c.bf16 %v2075_v53, %v2071_v38  ;;  %v2267_v56 = vmax.bf16 %v4949_v1, %v2203_v51  ;;  %v2079_v50 = vadd.f32 %v2078_v7, %v5855_v57 }
 0x34c   :  { %v2080_v58 = vpop.f32.mrf.mxu0 }
 0x34d   :  { %v2268_v22 = vmax.bf16 %v4949_v1, %v2204_v59  ;;  %v2081_v3 = vadd.f32 %v2080_v58, %v5858_v44 }
 0x34e   :  { %v2082_v46 = vpop.f32.mrf.mxu0 }
 0x34f   :  { %v2083_v10 = vadd.f32 %v2082_v46, %v5855_v57  ;;  %2751 = vmatprep.mubr.bf16.mxu1 %v2268_v22 }
 0x350   :  { %v2084_v34 = vpop.f32.mrf.mxu0  ;;  %2752 = vmatmul.mubr.bf16.gmra.mxu1 %v2267_v56 }
 0x351   :  { %v2085_v25 = vadd.f32 %v2084_v34, %v5858_v44  ;;  %v2205_v17 = vpack.c.bf16 %v2083_v10, %v2079_v50 }
 0x352   :  { %v2088_v48 = vpop.f32.mrf.mxu0 }
 0x353   :  { %v2206_v49 = vpack.c.bf16 %v2085_v25, %v2081_v3  ;;  %v2269_v23 = vmax.bf16 %v4949_v1, %v2205_v17  ;;  %v2089_v14 = vadd.f32 %v2088_v48, %v5855_v57 }
 0x354   :  { %v2090_v33 = vpop.f32.mrf.mxu0 }
 0x355   :  { %v2270_v20 = vmax.bf16 %v4949_v1, %v2206_v49  ;;  %v2091_v63 = vadd.f32 %v2090_v33, %v5858_v44 }
 0x356   :  { %v2092_v2 = vpop.f32.mrf.mxu0 }
 0x357   :  { %v2093_v28 = vadd.f32 %v2092_v2, %v5855_v57  ;;  %2761 = vmatprep.mubr.bf16.mxu1 %v2270_v20 }
 0x358   :  { %v2094_v37 = vpop.f32.mrf.mxu0  ;;  %v2523_v55 = vpop.f32.mrf.mxu1  ;;  %2762 = vmatmul.mubr.bf16.gmra.mxu1 %v2269_v23 }
 0x359   :  { %v2095_v62 = vadd.f32 %v2094_v37, %v5858_v44  ;;  %v2207_v60 = vpack.c.bf16 %v2093_v28, %v2089_v14  ;;  %v2524_v45 = vadd.f32 %v2523_v55, %v6056_v16 }
 0x35a   :  { %v2098_v24 = vpop.f32.mrf.mxu0  ;;  %v2525_v52 = vpop.f32.mrf.mxu1 }
 0x35b   :  { %v2208_v54 = vpack.c.bf16 %v2095_v62, %v2091_v63  ;;  %v2271_v12 = vmax.bf16 %v4949_v1, %v2207_v60  ;;  %v2526_v35 = vadd.f32 %v2525_v52, %v6059_v5  ;;  %v2099_v30 = vadd.f32 %v2098_v24, %v5855_v57 }
 0x35c   :  { %v2100_v11 = vpop.f32.mrf.mxu0  ;;  %v2527_v15 = vpop.f32.mrf.mxu1 }
 0x35d   :  { %v2272_v9 = vmax.bf16 %v4949_v1, %v2208_v54  ;;  %v2528_v29 = vadd.f32 %v2527_v15, %v6056_v16  ;;  %v2101_v31 = vadd.f32 %v2100_v11, %v5858_v44 }
 0x35e   :  { %v2102_v32 = vpop.f32.mrf.mxu0  ;;  %v2529_v4 = vpop.f32.mrf.mxu1 }
 0x35f   :  { %v2103_v42 = vadd.f32 %v2102_v32, %v5855_v57  ;;  %2771 = vmatprep.mubr.bf16.mxu1 %v2272_v9  ;;  %v2530_v13 = vadd.f32 %v2529_v4, %v6059_v5  ;;  %v2842_v0 = vpack.c.bf16 %v2528_v29, %v2524_v45 }
 0x360   :  { %v2104_v18 = vpop.f32.mrf.mxu0  ;;  %v2533_v41 = vpop.f32.mrf.mxu1  ;;  %2772 = vmatmul.mubr.bf16.gmra.mxu1 %v2271_v12 }
 0x361   :  { %v2105_v43 = vadd.f32 %v2104_v18, %v5858_v44  ;;  %v2843_v26 = vpack.c.bf16 %v2530_v13, %v2526_v35  ;;  %v2209_v47 = vpack.c.bf16 %v2103_v42, %v2099_v30  ;;  %v2906_v8 = vmax.bf16 %v4949_v1, %v2842_v0 }
 0x362   :  { %v2108_v61 = vpop.f32.mrf.mxu0  ;;  %v2535_v40 = vpop.f32.mrf.mxu1  ;;  %v2534_v58 = vadd.f32 %v2533_v41, %v6056_v16 }
 0x363   :  { %v2210_v27 = vpack.c.bf16 %v2105_v43, %v2101_v31  ;;  %v2907_v36 = vmax.bf16 %v4949_v1, %v2843_v26  ;;  %v2273_v59 = vmax.bf16 %v4949_v1, %v2209_v47  ;;  %v2536_v56 = vadd.f32 %v2535_v40, %v6059_v5 }
 0x364   :  { %v2110_v39 = vpop.f32.mrf.mxu0  ;;  %v2537_v38 = vpop.f32.mrf.mxu1  ;;  %v2109_v50 = vadd.f32 %v2108_v61, %v5855_v57 }
 0x365   :  { %v2274_v53 = vmax.bf16 %v4949_v1, %v2210_v27  ;;  %v2538_v7 = vadd.f32 %v2537_v38, %v6056_v16  ;;  %3206 = vmatprep.mubr.bf16.mxu0 %v2907_v36  ;;  %v2111_v3 = vadd.f32 %v2110_v39, %v5858_v44 }
 0x366   :  { %v2112_v51 = vpop.f32.mrf.mxu0  ;;  %v2539_v46 = vpop.f32.mrf.mxu1  ;;  %3207 = vmatmul.mubr.bf16.vlgmr.msra.gmra.mxu0 %v2906_v8 }
 0x367   :  { %v2113_v22 = vadd.f32 %v2112_v51, %v5855_v57  ;;  %2781 = vmatprep.mubr.bf16.mxu1 %v2274_v53  ;;  %v2540_v10 = vadd.f32 %v2539_v46, %v6059_v5  ;;  %v2844_v25 = vpack.c.bf16 %v2538_v7, %v2534_v58 }
 0x368   :  { %v2114_v34 = vpop.f32.mrf.mxu0  ;;  %v2543_v17 = vpop.f32.mrf.mxu1  ;;  %2782 = vmatmul.mubr.bf16.gmra.mxu1 %v2273_v59 }
 0x369   :  { %v2115_v48 = vadd.f32 %v2114_v34, %v5858_v44  ;;  %v2845_v49 = vpack.c.bf16 %v2540_v10, %v2536_v56  ;;  %v2211_v20 = vpack.c.bf16 %v2113_v22, %v2109_v50  ;;  %v2908_v6 = vmax.bf16 %v4949_v1, %v2844_v25 }
 0x36a   :  { %v2118_v33 = vpop.f32.mrf.mxu0  ;;  %v2545_v23 = vpop.f32.mrf.mxu1  ;;  %v2544_v60 = vadd.f32 %v2543_v17, %v6056_v16 }
 0x36b   :  { %v2212_v2 = vpack.c.bf16 %v2115_v48, %v2111_v3  ;;  %v2909_v37 = vmax.bf16 %v4949_v1, %v2845_v49  ;;  %v2275_v24 = vmax.bf16 %v4949_v1, %v2211_v20  ;;  %v2546_v11 = vadd.f32 %v2545_v23, %v6059_v5 }
 0x36c   :  { %v2120_v28 = vpop.f32.mrf.mxu0  ;;  %v2547_v14 = vpop.f32.mrf.mxu1  ;;  %v2119_v29 = vadd.f32 %v2118_v33, %v5855_v57 }
 0x36d   :  { %v2276_v63 = vmax.bf16 %v4949_v1, %v2212_v2  ;;  %v2548_v62 = vadd.f32 %v2547_v14, %v6056_v16  ;;  %3216 = vmatprep.mubr.bf16.mxu0 %v2909_v37  ;;  %v2121_v32 = vadd.f32 %v2120_v28, %v5858_v44 }
 0x36e   :  { %v2122_v55 = vpop.f32.mrf.mxu0  ;;  %v2549_v52 = vpop.f32.mrf.mxu1  ;;  %3217 = vmatmul.mubr.bf16.gmra.mxu0 %v2908_v6 }
 0x36f   :  { %v2123_v54 = vadd.f32 %v2122_v55, %v5855_v57  ;;  %2791 = vmatprep.mubr.bf16.mxu1 %v2276_v63  ;;  %v2550_v15 = vadd.f32 %v2549_v52, %v6059_v5  ;;  %v2846_v12 = vpack.c.bf16 %v2548_v62, %v2544_v60 }
 0x370   :  { %v2124_v9 = vpop.f32.mrf.mxu0  ;;  %v2553_v42 = vpop.f32.mrf.mxu1  ;;  %2792 = vmatmul.mubr.bf16.gmra.mxu1 %v2275_v24 }
 0x371   :  { %v2125_v45 = vadd.f32 %v2124_v9, %v5858_v44  ;;  %v2847_v4 = vpack.c.bf16 %v2550_v15, %v2546_v11  ;;  %v2213_v13 = vpack.c.bf16 %v2123_v54, %v2119_v29  ;;  %v2910_v43 = vmax.bf16 %v4949_v1, %v2846_v12 }
 0x372   :  { %v2128_v35 = vpop.f32.mrf.mxu0  ;;  %v2555_v30 = vpop.f32.mrf.mxu1  ;;  %v2554_v40 = vadd.f32 %v2553_v42, %v6056_v16 }
 0x373   :  { %v2214_v18 = vpack.c.bf16 %v2125_v45, %v2121_v32  ;;  %v2911_v0 = vmax.bf16 %v4949_v1, %v2847_v4  ;;  %v2277_v27 = vmax.bf16 %v4949_v1, %v2213_v13  ;;  %v2556_v8 = vadd.f32 %v2555_v30, %v6059_v5 }
 0x374   :  { %v2130_v31 = vpop.f32.mrf.mxu0  ;;  %v2557_v41 = vpop.f32.mrf.mxu1  ;;  %v2129_v7 = vadd.f32 %v2128_v35, %v5855_v57 }
 0x375   :  { %v2278_v26 = vmax.bf16 %v4949_v1, %v2214_v18  ;;  %v2558_v61 = vadd.f32 %v2557_v41, %v6056_v16  ;;  %3226 = vmatprep.mubr.bf16.mxu0 %v2911_v0  ;;  %v2131_v51 = vadd.f32 %v2130_v31, %v5858_v44 }
 0x376   :  { %v2132_v47 = vpop.f32.mrf.mxu0  ;;  %v2559_v36 = vpop.f32.mrf.mxu1  ;;  %3227 = vmatmul.mubr.bf16.gmra.mxu0 %v2910_v43 }
 0x377   :  { %v2133_v39 = vadd.f32 %v2132_v47, %v5855_v57  ;;  %2801 = vmatprep.mubr.bf16.mxu1 %v2278_v26  ;;  %v2560_v38 = vadd.f32 %v2559_v36, %v6059_v5  ;;  %v2848_v59 = vpack.c.bf16 %v2558_v61, %v2554_v40 }
 0x378   :  { %v2134_v53 = vpop.f32.mrf.mxu0  ;;  %v2563_v22 = vpop.f32.mrf.mxu1  ;;  %2802 = vmatmul.mubr.bf16.gmra.mxu1 %v2277_v27 }
 0x379   :  { %v2135_v58 = vadd.f32 %v2134_v53, %v5858_v44  ;;  %v2849_v46 = vpack.c.bf16 %v2560_v38, %v2556_v8  ;;  %v2215_v10 = vpack.c.bf16 %v2133_v39, %v2129_v7  ;;  %v2912_v48 = vmax.bf16 %v4949_v1, %v2848_v59 }
 0x37a   :  { %v2138_v56 = vpop.f32.mrf.mxu0  ;;  %v2565_v50 = vpop.f32.mrf.mxu1  ;;  %v2564_v23 = vadd.f32 %v2563_v22, %v6056_v16 }
 0x37b   :  { %v2216_v34 = vpack.c.bf16 %v2135_v58, %v2131_v51  ;;  %v2913_v25 = vmax.bf16 %v4949_v1, %v2849_v46  ;;  %v2279_v2 = vmax.bf16 %v4949_v1, %v2215_v10  ;;  %v2566_v6 = vadd.f32 %v2565_v50, %v6059_v5 }
 0x37c   :  { %v2140_v3 = vpop.f32.mrf.mxu0  ;;  %v2567_v17 = vpop.f32.mrf.mxu1  ;;  %v2139_v62 = vadd.f32 %v2138_v56, %v5855_v57 }
 0x37d   :  { %v2280_v49 = vmax.bf16 %v4949_v1, %v2216_v34  ;;  %v2568_v33 = vadd.f32 %v2567_v17, %v6056_v16  ;;  %3236 = vmatprep.mubr.bf16.mxu0 %v2913_v25  ;;  %v2141_v55 = vadd.f32 %v2140_v3, %v5858_v44 }
 0x37e   :  { %v2142_v20 = vpop.f32.mrf.mxu0  ;;  %v2569_v37 = vpop.f32.mrf.mxu1  ;;  %3237 = vmatmul.mubr.bf16.gmra.mxu0 %v2912_v48 }
 0x37f   :  { %v2143_v28 = vadd.f32 %v2142_v20, %v5855_v57  ;;  %2811 = vmatprep.mubr.bf16.mxu1 %v2280_v49  ;;  %v2570_v14 = vadd.f32 %v2569_v37, %v6059_v5  ;;  %v2850_v24 = vpack.c.bf16 %v2568_v33, %v2564_v23 }
 0x380   :  { %v2144_v63 = vpop.f32.mrf.mxu0  ;;  %v2573_v54 = vpop.f32.mrf.mxu1  ;;  %2812 = vmatmul.mubr.bf16.gmra.mxu1 %v2279_v2 }
 0x381   :  { %v2145_v60 = vadd.f32 %v2144_v63, %v5858_v44  ;;  %v2851_v52 = vpack.c.bf16 %v2570_v14, %v2566_v6  ;;  %v2217_v15 = vpack.c.bf16 %v2143_v28, %v2139_v62  ;;  %v2914_v45 = vmax.bf16 %v4949_v1, %v2850_v24 }
 0x382   :  { %v2148_v11 = vpop.f32.mrf.mxu0  ;;  %v2575_v29 = vpop.f32.mrf.mxu1  ;;  %v2574_v30 = vadd.f32 %v2573_v54, %v6056_v16 }
 0x383   :  { %v2218_v9 = vpack.c.bf16 %v2145_v60, %v2141_v55  ;;  %v2915_v12 = vmax.bf16 %v4949_v1, %v2851_v52  ;;  %v2281_v18 = vmax.bf16 %v4949_v1, %v2217_v15  ;;  %v2576_v43 = vadd.f32 %v2575_v29, %v6059_v5 }
 0x384   :  { %v2150_v32 = vpop.f32.mrf.mxu0  ;;  %v2577_v42 = vpop.f32.mrf.mxu1  ;;  %v2149_v61 = vadd.f32 %v2148_v11, %v5855_v57 }
 0x385   :  { %v2282_v4 = vmax.bf16 %v4949_v1, %v2218_v9  ;;  %v2578_v35 = vadd.f32 %v2577_v42, %v6056_v16  ;;  %3246 = vmatprep.mubr.bf16.mxu0 %v2915_v12  ;;  %v2151_v47 = vadd.f32 %v2150_v32, %v5858_v44 }
 0x386   :  { %v2152_v13 = vpop.f32.mrf.mxu0  ;;  %v2579_v0 = vpop.f32.mrf.mxu1  ;;  %3247 = vmatmul.mubr.bf16.gmra.mxu0 %v2914_v45 }
 0x387   :  { %v2153_v31 = vadd.f32 %v2152_v13, %v5855_v57  ;;  %2821 = vmatprep.mubr.bf16.mxu1 %v2282_v4  ;;  %v2580_v41 = vadd.f32 %v2579_v0, %v6059_v5  ;;  %v2852_v27 = vpack.c.bf16 %v2578_v35, %v2574_v30 }
 0x388   :  { %v2154_v26 = vpop.f32.mrf.mxu0  ;;  %v2583_v39 = vpop.f32.mrf.mxu1  ;;  %2822 = vmatmul.mubr.bf16.gmra.mxu1 %v2281_v18 }
 0x389   :  { %v2155_v40 = vadd.f32 %v2154_v26, %v5858_v44  ;;  %v2853_v36 = vpack.c.bf16 %v2580_v41, %v2576_v43  ;;  %v2219_v8 = vpack.c.bf16 %v2153_v31, %v2149_v61  ;;  %v2916_v51 = vmax.bf16 %v4949_v1, %v2852_v27 }
 0x38a   :  { %v2585_v53 = vpop.f32.mrf.mxu1  ;;  %v2584_v44 = vadd.f32 %v2583_v39, %v6056_v16 }
 0x38b   :  { %v2220_v38 = vpack.c.bf16 %v2155_v40, %v2151_v47  ;;  %v2917_v7 = vmax.bf16 %v4949_v1, %v2853_v36  ;;  %v2283_v22 = vmax.bf16 %v4949_v1, %v2219_v8  ;;  %v2586_v56 = vadd.f32 %v2585_v53, %v6059_v5 }
 0x38c   :  { %v2587_v59 = vpop.f32.mrf.mxu1 }
 0x38d   :  { %v2284_v58 = vmax.bf16 %v4949_v1, %v2220_v38  ;;  %v2588_v57 = vadd.f32 %v2587_v59, %v6056_v16  ;;  %3256 = vmatprep.mubr.bf16.mxu0 %v2917_v7 }
 0x38e   :  { %v2589_v46 = vpop.f32.mrf.mxu1  ;;  %3257 = vmatmul.mubr.bf16.gmra.mxu0 %v2916_v51 }
 0x38f   :  { %2831 = vmatprep.mubr.bf16.mxu1 %v2284_v58  ;;  %v2590_v10 = vadd.f32 %v2589_v46, %v6059_v5  ;;  %v2854_v34 = vpack.c.bf16 %v2588_v57, %v2584_v44 }
 0x390   :  { %v2593_v50 = vpop.f32.mrf.mxu1  ;;  %2832 = vmatmul.mubr.bf16.gmra.mxu1 %v2283_v22 }
 0x391   :  { %v2855_v3 = vpack.c.bf16 %v2590_v10, %v2586_v56  ;;  %v2918_v17 = vmax.bf16 %v4949_v1, %v2854_v34  ;;  %v2594_v20 = vadd.f32 %v2593_v50, %v6056_v16 }
 0x392   :  { %v2595_v25 = vpop.f32.mrf.mxu1 }
 0x393   :  { %v2919_v48 = vmax.bf16 %v4949_v1, %v2855_v3  ;;  %v2596_v23 = vadd.f32 %v2595_v25, %v6059_v5 }
 0x394   :  { %v2597_v49 = vpop.f32.mrf.mxu1 }
 0x395   :  { %v2598_v33 = vadd.f32 %v2597_v49, %v6056_v16  ;;  %3266 = vmatprep.mubr.bf16.mxu0 %v2919_v48 }
 0x396   :  { %v2599_v2 = vpop.f32.mrf.mxu1  ;;  %3267 = vmatmul.mubr.bf16.gmra.mxu0 %v2918_v17 }
 0x397   :  { %v2600_v28 = vadd.f32 %v2599_v2, %v6059_v5  ;;  %v2856_v37 = vpack.c.bf16 %v2598_v33, %v2594_v20 }
 0x398   :  { %v2603_v6 = vpop.f32.mrf.mxu1 }
 0x399   :  { %v2857_v14 = vpack.c.bf16 %v2600_v28, %v2596_v23  ;;  %v2920_v55 = vmax.bf16 %v4949_v1, %v2856_v37  ;;  %v2604_v54 = vadd.f32 %v2603_v6, %v6056_v16 }
 0x39a   :  { %v2605_v63 = vpop.f32.mrf.mxu1 }
 0x39b   :  { %v2921_v62 = vmax.bf16 %v4949_v1, %v2857_v14  ;;  %v2606_v11 = vadd.f32 %v2605_v63, %v6059_v5 }
 0x39c   :  { %v2607_v24 = vpop.f32.mrf.mxu1 }
 0x39d   :  { %v2608_v60 = vadd.f32 %v2607_v24, %v6056_v16  ;;  %3276 = vmatprep.mubr.bf16.mxu0 %v2921_v62 }
 0x39e   :  { %v2609_v52 = vpop.f32.mrf.mxu1  ;;  %3277 = vmatmul.mubr.bf16.gmra.mxu0 %v2920_v55 }
 0x39f   :  { %v2610_v15 = vadd.f32 %v2609_v52, %v6059_v5  ;;  %v2858_v9 = vpack.c.bf16 %v2608_v60, %v2604_v54 }
 0x3a0   :  { %v2613_v29 = vpop.f32.mrf.mxu1 }
 0x3a1   :  { %v2859_v32 = vpack.c.bf16 %v2610_v15, %v2606_v11  ;;  %v2922_v42 = vmax.bf16 %v4949_v1, %v2858_v9  ;;  %v2614_v13 = vadd.f32 %v2613_v29, %v6056_v16 }
 0x3a2   :  { %v2615_v12 = vpop.f32.mrf.mxu1 }
 0x3a3   :  { %v2923_v45 = vmax.bf16 %v4949_v1, %v2859_v32  ;;  %v2616_v30 = vadd.f32 %v2615_v12, %v6059_v5 }
 0x3a4   :  { %v2617_v4 = vpop.f32.mrf.mxu1 }
 0x3a5   :  { %v2618_v35 = vadd.f32 %v2617_v4, %v6056_v16  ;;  %3286 = vmatprep.mubr.bf16.mxu0 %v2923_v45 }
 0x3a6   :  { %v2619_v18 = vpop.f32.mrf.mxu1  ;;  %3287 = vmatmul.mubr.bf16.gmra.mxu0 %v2922_v42 }
 0x3a7   :  { %v2620_v31 = vadd.f32 %v2619_v18, %v6059_v5  ;;  %v2860_v0 = vpack.c.bf16 %v2618_v35, %v2614_v13 }
 0x3a8   :  { %v2623_v43 = vpop.f32.mrf.mxu1 }
 0x3a9   :  { %v2861_v41 = vpack.c.bf16 %v2620_v31, %v2616_v30  ;;  %v2924_v47 = vmax.bf16 %v4949_v1, %v2860_v0  ;;  %v2624_v39 = vadd.f32 %v2623_v43, %v6056_v16 }
 0x3aa   :  { %v2625_v26 = vpop.f32.mrf.mxu1 }
 0x3ab   :  { %v2925_v61 = vmax.bf16 %v4949_v1, %v2861_v41  ;;  %v2626_v8 = vadd.f32 %v2625_v26, %v6059_v5 }
 0x3ac   :  { %v2627_v27 = vpop.f32.mrf.mxu1 }
 0x3ad   :  { %v2628_v40 = vadd.f32 %v2627_v27, %v6056_v16  ;;  %3296 = vmatprep.mubr.bf16.mxu0 %v2925_v61 }
 0x3ae   :  { %v2629_v36 = vpop.f32.mrf.mxu1  ;;  %3297 = vmatmul.mubr.bf16.gmra.mxu0 %v2924_v47 }
 0x3af   :  { %v2630_v38 = vadd.f32 %v2629_v36, %v6059_v5  ;;  %v2862_v53 = vpack.c.bf16 %v2628_v40, %v2624_v39 }
 0x3b0   :  { %v2633_v7 = vpop.f32.mrf.mxu1 }
 0x3b1   :  { %v2863_v51 = vpack.c.bf16 %v2630_v38, %v2626_v8  ;;  %v2926_v57 = vmax.bf16 %v4949_v1, %v2862_v53  ;;  %v2634_v46 = vadd.f32 %v2633_v7, %v6056_v16 }
 0x3b2   :  { %v2635_v59 = vpop.f32.mrf.mxu1 }
 0x3b3   :  { %v2927_v58 = vmax.bf16 %v4949_v1, %v2863_v51  ;;  %v2636_v10 = vadd.f32 %v2635_v59, %v6059_v5 }
 0x3b4   :  { %v2637_v22 = vpop.f32.mrf.mxu1 }
 0x3b5   :  { %v2638_v44 = vadd.f32 %v2637_v22, %v6056_v16  ;;  %3306 = vmatprep.mubr.bf16.mxu0 %v2927_v58 }
 0x3b6   :  { %v2639_v56 = vpop.f32.mrf.mxu1  ;;  %3307 = vmatmul.mubr.bf16.gmra.mxu0 %v2926_v57 }
 0x3b7   :  { %v2640_v34 = vadd.f32 %v2639_v56, %v6059_v5  ;;  %v2864_v50 = vpack.c.bf16 %v2638_v44, %v2634_v46 }
 0x3b8   :  { %v2643_v3 = vpop.f32.mrf.mxu1 }
 0x3b9   :  { %v2865_v25 = vpack.c.bf16 %v2640_v34, %v2636_v10  ;;  %v2928_v49 = vmax.bf16 %v4949_v1, %v2864_v50  ;;  %v2644_v2 = vadd.f32 %v2643_v3, %v6056_v16 }
 0x3ba   :  { %v2645_v48 = vpop.f32.mrf.mxu1 }
 0x3bb   :  { %v2929_v17 = vmax.bf16 %v4949_v1, %v2865_v25  ;;  %v2646_v28 = vadd.f32 %v2645_v48, %v6059_v5 }
 0x3bc   :  { %v2647_v33 = vpop.f32.mrf.mxu1 }
 0x3bd   :  { %v2648_v20 = vadd.f32 %v2647_v33, %v6056_v16  ;;  %3316 = vmatprep.mubr.bf16.mxu0 %v2929_v17 }
 0x3be   :  { %v2649_v23 = vpop.f32.mrf.mxu1  ;;  %3317 = vmatmul.mubr.bf16.gmra.mxu0 %v2928_v49 }
 0x3bf   :  { %v2650_v37 = vadd.f32 %v2649_v23, %v6059_v5  ;;  %v2866_v6 = vpack.c.bf16 %v2648_v20, %v2644_v2 }
 0x3c0   :  { %v2653_v14 = vpop.f32.mrf.mxu1 }
 0x3c1   :  { %v2867_v63 = vpack.c.bf16 %v2650_v37, %v2646_v28  ;;  %v2930_v24 = vmax.bf16 %v4949_v1, %v2866_v6  ;;  %v2654_v52 = vadd.f32 %v2653_v14, %v6056_v16 }
 0x3c2   :  { %v2655_v62 = vpop.f32.mrf.mxu1 }
 0x3c3   :  { %v2931_v55 = vmax.bf16 %v4949_v1, %v2867_v63  ;;  %v2656_v15 = vadd.f32 %v2655_v62, %v6059_v5 }
 0x3c4   :  { %v2657_v60 = vpop.f32.mrf.mxu1 }
 0x3c5   :  { %v2658_v54 = vadd.f32 %v2657_v60, %v6056_v16  ;;  %3326 = vmatprep.mubr.bf16.mxu0 %v2931_v55 }
 0x3c6   :  { %v2659_v11 = vpop.f32.mrf.mxu1  ;;  %3327 = vmatmul.mubr.bf16.gmra.mxu0 %v2930_v24 }
 0x3c7   :  { %v2660_v9 = vadd.f32 %v2659_v11, %v6059_v5  ;;  %v2868_v29 = vpack.c.bf16 %v2658_v54, %v2654_v52 }
 0x3c8   :  { %v2663_v32 = vpop.f32.mrf.mxu1 }
 0x3c9   :  { %v2869_v12 = vpack.c.bf16 %v2660_v9, %v2656_v15  ;;  %v2932_v4 = vmax.bf16 %v4949_v1, %v2868_v29  ;;  %v2664_v18 = vadd.f32 %v2663_v32, %v6056_v16 }
 0x3ca   :  { %v2665_v45 = vpop.f32.mrf.mxu1 }
 0x3cb   :  { %v2933_v42 = vmax.bf16 %v4949_v1, %v2869_v12  ;;  %v2666_v31 = vadd.f32 %v2665_v45, %v6059_v5 }
 0x3cc   :  { %v2667_v35 = vpop.f32.mrf.mxu1 }
 0x3cd   :  { %v2668_v13 = vadd.f32 %v2667_v35, %v6056_v16  ;;  %3336 = vmatprep.mubr.bf16.mxu0 %v2933_v42 }
 0x3ce   :  { %v2669_v30 = vpop.f32.mrf.mxu1  ;;  %3337 = vmatmul.mubr.bf16.gmra.mxu0 %v2932_v4 }
 0x3cf   :  { %v2670_v0 = vadd.f32 %v2669_v30, %v6059_v5  ;;  %v2870_v43 = vpack.c.bf16 %v2668_v13, %v2664_v18 }
 0x3d0   :  { %v2673_v41 = vpop.f32.mrf.mxu1 }
 0x3d1   :  { %v2871_v26 = vpack.c.bf16 %v2670_v0, %v2666_v31  ;;  %v2934_v27 = vmax.bf16 %v4949_v1, %v2870_v43  ;;  %v2674_v36 = vadd.f32 %v2673_v41, %v6056_v16 }
 0x3d2   :  { %v2675_v61 = vpop.f32.mrf.mxu1 }
 0x3d3   :  { %v2935_v47 = vmax.bf16 %v4949_v1, %v2871_v26  ;;  %v2676_v38 = vadd.f32 %v2675_v61, %v6059_v5 }
 0x3d4   :  { %v2677_v40 = vpop.f32.mrf.mxu1 }
 0x3d5   :  { %v2678_v39 = vadd.f32 %v2677_v40, %v6056_v16  ;;  %3346 = vmatprep.mubr.bf16.mxu0 %v2935_v47 }
 0x3d6   :  { %v2679_v8 = vpop.f32.mrf.mxu1  ;;  %3347 = vmatmul.mubr.bf16.gmra.mxu0 %v2934_v27 }
 0x3d7   :  { %v2680_v53 = vadd.f32 %v2679_v8, %v6059_v5  ;;  %v2872_v7 = vpack.c.bf16 %v2678_v39, %v2674_v36 }
 0x3d8   :  { %v2683_v51 = vpop.f32.mrf.mxu1 }
 0x3d9   :  { %v2873_v59 = vpack.c.bf16 %v2680_v53, %v2676_v38  ;;  %v2936_v22 = vmax.bf16 %v4949_v1, %v2872_v7  ;;  %v2684_v56 = vadd.f32 %v2683_v51, %v6056_v16 }
 0x3da   :  { %v2685_v58 = vpop.f32.mrf.mxu1 }
 0x3db   :  { %v2937_v57 = vmax.bf16 %v4949_v1, %v2873_v59  ;;  %v2686_v34 = vadd.f32 %v2685_v58, %v6059_v5 }
 0x3dc   :  { %v2687_v44 = vpop.f32.mrf.mxu1 }
 0x3dd   :  { %v2688_v46 = vadd.f32 %v2687_v44, %v6056_v16  ;;  %3356 = vmatprep.mubr.bf16.mxu0 %v2937_v57 }
 0x3de   :  { %v2689_v10 = vpop.f32.mrf.mxu1  ;;  %3357 = vmatmul.mubr.bf16.gmra.mxu0 %v2936_v22 }
 0x3df   :  { %v2690_v50 = vadd.f32 %v2689_v10, %v6059_v5  ;;  %v2874_v3 = vpack.c.bf16 %v2688_v46, %v2684_v56 }
 0x3e0   :  { %v2693_v25 = vpop.f32.mrf.mxu1 }
 0x3e1   :  { %v2875_v48 = vpack.c.bf16 %v2690_v50, %v2686_v34  ;;  %v2938_v33 = vmax.bf16 %v4949_v1, %v2874_v3  ;;  %v2694_v23 = vadd.f32 %v2693_v25, %v6056_v16 }
 0x3e2   :  { %v2695_v17 = vpop.f32.mrf.mxu1 }
 0x3e3   :  { %v2939_v49 = vmax.bf16 %v4949_v1, %v2875_v48  ;;  %v2696_v37 = vadd.f32 %v2695_v17, %v6059_v5 }
 0x3e4   :  { %v2697_v20 = vpop.f32.mrf.mxu1 }
 0x3e5   :  { %v2698_v2 = vadd.f32 %v2697_v20, %v6056_v16  ;;  %3366 = vmatprep.mubr.bf16.mxu0 %v2939_v49 }
 0x3e6   :  { %v2699_v28 = vpop.f32.mrf.mxu1  ;;  %3367 = vmatmul.mubr.bf16.gmra.mxu0 %v2938_v33 }
 0x3e7   :  { %v2700_v6 = vadd.f32 %v2699_v28, %v6059_v5  ;;  %v2876_v14 = vpack.c.bf16 %v2698_v2, %v2694_v23 }
 0x3e8   :  { %v2703_v63 = vpop.f32.mrf.mxu1 }
 0x3e9   :  { %v2877_v62 = vpack.c.bf16 %v2700_v6, %v2696_v37  ;;  %v2940_v60 = vmax.bf16 %v4949_v1, %v2876_v14  ;;  %v2704_v11 = vadd.f32 %v2703_v63, %v6056_v16 }
 0x3ea   :  { %v2705_v55 = vpop.f32.mrf.mxu1 }
 0x3eb   :  { %v2941_v24 = vmax.bf16 %v4949_v1, %v2877_v62  ;;  %v2706_v9 = vadd.f32 %v2705_v55, %v6059_v5 }
 0x3ec   :  { %v2707_v54 = vpop.f32.mrf.mxu1 }
 0x3ed   :  { %v2708_v52 = vadd.f32 %v2707_v54, %v6056_v16  ;;  %3376 = vmatprep.mubr.bf16.mxu0 %v2941_v24 }
 0x3ee   :  { %v2709_v15 = vpop.f32.mrf.mxu1  ;;  %3377 = vmatmul.mubr.bf16.gmra.mxu0 %v2940_v60 }
 0x3ef   :  { %v2710_v29 = vadd.f32 %v2709_v15, %v6059_v5  ;;  %v2878_v32 = vpack.c.bf16 %v2708_v52, %v2704_v11 }
 0x3f0   :  { %v2713_v12 = vpop.f32.mrf.mxu1 }
 0x3f1   :  { %v2879_v45 = vpack.c.bf16 %v2710_v29, %v2706_v9  ;;  %v2942_v35 = vmax.bf16 %v4949_v1, %v2878_v32  ;;  %v2714_v30 = vadd.f32 %v2713_v12, %v6056_v16 }
 0x3f2   :  { %v2715_v42 = vpop.f32.mrf.mxu1 }
 0x3f3   :  { %v2943_v4 = vmax.bf16 %v4949_v1, %v2879_v45  ;;  %v2716_v0 = vadd.f32 %v2715_v42, %v6059_v5 }
 0x3f4   :  { %v2717_v13 = vpop.f32.mrf.mxu1 }
 0x3f5   :  { %v2718_v18 = vadd.f32 %v2717_v13, %v6056_v16  ;;  %3386 = vmatprep.mubr.bf16.mxu0 %v2943_v4 }
 0x3f6   :  { %v2719_v31 = vpop.f32.mrf.mxu1  ;;  %3387 = vmatmul.mubr.bf16.gmra.mxu0 %v2942_v35 }
 0x3f7   :  { %v2720_v43 = vadd.f32 %v2719_v31, %v6059_v5  ;;  %v2880_v41 = vpack.c.bf16 %v2718_v18, %v2714_v30 }
 0x3f8   :  { %v2723_v26 = vpop.f32.mrf.mxu1 }
 0x3f9   :  { %v2881_v61 = vpack.c.bf16 %v2720_v43, %v2716_v0  ;;  %v2944_v40 = vmax.bf16 %v4949_v1, %v2880_v41  ;;  %v2724_v8 = vadd.f32 %v2723_v26, %v6056_v16 }
 0x3fa   :  { %v2725_v47 = vpop.f32.mrf.mxu1 }
 0x3fb   :  { %v2945_v27 = vmax.bf16 %v4949_v1, %v2881_v61  ;;  %v2726_v53 = vadd.f32 %v2725_v47, %v6059_v5 }
 0x3fc   :  { %v2727_v39 = vpop.f32.mrf.mxu1 }
 0x3fd   :  { %v2728_v36 = vadd.f32 %v2727_v39, %v6056_v16  ;;  %3396 = vmatprep.mubr.bf16.mxu0 %v2945_v27 }
 0x3fe   :  { %v2729_v38 = vpop.f32.mrf.mxu1  ;;  %3397 = vmatmul.mubr.bf16.gmra.mxu0 %v2944_v40 }
 0x3ff   :  { %v2730_v7 = vadd.f32 %v2729_v38, %v6059_v5  ;;  %v2882_v51 = vpack.c.bf16 %v2728_v36, %v2724_v8  ;;  %v3002_v8 = vld [vmem:[%s6963_s10] sm:$0x3] }
 0x400   :  { %v2733_v59 = vpop.f32.mrf.mxu1 }
 0x401   :  { %v2883_v58 = vpack.c.bf16 %v2730_v7, %v2726_v53  ;;  %v2946_v44 = vmax.bf16 %v4949_v1, %v2882_v51  ;;  %v2734_v10 = vadd.f32 %v2733_v59, %v6056_v16 }
 0x402   :  { %v2735_v57 = vpop.f32.mrf.mxu1 }
 0x403   :  { %v2947_v22 = vmax.bf16 %v4949_v1, %v2883_v58  ;;  %v2736_v50 = vadd.f32 %v2735_v57, %v6059_v5  ;;  %v6257_v57 = vrot.slane %v3002_v8, %v5291_v19 }
 0x404   :  { %v2737_v46 = vpop.f32.mrf.mxu1 }
 0x405   :  { %v2738_v56 = vadd.f32 %v2737_v46, %v6056_v16  ;;  %3406 = vmatprep.mubr.bf16.mxu0 %v2947_v22 }
 0x406   :  { %v2739_v34 = vpop.f32.mrf.mxu1  ;;  %3407 = vmatmul.mubr.bf16.gmra.mxu0 %v2946_v44 }
 0x407   :  { %v2740_v3 = vadd.f32 %v2739_v34, %v6059_v5  ;;  %v2884_v25 = vpack.c.bf16 %v2738_v56, %v2734_v10  ;;  %v6260_v10 = vrot.slane %v3002_v8, %v5296_v21 }
 0x408   :  { %v2743_v48 = vpop.f32.mrf.mxu1 }
 0x409   :  { %v2885_v17 = vpack.c.bf16 %v2740_v3, %v2736_v50  ;;  %v2948_v20 = vmax.bf16 %v4949_v1, %v2884_v25  ;;  %v2744_v28 = vadd.f32 %v2743_v48, %v6056_v16 }
 0x40a   :  { %v2745_v49 = vpop.f32.mrf.mxu1 }
 0x40b   :  { %v2949_v33 = vmax.bf16 %v4949_v1, %v2885_v17  ;;  %v2746_v6 = vadd.f32 %v2745_v49, %v6059_v5 }
 0x40c   :  { %v2747_v2 = vpop.f32.mrf.mxu1 }
 0x40d   :  { %v2748_v23 = vadd.f32 %v2747_v2, %v6056_v16  ;;  %3416 = vmatprep.mubr.bf16.mxu0 %v2949_v33 }
 0x40e   :  { %v2749_v37 = vpop.f32.mrf.mxu1  ;;  %3417 = vmatmul.mubr.bf16.gmra.mxu0 %v2948_v20 }
 0x40f   :  { %v2750_v14 = vadd.f32 %v2749_v37, %v6059_v5  ;;  %v2886_v63 = vpack.c.bf16 %v2748_v23, %v2744_v28 }
 0x410   :  { %v2753_v62 = vpop.f32.mrf.mxu1 }
 0x411   :  { %v2887_v55 = vpack.c.bf16 %v2750_v14, %v2746_v6  ;;  %v2950_v54 = vmax.bf16 %v4949_v1, %v2886_v63  ;;  %v2754_v15 = vadd.f32 %v2753_v62, %v6056_v16 }
 0x412   :  { %v2755_v24 = vpop.f32.mrf.mxu1 }
 0x413   :  { %v2951_v60 = vmax.bf16 %v4949_v1, %v2887_v55  ;;  %v2756_v29 = vadd.f32 %v2755_v24, %v6059_v5 }
 0x414   :  { %v2757_v52 = vpop.f32.mrf.mxu1 }
 0x415   :  { %v2758_v11 = vadd.f32 %v2757_v52, %v6056_v16  ;;  %3426 = vmatprep.mubr.bf16.mxu0 %v2951_v60  ;;  %v3655_v60 = vld [vmem:[%s6964_s11] sm:$0x3] }
 0x416   :  { %v2759_v9 = vpop.f32.mrf.mxu1  ;;  %3427 = vmatmul.mubr.bf16.gmra.mxu0 %v2950_v54 }
 0x417   :  { %v2760_v32 = vadd.f32 %v2759_v9, %v6059_v5  ;;  %v2888_v12 = vpack.c.bf16 %v2758_v11, %v2754_v15 }
 0x418   :  { %v2763_v45 = vpop.f32.mrf.mxu1 }
 0x419   :  { %v2889_v42 = vpack.c.bf16 %v2760_v32, %v2756_v29  ;;  %v2952_v13 = vmax.bf16 %v4949_v1, %v2888_v12  ;;  %v2764_v31 = vadd.f32 %v2763_v45, %v6056_v16  ;;  %v6278_v29 = vrot.slane %v3655_v60, %v5296_v21 }
 0x41a   :  { %v2765_v4 = vpop.f32.mrf.mxu1 }
 0x41b   :  { %v2953_v35 = vmax.bf16 %v4949_v1, %v2889_v42  ;;  %v2766_v43 = vadd.f32 %v2765_v4, %v6059_v5  ;;  %v6281_v42 = vrot.slane %v3655_v60, %v5291_v19 }
 0x41c   :  { %v2767_v18 = vpop.f32.mrf.mxu1 }
 0x41d   :  { %v2768_v30 = vadd.f32 %v2767_v18, %v6056_v16  ;;  %3436 = vmatprep.mubr.bf16.mxu0 %v2953_v35 }
 0x41e   :  { %v2769_v0 = vpop.f32.mrf.mxu1  ;;  %3437 = vmatmul.mubr.bf16.gmra.mxu0 %v2952_v13 }
 0x41f   :  { %v2770_v41 = vadd.f32 %v2769_v0, %v6059_v5  ;;  %v2890_v26 = vpack.c.bf16 %v2768_v30, %v2764_v31 }
 0x420   :  { %v2773_v61 = vpop.f32.mrf.mxu1 }
 0x421   :  { %v2891_v47 = vpack.c.bf16 %v2770_v41, %v2766_v43  ;;  %v2954_v39 = vmax.bf16 %v4949_v1, %v2890_v26  ;;  %v2774_v53 = vadd.f32 %v2773_v61, %v6056_v16 }
 0x422   :  { %v2775_v27 = vpop.f32.mrf.mxu1 }
 0x423   :  { %v2955_v40 = vmax.bf16 %v4949_v1, %v2891_v47  ;;  %v2776_v59 = vadd.f32 %v2775_v27, %v6059_v5 }
 0x424   :  { %v2777_v36 = vpop.f32.mrf.mxu1 }
 0x425   :  { %v2778_v38 = vadd.f32 %v2777_v36, %v6056_v16  ;;  %3446 = vmatprep.mubr.bf16.mxu0 %v2955_v40 }
 0x426   :  { %v2779_v7 = vpop.f32.mrf.mxu1  ;;  %v3208_v51 = vpop.f32.mrf.mxu0  ;;  %3447 = vmatmul.mubr.bf16.gmra.mxu0 %v2954_v39 }
 0x427   :  { %v2780_v58 = vadd.f32 %v2779_v7, %v6059_v5  ;;  %v2892_v22 = vpack.c.bf16 %v2778_v38, %v2774_v53  ;;  %v3209_v3 = vadd.f32 %v3208_v51, %v6257_v57 }
 0x428   :  { %v2783_v44 = vpop.f32.mrf.mxu1  ;;  %v3210_v46 = vpop.f32.mrf.mxu0 }
 0x429   :  { %v2893_v56 = vpack.c.bf16 %v2780_v58, %v2776_v59  ;;  %v2956_v17 = vmax.bf16 %v4949_v1, %v2892_v22  ;;  %v3211_v20 = vadd.f32 %v3210_v46, %v6260_v10  ;;  %v2784_v37 = vadd.f32 %v2783_v44, %v6056_v16 }
 0x42a   :  { %v2785_v34 = vpop.f32.mrf.mxu1  ;;  %v3212_v50 = vpop.f32.mrf.mxu0 }
 0x42b   :  { %v3213_v25 = vadd.f32 %v3212_v50, %v6257_v57  ;;  %v2957_v48 = vmax.bf16 %v4949_v1, %v2893_v56  ;;  %v2786_v63 = vadd.f32 %v2785_v34, %v6059_v5 }
 0x42c   :  { %v2787_v49 = vpop.f32.mrf.mxu1  ;;  %v3214_v33 = vpop.f32.mrf.mxu0 }
 0x42d   :  { %v3527_v2 = vpack.c.bf16 %v3213_v25, %v3209_v3  ;;  %v2788_v23 = vadd.f32 %v2787_v49, %v6056_v16  ;;  %v3215_v28 = vadd.f32 %v3214_v33, %v6260_v10  ;;  %3456 = vmatprep.mubr.bf16.mxu0 %v2957_v48 }
 0x42e   :  { %v2789_v6 = vpop.f32.mrf.mxu1  ;;  %v3218_v14 = vpop.f32.mrf.mxu0  ;;  %3457 = vmatmul.mubr.bf16.gmra.mxu0 %v2956_v17 }
 0x42f   :  { %v3591_v62 = vmax.bf16 %v4949_v1, %v3527_v2  ;;  %v3528_v55 = vpack.c.bf16 %v3215_v28, %v3211_v20  ;;  %v2790_v24 = vadd.f32 %v2789_v6, %v6059_v5  ;;  %v2894_v54 = vpack.c.bf16 %v2788_v23, %v2784_v37 }
 0x430   :  { %v2793_v52 = vpop.f32.mrf.mxu1  ;;  %v3220_v11 = vpop.f32.mrf.mxu0  ;;  %v3219_v4 = vadd.f32 %v3218_v14, %v6257_v57 }
 0x431   :  { %v3592_v15 = vmax.bf16 %v4949_v1, %v3528_v55  ;;  %v2895_v9 = vpack.c.bf16 %v2790_v24, %v2786_v63  ;;  %v3656_v45 = vunpack.c.l.bf16 %v3591_v62  ;;  %v2958_v30 = vmax.bf16 %v4949_v1, %v2894_v54 }
 0x432   :  { %v2795_v32 = vpop.f32.mrf.mxu1  ;;  %v3222_v12 = vpop.f32.mrf.mxu0  ;;  %v3221_v31 = vadd.f32 %v3220_v11, %v6260_v10  ;;  %v3658_v43 = vunpack.c.h.bf16 %v3591_v62  ;;  %v2794_v27 = vadd.f32 %v2793_v52, %v6056_v16 }
 0x433   :  { %v3223_v35 = vadd.f32 %v3222_v12, %v6257_v57  ;;  %v2959_v13 = vmax.bf16 %v4949_v1, %v2895_v9  ;;  %v3657_v18 = vunpack.c.l.bf16 %v3592_v15  ;;  %v3659_v41 = vunpack.c.h.bf16 %v3592_v15 }
 0x434   :  { %v2797_v0 = vpop.f32.mrf.mxu1  ;;  %v3224_v21 = vpop.f32.mrf.mxu0  ;;  %v2796_v40 = vadd.f32 %v2795_v32, %v6059_v5  ;;  %v3795_v8 = vmul.f32 %v6281_v42, %v3656_v45  ;;  %v3797_v34 = vmul.f32 %v6281_v42, %v3658_v43 }
 0x435   :  { %v3529_v26 = vpack.c.bf16 %v3223_v35, %v3219_v4  ;;  %v2798_v61 = vadd.f32 %v2797_v0, %v6056_v16  ;;  %v3225_v19 = vadd.f32 %v3224_v21, %v6260_v10  ;;  %3466 = vmatprep.mubr.bf16.mxu0 %v2959_v13  ;;  %v3796_v47 = vmul.f32 %v6278_v29, %v3657_v18 }
 0x436   :  { %v2799_v39 = vpop.f32.mrf.mxu1  ;;  %v3228_v36 = vpop.f32.mrf.mxu0  ;;  %3467 = vmatmul.mubr.bf16.gmra.mxu0 %v2958_v30  ;;  %v3798_v51 = vmul.f32 %v6278_v29, %v3659_v41 }
 0x437   :  { %v3593_v38 = vmax.bf16 %v4949_v1, %v3529_v26  ;;  %v3530_v53 = vpack.c.bf16 %v3225_v19, %v3221_v31  ;;  %v2800_v7 = vadd.f32 %v2799_v39, %v6059_v5  ;;  %v2896_v59 = vpack.c.bf16 %v2798_v61, %v2794_v27 }
 0x438   :  { %v2803_v58 = vpop.f32.mrf.mxu1  ;;  %v3230_v22 = vpop.f32.mrf.mxu0  ;;  %v3923_v44 = vadd.f32 %v3796_v47, %v3795_v8  ;;  %v3229_v50 = vadd.f32 %v3228_v36, %v6257_v57  ;;  %v3926_v33 = vadd.f32 %v3798_v51, %v3797_v34 }
 0x439   :  { %v3594_v46 = vmax.bf16 %v4949_v1, %v3530_v53  ;;  %v2897_v56 = vpack.c.bf16 %v2800_v7, %v2796_v40  ;;  %v3660_v48 = vunpack.c.l.bf16 %v3593_v38  ;;  %v2960_v2 = vmax.bf16 %v4949_v1, %v2896_v59 }
 0x43a   :  { %3924 = vadd.xlane.f32.xlu0 %v3923_v44  ;;  %v2805_v3 = vpop.f32.mrf.mxu1  ;;  %v3232_v25 = vpop.f32.mrf.mxu0  ;;  %v3231_v23 = vadd.f32 %v3230_v22, %v6260_v10  ;;  %v3662_v6 = vunpack.c.h.bf16 %v3593_v38  ;;  %v2804_v60 = vadd.f32 %v2803_v58, %v6056_v16 }
 0x43b   :  { %v3233_v17 = vadd.f32 %v3232_v25, %v6257_v57  ;;  %v2961_v49 = vmax.bf16 %v4949_v1, %v2897_v56  ;;  %v3661_v20 = vunpack.c.l.bf16 %v3594_v46  ;;  %v3663_v14 = vunpack.c.h.bf16 %v3594_v46 }
 0x43c   :  { %v2807_v28 = vpop.f32.mrf.mxu1  ;;  %v3234_v37 = vpop.f32.mrf.mxu0  ;;  %v2806_v54 = vadd.f32 %v2805_v3, %v6059_v5  ;;  %v3799_v15 = vmul.f32 %v6281_v42, %v3660_v48  ;;  %v3801_v0 = vmul.f32 %v6281_v42, %v3662_v6 }
 0x43d   :  { %v3531_v63 = vpack.c.bf16 %v3233_v17, %v3229_v50  ;;  %v2808_v62 = vadd.f32 %v2807_v28, %v6056_v16  ;;  %v3235_v55 = vadd.f32 %v3234_v37, %v6260_v10  ;;  %3476 = vmatprep.mubr.bf16.mxu0 %v2961_v49  ;;  %v3800_v24 = vmul.f32 %v6278_v29, %v3661_v20 }
 0x43e   :  { %3927 = vadd.xlane.f32.xlu0 %v3926_v33  ;;  %v2809_v52 = vpop.f32.mrf.mxu1  ;;  %v3238_v11 = vpop.f32.mrf.mxu0  ;;  %3477 = vmatmul.mubr.bf16.gmra.mxu0 %v2960_v2  ;;  %v3802_v45 = vmul.f32 %v6278_v29, %v3663_v14 }
 0x43f   :  { %v3595_v9 = vmax.bf16 %v4949_v1, %v3531_v63  ;;  %v3532_v32 = vpack.c.bf16 %v3235_v55, %v3231_v23  ;;  %v2810_v12 = vadd.f32 %v2809_v52, %v6059_v5  ;;  %v2898_v4 = vpack.c.bf16 %v2808_v62, %v2804_v60 }
 0x440   :  { %v2813_v35 = vpop.f32.mrf.mxu1  ;;  %v3240_v13 = vpop.f32.mrf.mxu0  ;;  %v3929_v18 = vadd.f32 %v3800_v24, %v3799_v15  ;;  %v3239_v21 = vadd.f32 %v3238_v11, %v6257_v57  ;;  %v3932_v27 = vadd.f32 %v3802_v45, %v3801_v0 }
 0x441   :  { %v3596_v30 = vmax.bf16 %v4949_v1, %v3532_v32  ;;  %v2899_v31 = vpack.c.bf16 %v2810_v12, %v2806_v54  ;;  %v3666_v26 = vunpack.c.h.bf16 %v3595_v9  ;;  %v3664_v61 = vunpack.c.l.bf16 %v3595_v9 }
 0x442   :  { %3930 = vadd.xlane.f32.xlu1 %v3929_v18  ;;  %v2815_v43 = vpop.f32.mrf.mxu1  ;;  %v3242_v41 = vpop.f32.mrf.mxu0  ;;  %v2962_v39 = vmax.bf16 %v4949_v1, %v2898_v4  ;;  %v2814_v36 = vadd.f32 %v2813_v35, %v6056_v16  ;;  %v3241_v8 = vadd.f32 %v3240_v13, %v6260_v10 }
 0x443   :  { %v3243_v19 = vadd.f32 %v3242_v41, %v6257_v57  ;;  %v2963_v47 = vmax.bf16 %v4949_v1, %v2899_v31  ;;  %v3667_v40 = vunpack.c.h.bf16 %v3596_v30  ;;  %v3665_v7 = vunpack.c.l.bf16 %v3596_v30 }
 0x444   :  { %v2817_v38 = vpop.f32.mrf.mxu1  ;;  %v3244_v53 = vpop.f32.mrf.mxu0  ;;  %v3805_v56 = vmul.f32 %v6281_v42, %v3666_v26  ;;  %v3803_v34 = vmul.f32 %v6281_v42, %v3664_v61  ;;  %v2816_v3 = vadd.f32 %v2815_v43, %v6059_v5 }
 0x445   :  { %v3533_v51 = vpack.c.bf16 %v3243_v19, %v3239_v21  ;;  %v2818_v59 = vadd.f32 %v2817_v38, %v6056_v16  ;;  %v3245_v58 = vadd.f32 %v3244_v53, %v6260_v10  ;;  %3486 = vmatprep.mubr.bf16.mxu0 %v2963_v47  ;;  %v3806_v22 = vmul.f32 %v6278_v29, %v3667_v40 }
 0x446   :  { %3933 = vadd.xlane.f32.xlu1 %v3932_v27  ;;  %v2819_v44 = vpop.f32.mrf.mxu1  ;;  %v3248_v46 = vpop.f32.mrf.mxu0  ;;  %3487 = vmatmul.mubr.bf16.gmra.mxu0 %v2962_v39  ;;  %v3804_v50 = vmul.f32 %v6278_v29, %v3665_v7 }
 0x447   :  { %v3597_v25 = vmax.bf16 %v4949_v1, %v3533_v51  ;;  %v3534_v48 = vpack.c.bf16 %v3245_v58, %v3241_v8  ;;  %v2820_v17 = vadd.f32 %v2819_v44, %v6059_v5  ;;  %v2900_v49 = vpack.c.bf16 %v2818_v59, %v2814_v36 }
 0x448   :  { %v2823_v33 = vpop.f32.mrf.mxu1  ;;  %v3250_v20 = vpop.f32.mrf.mxu0  ;;  %v3938_v2 = vadd.f32 %v3806_v22, %v3805_v56  ;;  %v3935_v23 = vadd.f32 %v3804_v50, %v3803_v34  ;;  %v3249_v55 = vadd.f32 %v3248_v46, %v6257_v57 }
 0x449   :  { %v3598_v28 = vmax.bf16 %v4949_v1, %v3534_v48  ;;  %v2901_v37 = vpack.c.bf16 %v2820_v17, %v2816_v3  ;;  %v3670_v63 = vunpack.c.h.bf16 %v3597_v25  ;;  %v3668_v62 = vunpack.c.l.bf16 %v3597_v25 }
 0x44a   :  { %3939 = vadd.xlane.f32.xlu1 %v3938_v2  ;;  %3936 = vadd.xlane.f32.xlu0 %v3935_v23  ;;  %v2825_v6 = vpop.f32.mrf.mxu1  ;;  %v3252_v14 = vpop.f32.mrf.mxu0  ;;  %v2964_v52 = vmax.bf16 %v4949_v1, %v2900_v49  ;;  %v3251_v11 = vadd.f32 %v3250_v20, %v6260_v10  ;;  %v2824_v13 = vadd.f32 %v2823_v33, %v6056_v16 }
 0x44b   :  { %v3253_v24 = vadd.f32 %v3252_v14, %v6257_v57  ;;  %v2965_v60 = vmax.bf16 %v4949_v1, %v2901_v37  ;;  %v3671_v54 = vunpack.c.h.bf16 %v3598_v28  ;;  %v3669_v32 = vunpack.c.l.bf16 %v3598_v28 }
 0x44c   :  { %v2827_v15 = vpop.f32.mrf.mxu1  ;;  %v3254_v9 = vpop.f32.mrf.mxu0  ;;  %v3809_v31 = vmul.f32 %v6281_v42, %v3670_v63  ;;  %v3807_v0 = vmul.f32 %v6281_v42, %v3668_v62  ;;  %v2826_v43 = vadd.f32 %v2825_v6, %v6059_v5 }
 0x44d   :  { %v3535_v12 = vpack.c.bf16 %v3253_v24, %v3249_v55  ;;  %v2828_v45 = vadd.f32 %v2827_v15, %v6056_v16  ;;  %v3255_v4 = vadd.f32 %v3254_v9, %v6260_v10  ;;  %3496 = vmatprep.mubr.bf16.mxu0 %v2965_v60  ;;  %v3810_v35 = vmul.f32 %v6278_v29, %v3671_v54 }
 0x44e   :  { %v2829_v18 = vpop.f32.mrf.mxu1  ;;  %v3258_v30 = vpop.f32.mrf.mxu0  ;;  %3497 = vmatmul.mubr.bf16.gmra.mxu0 %v2964_v52  ;;  %v3808_v21 = vmul.f32 %v6278_v29, %v3669_v32 }
 0x44f   :  { %v3599_v41 = vmax.bf16 %v4949_v1, %v3535_v12  ;;  %v3536_v26 = vpack.c.bf16 %v3255_v4, %v3251_v11  ;;  %v2830_v61 = vadd.f32 %v2829_v18, %v6059_v5  ;;  %v2902_v19 = vpack.c.bf16 %v2828_v45, %v2824_v13 }
 0x450   :  { %v2833_v47 = vpop.f32.mrf.mxu1  ;;  %v3260_v27 = vpop.f32.mrf.mxu0  ;;  %v3944_v40 = vadd.f32 %v3810_v35, %v3809_v31  ;;  %v3941_v39 = vadd.f32 %v3808_v21, %v3807_v0  ;;  %v3259_v59 = vadd.f32 %v3258_v30, %v6257_v57 }
 0x451   :  { %v3600_v36 = vmax.bf16 %v4949_v1, %v3536_v26  ;;  %v2903_v8 = vpack.c.bf16 %v2830_v61, %v2826_v43  ;;  %v3674_v7 = vunpack.c.h.bf16 %v3599_v41  ;;  %v3672_v51 = vunpack.c.l.bf16 %v3599_v41 }
 0x452   :  { %3945 = vadd.xlane.f32.xlu1 %v3944_v40  ;;  %3942 = vadd.xlane.f32.xlu0 %v3941_v39  ;;  %v2835_v38 = vpop.f32.mrf.mxu1  ;;  %v3262_v53 = vpop.f32.mrf.mxu0  ;;  %v2966_v46 = vmax.bf16 %v4949_v1, %v2902_v19  ;;  %v3261_v56 = vadd.f32 %v3260_v27, %v6260_v10  ;;  %v2834_v33 = vadd.f32 %v2833_v47, %v6056_v16 }
 0x453   :  { %v3263_v58 = vadd.f32 %v3262_v53, %v6257_v57  ;;  %v2967_v22 = vmax.bf16 %v4949_v1, %v2903_v8  ;;  %v3675_v44 = vunpack.c.h.bf16 %v3600_v36  ;;  %v3673_v3 = vunpack.c.l.bf16 %v3600_v36 }
 0x454   :  { %v2837_v34 = vpop.f32.mrf.mxu1  ;;  %v3264_v50 = vpop.f32.mrf.mxu0  ;;  %v3813_v23 = vmul.f32 %v6281_v42, %v3674_v7  ;;  %v3811_v28 = vmul.f32 %v6281_v42, %v3672_v51  ;;  %v2836_v6 = vadd.f32 %v2835_v38, %v6059_v5 }
 0x455   :  { %v3537_v25 = vpack.c.bf16 %v3263_v58, %v3259_v59  ;;  %v2838_v48 = vadd.f32 %v2837_v34, %v6056_v16  ;;  %v3265_v17 = vadd.f32 %v3264_v50, %v6260_v10  ;;  %3506 = vmatprep.mubr.bf16.mxu0 %v2967_v22  ;;  %v3814_v49 = vmul.f32 %v6278_v29, %v3675_v44 }
 0x456   :  { %v2839_v20 = vpop.f32.mrf.mxu1  ;;  %v3268_v2 = vpop.f32.mrf.mxu0  ;;  %3507 = vmatmul.mubr.bf16.gmra.mxu0 %v2966_v46  ;;  %v3812_v37 = vmul.f32 %v6278_v29, %v3673_v3 }
 0x457   :  { %v3601_v14 = vmax.bf16 %v4949_v1, %v3537_v25  ;;  %v3538_v63 = vpack.c.bf16 %v3265_v17, %v3261_v56  ;;  %v2840_v62 = vadd.f32 %v2839_v20, %v6059_v5  ;;  %v2904_v55 = vpack.c.bf16 %v2838_v48, %v2834_v33 }
 0x458   :  { %v3270_v24 = vpop.f32.mrf.mxu0  ;;  %v3950_v60 = vadd.f32 %v3814_v49, %v3813_v23  ;;  %v3947_v16 = vadd.f32 %v3812_v37, %v3811_v28  ;;  %v3269_v11 = vadd.f32 %v3268_v2, %v6257_v57 }
 0x459   :  { %v3602_v54 = vmax.bf16 %v4949_v1, %v3538_v63  ;;  %v2905_v52 = vpack.c.bf16 %v2840_v62, %v2836_v6  ;;  %v3678_v9 = vunpack.c.h.bf16 %v3601_v14  ;;  %v3676_v32 = vunpack.c.l.bf16 %v3601_v14 }
 0x45a   :  { %3951 = vadd.xlane.f32.xlu1 %v3950_v60  ;;  %3948 = vadd.xlane.f32.xlu0 %v3947_v16  ;;  %v3272_v15 = vpop.f32.mrf.mxu0  ;;  %v2968_v35 = vmax.bf16 %v4949_v1, %v2904_v55  ;;  %v3271_v13 = vadd.f32 %v3270_v24, %v6260_v10 }
 0x45b   :  { %v3273_v12 = vadd.f32 %v3272_v15, %v6257_v57  ;;  %v2969_v45 = vmax.bf16 %v4949_v1, %v2905_v52  ;;  %v3679_v4 = vunpack.c.h.bf16 %v3602_v54  ;;  %v3677_v5 = vunpack.c.l.bf16 %v3602_v54 }
 0x45c   :  { %v3274_v18 = vpop.f32.mrf.mxu0  ;;  %v3817_v30 = vmul.f32 %v6281_v42, %v3678_v9  ;;  %v3815_v26 = vmul.f32 %v6281_v42, %v3676_v32 }
 0x45d   :  { %v3539_v31 = vpack.c.bf16 %v3273_v12, %v3269_v11  ;;  %v3275_v0 = vadd.f32 %v3274_v18, %v6260_v10  ;;  %3516 = vmatprep.mubr.bf16.mxu0 %v2969_v45  ;;  %v3818_v21 = vmul.f32 %v6278_v29, %v3679_v4  ;;  %v3816_v43 = vmul.f32 %v6278_v29, %v3677_v5 }
 0x45e   :  { %v3278_v41 = vpop.f32.mrf.mxu0  ;;  %3517 = vmatmul.mubr.bf16.gmra.mxu0 %v2968_v35 }
 0x45f   :  { %v3603_v61 = vmax.bf16 %v4949_v1, %v3539_v31  ;;  %v3540_v19 = vpack.c.bf16 %v3275_v0, %v3271_v13  ;;  %v3956_v47 = vadd.f32 %v3818_v21, %v3817_v30  ;;  %v3953_v40 = vadd.f32 %v3816_v43, %v3815_v26 }
 0x460   :  { %v3280_v27 = vpop.f32.mrf.mxu0  ;;  %v3279_v53 = vadd.f32 %v3278_v41, %v6257_v57 }
 0x461   :  { %v3604_v39 = vmax.bf16 %v4949_v1, %v3540_v19  ;;  %3957 = vadd.xlane.f32.xlu1 %v3956_v47  ;;  %v3682_v36 = vunpack.c.h.bf16 %v3603_v61  ;;  %3954 = vadd.xlane.f32.xlu0 %v3953_v40  ;;  %v3680_v38 = vunpack.c.l.bf16 %v3603_v61  ;;  %v3281_v58 = vadd.f32 %v3280_v27, %v6260_v10 }
 0x462   :  { %v3282_v8 = vpop.f32.mrf.mxu0 }
 0x463   :  { %v3283_v7 = vadd.f32 %v3282_v8, %v6257_v57  ;;  %v3683_v51 = vunpack.c.h.bf16 %v3604_v39  ;;  %v3681_v59 = vunpack.c.l.bf16 %v3604_v39  ;;  %v3821_v44 = vmul.f32 %v6281_v42, %v3682_v36 }
 0x464   :  { %v3284_v22 = vpop.f32.mrf.mxu0  ;;  %v3819_v25 = vmul.f32 %v6281_v42, %v3680_v38 }
 0x465   :  { %v3541_v46 = vpack.c.bf16 %v3283_v7, %v3279_v53  ;;  %v3285_v56 = vadd.f32 %v3284_v22, %v6260_v10  ;;  %v3822_v34 = vmul.f32 %v6278_v29, %v3683_v51  ;;  %v3820_v50 = vmul.f32 %v6278_v29, %v3681_v59 }
 0x466   :  { %v3288_v3 = vpop.f32.mrf.mxu0 }
 0x467   :  { %v3605_v48 = vmax.bf16 %v4949_v1, %v3541_v46  ;;  %v3542_v17 = vpack.c.bf16 %v3285_v56, %v3281_v58  ;;  %v3962_v49 = vadd.f32 %v3822_v34, %v3821_v44  ;;  %v3959_v20 = vadd.f32 %v3820_v50, %v3819_v25 }
 0x468   :  { %v3290_v33 = vpop.f32.mrf.mxu0  ;;  %v3289_v6 = vadd.f32 %v3288_v3, %v6257_v57 }
 0x469   :  { %v3606_v2 = vmax.bf16 %v4949_v1, %v3542_v17  ;;  %3963 = vadd.xlane.f32.xlu1 %v3962_v49  ;;  %v3686_v23 = vunpack.c.h.bf16 %v3605_v48  ;;  %3960 = vadd.xlane.f32.xlu0 %v3959_v20  ;;  %v3684_v37 = vunpack.c.l.bf16 %v3605_v48  ;;  %v3291_v55 = vadd.f32 %v3290_v33, %v6260_v10 }
 0x46a   :  { %v3292_v28 = vpop.f32.mrf.mxu0 }
 0x46b   :  { %v3293_v14 = vadd.f32 %v3292_v28, %v6257_v57  ;;  %v3687_v63 = vunpack.c.h.bf16 %v3606_v2  ;;  %v3685_v62 = vunpack.c.l.bf16 %v3606_v2  ;;  %v3825_v60 = vmul.f32 %v6281_v42, %v3686_v23 }
 0x46c   :  { %v3294_v24 = vpop.f32.mrf.mxu0  ;;  %v3823_v9 = vmul.f32 %v6281_v42, %v3684_v37 }
 0x46d   :  { %v3543_v16 = vpack.c.bf16 %v3293_v14, %v3289_v6  ;;  %v3295_v54 = vadd.f32 %v3294_v24, %v6260_v10  ;;  %v3826_v52 = vmul.f32 %v6278_v29, %v3687_v63  ;;  %v3824_v11 = vmul.f32 %v6278_v29, %v3685_v62 }
 0x46e   :  { %v3298_v15 = vpop.f32.mrf.mxu0 }
 0x46f   :  { %v3607_v32 = vmax.bf16 %v4949_v1, %v3543_v16  ;;  %v3544_v12 = vpack.c.bf16 %v3295_v54, %v3291_v55  ;;  %v3968_v45 = vadd.f32 %v3826_v52, %v3825_v60  ;;  %v3965_v5 = vadd.f32 %v3824_v11, %v3823_v9 }
 0x470   :  { %v3300_v4 = vpop.f32.mrf.mxu0  ;;  %v3299_v31 = vadd.f32 %v3298_v15, %v6257_v57 }
 0x471   :  { %v3608_v35 = vmax.bf16 %v4949_v1, %v3544_v12  ;;  %3969 = vadd.xlane.f32.xlu1 %v3968_v45  ;;  %v3690_v13 = vunpack.c.h.bf16 %v3607_v32  ;;  %3966 = vadd.xlane.f32.xlu0 %v3965_v5  ;;  %v3688_v30 = vunpack.c.l.bf16 %v3607_v32  ;;  %v3301_v41 = vadd.f32 %v3300_v4, %v6260_v10 }
 0x472   :  { %v3302_v18 = vpop.f32.mrf.mxu0 }
 0x473   :  { %v3303_v0 = vadd.f32 %v3302_v18, %v6257_v57  ;;  %v3691_v21 = vunpack.c.h.bf16 %v3608_v35  ;;  %v3689_v43 = vunpack.c.l.bf16 %v3608_v35  ;;  %v3829_v61 = vmul.f32 %v6281_v42, %v3690_v13 }
 0x474   :  { %v3304_v26 = vpop.f32.mrf.mxu0  ;;  %v3827_v36 = vmul.f32 %v6281_v42, %v3688_v30 }
 0x475   :  { %v3545_v19 = vpack.c.bf16 %v3303_v0, %v3299_v31  ;;  %v3305_v47 = vadd.f32 %v3304_v26, %v6260_v10  ;;  %v3830_v27 = vmul.f32 %v6278_v29, %v3691_v21  ;;  %v3828_v40 = vmul.f32 %v6278_v29, %v3689_v43 }
 0x476   :  { %v3308_v39 = vpop.f32.mrf.mxu0 }
 0x477   :  { %v3609_v8 = vmax.bf16 %v4949_v1, %v3545_v19  ;;  %v3546_v38 = vpack.c.bf16 %v3305_v47, %v3301_v41  ;;  %v3974_v53 = vadd.f32 %v3830_v27, %v3829_v61  ;;  %v3971_v51 = vadd.f32 %v3828_v40, %v3827_v36 }
 0x478   :  { %v3310_v7 = vpop.f32.mrf.mxu0  ;;  %v3309_v46 = vadd.f32 %v3308_v39, %v6257_v57 }
 0x479   :  { %v3610_v59 = vmax.bf16 %v4949_v1, %v3546_v38  ;;  %3975 = vadd.xlane.f32.xlu1 %v3974_v53  ;;  %v3694_v58 = vunpack.c.h.bf16 %v3609_v8  ;;  %3972 = vadd.xlane.f32.xlu0 %v3971_v51  ;;  %v3692_v44 = vunpack.c.l.bf16 %v3609_v8  ;;  %v3311_v3 = vadd.f32 %v3310_v7, %v6260_v10 }
 0x47a   :  { %v3312_v22 = vpop.f32.mrf.mxu0 }
 0x47b   :  { %v3313_v56 = vadd.f32 %v3312_v22, %v6257_v57  ;;  %v3695_v34 = vunpack.c.h.bf16 %v3610_v59  ;;  %v3693_v50 = vunpack.c.l.bf16 %v3610_v59  ;;  %v3833_v48 = vmul.f32 %v6281_v42, %v3694_v58 }
 0x47c   :  { %v3314_v25 = vpop.f32.mrf.mxu0  ;;  %v3831_v23 = vmul.f32 %v6281_v42, %v3692_v44 }
 0x47d   :  { %v3547_v17 = vpack.c.bf16 %v3313_v56, %v3309_v46  ;;  %v3315_v49 = vadd.f32 %v3314_v25, %v6260_v10  ;;  %v3834_v33 = vmul.f32 %v6278_v29, %v3695_v34  ;;  %v3832_v20 = vmul.f32 %v6278_v29, %v3693_v50 }
 0x47e   :  { %v3318_v2 = vpop.f32.mrf.mxu0 }
 0x47f   :  { %v3611_v28 = vmax.bf16 %v4949_v1, %v3547_v17  ;;  %v3548_v37 = vpack.c.bf16 %v3315_v49, %v3311_v3  ;;  %v3980_v6 = vadd.f32 %v3834_v33, %v3833_v48  ;;  %v3977_v63 = vadd.f32 %v3832_v20, %v3831_v23 }
 0x480   :  { %v3320_v14 = vpop.f32.mrf.mxu0  ;;  %v3319_v16 = vadd.f32 %v3318_v2, %v6257_v57 }
 0x481   :  { %v3612_v62 = vmax.bf16 %v4949_v1, %v3548_v37  ;;  %3981 = vadd.xlane.f32.xlu1 %v3980_v6  ;;  %v3698_v55 = vunpack.c.h.bf16 %v3611_v28  ;;  %3978 = vadd.xlane.f32.xlu0 %v3977_v63  ;;  %v3696_v60 = vunpack.c.l.bf16 %v3611_v28  ;;  %v3321_v15 = vadd.f32 %v3320_v14, %v6260_v10 }
 0x482   :  { %v3322_v24 = vpop.f32.mrf.mxu0 }
 0x483   :  { %v3323_v54 = vadd.f32 %v3322_v24, %v6257_v57  ;;  %v3699_v52 = vunpack.c.h.bf16 %v3612_v62  ;;  %v3697_v11 = vunpack.c.l.bf16 %v3612_v62  ;;  %v3837_v32 = vmul.f32 %v6281_v42, %v3698_v55 }
 0x484   :  { %v3324_v9 = vpop.f32.mrf.mxu0  ;;  %v3835_v13 = vmul.f32 %v6281_v42, %v3696_v60 }
 0x485   :  { %v3549_v12 = vpack.c.bf16 %v3323_v54, %v3319_v16  ;;  %v3325_v45 = vadd.f32 %v3324_v9, %v6260_v10  ;;  %v3838_v4 = vmul.f32 %v6278_v29, %v3699_v52  ;;  %v3836_v5 = vmul.f32 %v6278_v29, %v3697_v11 }
 0x486   :  { %v3328_v35 = vpop.f32.mrf.mxu0 }
 0x487   :  { %v3613_v18 = vmax.bf16 %v4949_v1, %v3549_v12  ;;  %v3550_v30 = vpack.c.bf16 %v3325_v45, %v3321_v15  ;;  %v3986_v31 = vadd.f32 %v3838_v4, %v3837_v32  ;;  %v3983_v21 = vadd.f32 %v3836_v5, %v3835_v13 }
 0x488   :  { %v3330_v0 = vpop.f32.mrf.mxu0  ;;  %v3329_v19 = vadd.f32 %v3328_v35, %v6257_v57 }
 0x489   :  { %v3614_v43 = vmax.bf16 %v4949_v1, %v3550_v30  ;;  %3987 = vadd.xlane.f32.xlu1 %v3986_v31  ;;  %v3702_v41 = vunpack.c.h.bf16 %v3613_v18  ;;  %3984 = vadd.xlane.f32.xlu0 %v3983_v21  ;;  %v3700_v61 = vunpack.c.l.bf16 %v3613_v18  ;;  %v3331_v39 = vadd.f32 %v3330_v0, %v6260_v10 }
 0x48a   :  { %v3332_v26 = vpop.f32.mrf.mxu0 }
 0x48b   :  { %v3333_v47 = vadd.f32 %v3332_v26, %v6257_v57  ;;  %v3703_v27 = vunpack.c.h.bf16 %v3614_v43  ;;  %v3701_v40 = vunpack.c.l.bf16 %v3614_v43  ;;  %v3841_v8 = vmul.f32 %v6281_v42, %v3702_v41 }
 0x48c   :  { %v3334_v36 = vpop.f32.mrf.mxu0  ;;  %v3839_v58 = vmul.f32 %v6281_v42, %v3700_v61 }
 0x48d   :  { %v3551_v38 = vpack.c.bf16 %v3333_v47, %v3329_v19  ;;  %v3335_v53 = vadd.f32 %v3334_v36, %v6260_v10  ;;  %v3842_v7 = vmul.f32 %v6278_v29, %v3703_v27  ;;  %v3840_v51 = vmul.f32 %v6278_v29, %v3701_v40 }
 0x48e   :  { %v3338_v59 = vpop.f32.mrf.mxu0 }
 0x48f   :  { %v3615_v22 = vmax.bf16 %v4949_v1, %v3551_v38  ;;  %v3552_v44 = vpack.c.bf16 %v3335_v53, %v3331_v39  ;;  %v3992_v46 = vadd.f32 %v3842_v7, %v3841_v8  ;;  %v3989_v34 = vadd.f32 %v3840_v51, %v3839_v58 }
 0x490   :  { %v3340_v56 = vpop.f32.mrf.mxu0  ;;  %v3339_v17 = vadd.f32 %v3338_v59, %v6257_v57 }
 0x491   :  { %v3616_v50 = vmax.bf16 %v4949_v1, %v3552_v44  ;;  %3993 = vadd.xlane.f32.xlu1 %v3992_v46  ;;  %v3706_v3 = vunpack.c.h.bf16 %v3615_v22  ;;  %3990 = vadd.xlane.f32.xlu0 %v3989_v34  ;;  %v3704_v48 = vunpack.c.l.bf16 %v3615_v22  ;;  %v3341_v2 = vadd.f32 %v3340_v56, %v6260_v10 }
 0x492   :  { %v3342_v25 = vpop.f32.mrf.mxu0 }
 0x493   :  { %v3343_v49 = vadd.f32 %v3342_v25, %v6257_v57  ;;  %v3707_v33 = vunpack.c.h.bf16 %v3616_v50  ;;  %v3705_v20 = vunpack.c.l.bf16 %v3616_v50  ;;  %v3845_v28 = vmul.f32 %v6281_v42, %v3706_v3 }
 0x494   :  { %v3344_v23 = vpop.f32.mrf.mxu0  ;;  %v3843_v55 = vmul.f32 %v6281_v42, %v3704_v48 }
 0x495   :  { %v3553_v37 = vpack.c.bf16 %v3343_v49, %v3339_v17  ;;  %v3345_v6 = vadd.f32 %v3344_v23, %v6260_v10  ;;  %v3846_v14 = vmul.f32 %v6278_v29, %v3707_v33  ;;  %v3844_v63 = vmul.f32 %v6278_v29, %v3705_v20 }
 0x496   :  { %v3348_v62 = vpop.f32.mrf.mxu0 }
 0x497   :  { %v3617_v24 = vmax.bf16 %v4949_v1, %v3553_v37  ;;  %v3554_v60 = vpack.c.bf16 %v3345_v6, %v3341_v2  ;;  %v3998_v16 = vadd.f32 %v3846_v14, %v3845_v28  ;;  %v3995_v52 = vadd.f32 %v3844_v63, %v3843_v55 }
 0x498   :  { %v3350_v54 = vpop.f32.mrf.mxu0  ;;  %v3349_v12 = vadd.f32 %v3348_v62, %v6257_v57 }
 0x499   :  { %v3618_v11 = vmax.bf16 %v4949_v1, %v3554_v60  ;;  %3999 = vadd.xlane.f32.xlu1 %v3998_v16  ;;  %v3710_v15 = vunpack.c.h.bf16 %v3617_v24  ;;  %3996 = vadd.xlane.f32.xlu0 %v3995_v52  ;;  %v3708_v32 = vunpack.c.l.bf16 %v3617_v24  ;;  %v3351_v35 = vadd.f32 %v3350_v54, %v6260_v10 }
 0x49a   :  { %v3352_v9 = vpop.f32.mrf.mxu0 }
 0x49b   :  { %v3353_v45 = vadd.f32 %v3352_v9, %v6257_v57  ;;  %v3711_v4 = vunpack.c.h.bf16 %v3618_v11  ;;  %v3709_v5 = vunpack.c.l.bf16 %v3618_v11  ;;  %v3849_v18 = vmul.f32 %v6281_v42, %v3710_v15 }
 0x49c   :  { %v3354_v13 = vpop.f32.mrf.mxu0  ;;  %v3847_v41 = vmul.f32 %v6281_v42, %v3708_v32 }
 0x49d   :  { %v3555_v30 = vpack.c.bf16 %v3353_v45, %v3349_v12  ;;  %v3355_v31 = vadd.f32 %v3354_v13, %v6260_v10  ;;  %v3850_v0 = vmul.f32 %v6278_v29, %v3711_v4  ;;  %v3848_v21 = vmul.f32 %v6278_v29, %v3709_v5 }
 0x49e   :  { %v3358_v43 = vpop.f32.mrf.mxu0 }
 0x49f   :  { %v3619_v26 = vmax.bf16 %v4949_v1, %v3555_v30  ;;  %v3556_v61 = vpack.c.bf16 %v3355_v31, %v3351_v35  ;;  %v4004_v19 = vadd.f32 %v3850_v0, %v3849_v18  ;;  %v4001_v27 = vadd.f32 %v3848_v21, %v3847_v41 }
 0x4a0   :  { %v3360_v47 = vpop.f32.mrf.mxu0  ;;  %v3359_v38 = vadd.f32 %v3358_v43, %v6257_v57 }
 0x4a1   :  { %v3620_v40 = vmax.bf16 %v4949_v1, %v3556_v61  ;;  %4005 = vadd.xlane.f32.xlu1 %v4004_v19  ;;  %v3714_v39 = vunpack.c.h.bf16 %v3619_v26  ;;  %4002 = vadd.xlane.f32.xlu0 %v4001_v27  ;;  %v3712_v8 = vunpack.c.l.bf16 %v3619_v26  ;;  %v3361_v59 = vadd.f32 %v3360_v47, %v6260_v10 }
 0x4a2   :  { %v3362_v36 = vpop.f32.mrf.mxu0 }
 0x4a3   :  { %v3363_v53 = vadd.f32 %v3362_v36, %v6257_v57  ;;  %v3715_v7 = vunpack.c.h.bf16 %v3620_v40  ;;  %v3713_v51 = vunpack.c.l.bf16 %v3620_v40  ;;  %v3853_v22 = vmul.f32 %v6281_v42, %v3714_v39 }
 0x4a4   :  { %v3364_v58 = vpop.f32.mrf.mxu0  ;;  %v3851_v3 = vmul.f32 %v6281_v42, %v3712_v8 }
 0x4a5   :  { %v3557_v44 = vpack.c.bf16 %v3363_v53, %v3359_v38  ;;  %v3365_v46 = vadd.f32 %v3364_v58, %v6260_v10  ;;  %v3854_v56 = vmul.f32 %v6278_v29, %v3715_v7  ;;  %v3852_v34 = vmul.f32 %v6278_v29, %v3713_v51 }
 0x4a6   :  { %v3368_v50 = vpop.f32.mrf.mxu0 }
 0x4a7   :  { %v3621_v25 = vmax.bf16 %v4949_v1, %v3557_v44  ;;  %v3558_v48 = vpack.c.bf16 %v3365_v46, %v3361_v59  ;;  %v4010_v17 = vadd.f32 %v3854_v56, %v3853_v22  ;;  %v4007_v33 = vadd.f32 %v3852_v34, %v3851_v3 }
 0x4a8   :  { %v3370_v49 = vpop.f32.mrf.mxu0  ;;  %v3369_v37 = vadd.f32 %v3368_v50, %v6257_v57 }
 0x4a9   :  { %v3622_v20 = vmax.bf16 %v4949_v1, %v3558_v48  ;;  %4011 = vadd.xlane.f32.xlu1 %v4010_v17  ;;  %v3718_v2 = vunpack.c.h.bf16 %v3621_v25  ;;  %4008 = vadd.xlane.f32.xlu0 %v4007_v33  ;;  %v3716_v28 = vunpack.c.l.bf16 %v3621_v25  ;;  %v3371_v62 = vadd.f32 %v3370_v49, %v6260_v10 }
 0x4aa   :  { %v3372_v23 = vpop.f32.mrf.mxu0 }
 0x4ab   :  { %v3373_v6 = vadd.f32 %v3372_v23, %v6257_v57  ;;  %v3719_v14 = vunpack.c.h.bf16 %v3622_v20  ;;  %v3717_v63 = vunpack.c.l.bf16 %v3622_v20  ;;  %v3857_v24 = vmul.f32 %v6281_v42, %v3718_v2 }
 0x4ac   :  { %v3374_v55 = vpop.f32.mrf.mxu0  ;;  %v3855_v15 = vmul.f32 %v6281_v42, %v3716_v28 }
 0x4ad   :  { %v3559_v60 = vpack.c.bf16 %v3373_v6, %v3369_v37  ;;  %v3375_v16 = vadd.f32 %v3374_v55, %v6260_v10  ;;  %v3858_v54 = vmul.f32 %v6278_v29, %v3719_v14  ;;  %v3856_v52 = vmul.f32 %v6278_v29, %v3717_v63 }
 0x4ae   :  { %v3378_v11 = vpop.f32.mrf.mxu0 }
 0x4af   :  { %v3623_v9 = vmax.bf16 %v4949_v1, %v3559_v60  ;;  %v3560_v32 = vpack.c.bf16 %v3375_v16, %v3371_v62  ;;  %v4016_v12 = vadd.f32 %v3858_v54, %v3857_v24  ;;  %v4013_v4 = vadd.f32 %v3856_v52, %v3855_v15  ;;  %v6495_v62 = vld [vmem:[#allocation2] ss:$0 sm:$0xff] }
 0x4b0   :  { %v3380_v45 = vpop.f32.mrf.mxu0  ;;  %v3379_v30 = vadd.f32 %v3378_v11, %v6257_v57 }
 0x4b1   :  { %v3624_v5 = vmax.bf16 %v4949_v1, %v3560_v32  ;;  %4017 = vadd.xlane.f32.xlu1 %v4016_v12  ;;  %v3722_v35 = vunpack.c.h.bf16 %v3623_v9  ;;  %4014 = vadd.xlane.f32.xlu0 %v4013_v4  ;;  %v3720_v18 = vunpack.c.l.bf16 %v3623_v9  ;;  %v3381_v43 = vadd.f32 %v3380_v45, %v6260_v10 }
 0x4b2   :  { %v3382_v13 = vpop.f32.mrf.mxu0 }
 0x4b3   :  { %v3383_v31 = vadd.f32 %v3382_v13, %v6257_v57  ;;  %v3723_v0 = vunpack.c.h.bf16 %v3624_v5  ;;  %v3721_v21 = vunpack.c.l.bf16 %v3624_v5  ;;  %v3861_v26 = vmul.f32 %v6281_v42, %v3722_v35 }
 0x4b4   :  { %v3384_v41 = vpop.f32.mrf.mxu0  ;;  %v3859_v39 = vmul.f32 %v6281_v42, %v3720_v18 }
 0x4b5   :  { %v3561_v61 = vpack.c.bf16 %v3383_v31, %v3379_v30  ;;  %v3385_v19 = vadd.f32 %v3384_v41, %v6260_v10  ;;  %v3862_v47 = vmul.f32 %v6278_v29, %v3723_v0  ;;  %v3860_v27 = vmul.f32 %v6278_v29, %v3721_v21 }
 0x4b6   :  { %v3388_v40 = vpop.f32.mrf.mxu0 }
 0x4b7   :  { %v3625_v36 = vmax.bf16 %v4949_v1, %v3561_v61  ;;  %v3562_v8 = vpack.c.bf16 %v3385_v19, %v3381_v43  ;;  %v4022_v38 = vadd.f32 %v3862_v47, %v3861_v26  ;;  %v4019_v7 = vadd.f32 %v3860_v27, %v3859_v39 }
 0x4b8   :  { %v3390_v53 = vpop.f32.mrf.mxu0  ;;  %v3389_v44 = vadd.f32 %v3388_v40, %v6257_v57 }
 0x4b9   :  { %v3626_v51 = vmax.bf16 %v4949_v1, %v3562_v8  ;;  %4023 = vadd.xlane.f32.xlu1 %v4022_v38  ;;  %v3726_v59 = vunpack.c.h.bf16 %v3625_v36  ;;  %4020 = vadd.xlane.f32.xlu0 %v4019_v7  ;;  %v3724_v22 = vunpack.c.l.bf16 %v3625_v36  ;;  %v3391_v50 = vadd.f32 %v3390_v53, %v6260_v10 }
 0x4ba   :  { %v3392_v58 = vpop.f32.mrf.mxu0 }
 0x4bb   :  { %v3393_v46 = vadd.f32 %v3392_v58, %v6257_v57  ;;  %v3727_v56 = vunpack.c.h.bf16 %v3626_v51  ;;  %v3725_v34 = vunpack.c.l.bf16 %v3626_v51  ;;  %v3865_v25 = vmul.f32 %v6281_v42, %v3726_v59 }
 0x4bc   :  { %v3394_v3 = vpop.f32.mrf.mxu0  ;;  %v3863_v2 = vmul.f32 %v6281_v42, %v3724_v22 }
 0x4bd   :  { %v3563_v48 = vpack.c.bf16 %v3393_v46, %v3389_v44  ;;  %v3395_v17 = vadd.f32 %v3394_v3, %v6260_v10  ;;  %v3866_v49 = vmul.f32 %v6278_v29, %v3727_v56  ;;  %v3864_v33 = vmul.f32 %v6278_v29, %v3725_v34 }
 0x4be   :  { %v3398_v20 = vpop.f32.mrf.mxu0 }
 0x4bf   :  { %v3627_v23 = vmax.bf16 %v4949_v1, %v3563_v48  ;;  %v3564_v28 = vpack.c.bf16 %v3395_v17, %v3391_v50  ;;  %v4028_v37 = vadd.f32 %v3866_v49, %v3865_v25  ;;  %v4025_v14 = vadd.f32 %v3864_v33, %v3863_v2 }
 0x4c0   :  { %v3400_v6 = vpop.f32.mrf.mxu0  ;;  %v3399_v16 = vadd.f32 %v3398_v20, %v6257_v57 }
 0x4c1   :  { %v3628_v63 = vmax.bf16 %v4949_v1, %v3564_v28  ;;  %4029 = vadd.xlane.f32.xlu1 %v4028_v37  ;;  %v3730_v55 = vunpack.c.h.bf16 %v3627_v23  ;;  %4026 = vadd.xlane.f32.xlu0 %v4025_v14  ;;  %v3728_v60 = vunpack.c.l.bf16 %v3627_v23  ;;  %v3401_v9 = vadd.f32 %v3400_v6, %v6260_v10 }
 0x4c2   :  { %v3402_v24 = vpop.f32.mrf.mxu0 }
 0x4c3   :  { %v3403_v54 = vadd.f32 %v3402_v24, %v6257_v57  ;;  %v3925_v52 = vpop.xlane.xlu0 %3924  ;;  %v3731_v11 = vunpack.c.h.bf16 %v3628_v63  ;;  %v3729_v15 = vunpack.c.l.bf16 %v3628_v63  ;;  %v3869_v45 = vmul.f32 %v6281_v42, %v3730_v55 }
 0x4c4   :  { %v4122_v32 = vadd.f32 %v6495_v62, %v3925_v52  ;;  %v3404_v12 = vpop.f32.mrf.mxu0  ;;  %v3867_v30 = vmul.f32 %v6281_v42, %v3728_v60 }
 0x4c5   :  { %v3565_v4 = vpack.c.bf16 %v3403_v54, %v3399_v16  ;;  %v3405_v5 = vadd.f32 %v3404_v12, %v6260_v10  ;;  %v3870_v35 = vmul.f32 %v6278_v29, %v3731_v11  ;;  %v3868_v13 = vmul.f32 %v6278_v29, %v3729_v15 }
 0x4c6   :  { %4751 = vtanh.f32 %v4122_v32  ;;  %v3408_v18 = vpop.f32.mrf.mxu0 }
 0x4c7   :  { %v3629_v31 = vmax.bf16 %v4949_v1, %v3565_v4  ;;  %v3566_v0 = vpack.c.bf16 %v3405_v5, %v3401_v9  ;;  %v3928_v21 = vpop.xlane.xlu0 %3927  ;;  %v4034_v43 = vadd.f32 %v3870_v35, %v3869_v45  ;;  %v4031_v61 = vadd.f32 %v3868_v13, %v3867_v30 }
 0x4c8   :  { %v4123_v41 = vadd.f32 %v6495_v62, %v3928_v21  ;;  %v3410_v26 = vpop.f32.mrf.mxu0  ;;  %v3409_v39 = vadd.f32 %v3408_v18, %v6257_v57 }
 0x4c9   :  { %v3630_v19 = vmax.bf16 %v4949_v1, %v3566_v0  ;;  %4035 = vadd.xlane.f32.xlu1 %v4034_v43  ;;  %v3734_v47 = vunpack.c.h.bf16 %v3629_v31  ;;  %4032 = vadd.xlane.f32.xlu0 %v4031_v61  ;;  %v3732_v40 = vunpack.c.l.bf16 %v3629_v31  ;;  %v3411_v7 = vadd.f32 %v3410_v26, %v6260_v10 }
 0x4ca   :  { %4753 = vtanh.f32 %v4123_v41  ;;  %v3412_v27 = vpop.f32.mrf.mxu0 }
 0x4cb   :  { %v3413_v36 = vadd.f32 %v3412_v27, %v6257_v57  ;;  %v3931_v8 = vpop.xlane.xlu1 %3930  ;;  %v3735_v38 = vunpack.c.h.bf16 %v3630_v19  ;;  %v3733_v53 = vunpack.c.l.bf16 %v3630_v19  ;;  %v3873_v58 = vmul.f32 %v6281_v42, %v3734_v47 }
 0x4cc   :  { %v4124_v51 = vadd.f32 %v6495_v62, %v3931_v8  ;;  %v3414_v59 = vpop.f32.mrf.mxu0  ;;  %v3871_v50 = vmul.f32 %v6281_v42, %v3732_v40 }
 0x4cd   :  { %v3567_v22 = vpack.c.bf16 %v3413_v36, %v3409_v39  ;;  %v3415_v44 = vadd.f32 %v3414_v59, %v6260_v10  ;;  %v3874_v46 = vmul.f32 %v6278_v29, %v3735_v38  ;;  %v3872_v56 = vmul.f32 %v6278_v29, %v3733_v53 }
 0x4ce   :  { %4755 = vtanh.f32 %v4124_v51  ;;  %v3418_v34 = vpop.f32.mrf.mxu0 }
 0x4cf   :  { %v3631_v3 = vmax.bf16 %v4949_v1, %v3567_v22  ;;  %v3568_v25 = vpack.c.bf16 %v3415_v44, %v3411_v7  ;;  %v3934_v48 = vpop.xlane.xlu1 %3933  ;;  %v4040_v17 = vadd.f32 %v3874_v46, %v3873_v58  ;;  %v4037_v20 = vadd.f32 %v3872_v56, %v3871_v50 }
 0x4d0   :  { %v4125_v49 = vadd.f32 %v6495_v62, %v3934_v48  ;;  %v3420_v33 = vpop.f32.mrf.mxu0  ;;  %v3419_v14 = vadd.f32 %v3418_v34, %v6257_v57 }
 0x4d1   :  { %v3632_v2 = vmax.bf16 %v4949_v1, %v3568_v25  ;;  %4041 = vadd.xlane.f32.xlu1 %v4040_v17  ;;  %4038 = vadd.xlane.f32.xlu0 %v4037_v20  ;;  %v3738_v28 = vunpack.c.h.bf16 %v3631_v3  ;;  %v3736_v37 = vunpack.c.l.bf16 %v3631_v3  ;;  %v3421_v54 = vadd.f32 %v3420_v33, %v6260_v10 }
 0x4d2   :  { %4757 = vtanh.f32 %v4125_v49  ;;  %v3422_v23 = vpop.f32.mrf.mxu0 }
 0x4d3   :  { %v4752_v6 = vpop.eup %4751  ;;  %v3423_v63 = vadd.f32 %v3422_v23, %v6257_v57  ;;  %v3940_v55 = vpop.xlane.xlu1 %3939  ;;  %v3739_v60 = vunpack.c.h.bf16 %v3632_v2  ;;  %v3737_v16 = vunpack.c.l.bf16 %v3632_v2  ;;  %v3877_v5 = vmul.f32 %v6281_v42, %v3738_v28 }
 0x4d4   :  { %v3937_v24 = vpop.xlane.xlu0 %3936  ;;  %4251 = vst.msk [vmem:[%s6966_s13] sm:$0xff] %vm4250_vm2, %v4752_v6  ;;  %v4127_v52 = vadd.f32 %v6495_v62, %v3940_v55  ;;  %v3424_v15 = vpop.f32.mrf.mxu0  ;;  %v3875_v35 = vmul.f32 %v6281_v42, %v3736_v37 }
 0x4d5   :  { %v4126_v11 = vadd.f32 %v6495_v62, %v3937_v24  ;;  %v3569_v9 = vpack.c.bf16 %v3423_v63, %v3419_v14  ;;  %v3425_v32 = vadd.f32 %v3424_v15, %v6260_v10  ;;  %v3878_v12 = vmul.f32 %v6278_v29, %v3739_v60 }
 0x4d6   :  { %v3876_v45 = vmul.f32 %v6278_v29, %v3737_v16  ;;  %4759 = vtanh.f32 %v4127_v52  ;;  %v3428_v4 = vpop.f32.mrf.mxu0 }
 0x4d7   :  { %v4754_v13 = vpop.eup %4753  ;;  %v3633_v18 = vmax.bf16 %v4949_v1, %v3569_v9  ;;  %4761 = vtanh.f32 %v4126_v11  ;;  %v3570_v30 = vpack.c.bf16 %v3425_v32, %v3421_v54  ;;  %v4046_v0 = vadd.f32 %v3878_v12, %v3877_v5 }
 0x4d8   :  { %4252 = vst.msk [vmem:[%s6966_s13 + $0x8] sm:$0xff] %vm4250_vm2, %v4754_v13  ;;  %v3430_v31 = vpop.f32.mrf.mxu0  ;;  %v4043_v21 = vadd.f32 %v3876_v45, %v3875_v35  ;;  %v3429_v47 = vadd.f32 %v3428_v4, %v6257_v57 }
 0x4d9   :  { %v3634_v43 = vmax.bf16 %v4949_v1, %v3570_v30  ;;  %4047 = vadd.xlane.f32.xlu1 %v4046_v0  ;;  %v3742_v26 = vunpack.c.h.bf16 %v3633_v18  ;;  %v3740_v61 = vunpack.c.l.bf16 %v3633_v18  ;;  %v3431_v38 = vadd.f32 %v3430_v31, %v6260_v10 }
 0x4da   :  { %4044 = vadd.xlane.f32.xlu0 %v4043_v21  ;;  %v3432_v41 = vpop.f32.mrf.mxu0 }
 0x4db   :  { %v4756_v19 = vpop.eup %4755  ;;  %v3433_v27 = vadd.f32 %v3432_v41, %v6257_v57  ;;  %v3946_v40 = vpop.xlane.xlu1 %3945  ;;  %v3743_v36 = vunpack.c.h.bf16 %v3634_v43  ;;  %v3741_v8 = vunpack.c.l.bf16 %v3634_v43  ;;  %v3881_v56 = vmul.f32 %v6281_v42, %v3742_v26 }
 0x4dc   :  { %v3943_v39 = vpop.xlane.xlu0 %3942  ;;  %4253 = vst.msk [vmem:[%s6966_s13 + $0x10] sm:$0xff] %vm4250_vm2, %v4756_v19  ;;  %v4129_v53 = vadd.f32 %v6495_v62, %v3946_v40  ;;  %v3434_v51 = vpop.f32.mrf.mxu0  ;;  %v3879_v34 = vmul.f32 %v6281_v42, %v3740_v61 }
 0x4dd   :  { %v4128_v7 = vadd.f32 %v6495_v62, %v3943_v39  ;;  %v3571_v59 = vpack.c.bf16 %v3433_v27, %v3429_v47  ;;  %v3435_v58 = vadd.f32 %v3434_v51, %v6260_v10  ;;  %v3882_v22 = vmul.f32 %v6278_v29, %v3743_v36 }
 0x4de   :  { %v3880_v44 = vmul.f32 %v6278_v29, %v3741_v8  ;;  %4763 = vtanh.f32 %v4129_v53  ;;  %v3438_v46 = vpop.f32.mrf.mxu0 }
 0x4df   :  { %v4758_v50 = vpop.eup %4757  ;;  %v3635_v3 = vmax.bf16 %v4949_v1, %v3571_v59  ;;  %4765 = vtanh.f32 %v4128_v7  ;;  %v3572_v25 = vpack.c.bf16 %v3435_v58, %v3431_v38  ;;  %v4052_v17 = vadd.f32 %v3882_v22, %v3881_v56 }
 0x4e0   :  { %4254 = vst.msk [vmem:[%s6966_s13 + $0x18] sm:$0xff] %vm4250_vm2, %v4758_v50  ;;  %v3440_v48 = vpop.f32.mrf.mxu0  ;;  %v4049_v49 = vadd.f32 %v3880_v44, %v3879_v34  ;;  %v3439_v37 = vadd.f32 %v3438_v46, %v6257_v57 }
 0x4e1   :  { %v3636_v33 = vmax.bf16 %v4949_v1, %v3572_v25  ;;  %4053 = vadd.xlane.f32.xlu1 %v4052_v17  ;;  %v3746_v2 = vunpack.c.h.bf16 %v3635_v3  ;;  %v3744_v23 = vunpack.c.l.bf16 %v3635_v3  ;;  %v3441_v16 = vadd.f32 %v3440_v48, %v6260_v10 }
 0x4e2   :  { %4050 = vadd.xlane.f32.xlu0 %v4049_v49  ;;  %v3442_v20 = vpop.f32.mrf.mxu0 }
 0x4e3   :  { %v4760_v28 = vpop.eup %4759  ;;  %v3443_v6 = vadd.f32 %v3442_v20, %v6257_v57  ;;  %v3952_v14 = vpop.xlane.xlu1 %3951  ;;  %v3747_v55 = vunpack.c.h.bf16 %v3636_v33  ;;  %v3745_v24 = vunpack.c.l.bf16 %v3636_v33  ;;  %v3885_v4 = vmul.f32 %v6281_v42, %v3746_v2 }
 0x4e4   :  { %v3949_v63 = vpop.xlane.xlu0 %3948  ;;  %v4762_v60 = vpop.eup %4761  ;;  %4256 = vst.msk [vmem:[%s6966_s13 + $0x28] sm:$0xff] %vm4250_vm2, %v4760_v28  ;;  %v4131_v54 = vadd.f32 %v6495_v62, %v3952_v14  ;;  %v3883_v5 = vmul.f32 %v6281_v42, %v3744_v23 }
 0x4e5   :  { %v4130_v52 = vadd.f32 %v6495_v62, %v3949_v63  ;;  %v3444_v11 = vpop.f32.mrf.mxu0  ;;  %4255 = vst.msk [vmem:[%s6966_s13 + $0x20] sm:$0xff] %vm4250_vm2, %v4762_v60  ;;  %v3573_v15 = vpack.c.bf16 %v3443_v6, %v3439_v37  ;;  %v3886_v32 = vmul.f32 %v6278_v29, %v3747_v55  ;;  %v3884_v12 = vmul.f32 %v6278_v29, %v3745_v24 }
 0x4e6   :  { %v3445_v9 = vadd.f32 %v3444_v11, %v6260_v10  ;;  %4767 = vtanh.f32 %v4131_v54 }
 0x4e7   :  { %v3448_v45 = vpop.f32.mrf.mxu0  ;;  %v3637_v35 = vmax.bf16 %v4949_v1, %v3573_v15  ;;  %4769 = vtanh.f32 %v4130_v52  ;;  %v4058_v30 = vadd.f32 %v3886_v32, %v3885_v4  ;;  %v4055_v31 = vadd.f32 %v3884_v12, %v3883_v5 }
 0x4e8   :  { %v3574_v13 = vpack.c.bf16 %v3445_v9, %v3441_v16  ;;  %v3449_v19 = vadd.f32 %v3448_v45, %v6257_v57 }
 0x4e9   :  { %v3450_v18 = vpop.f32.mrf.mxu0  ;;  %v3750_v21 = vunpack.c.h.bf16 %v3637_v35  ;;  %4059 = vadd.xlane.f32.xlu1 %v4058_v30  ;;  %4056 = vadd.xlane.f32.xlu0 %v4055_v31  ;;  %v3748_v26 = vunpack.c.l.bf16 %v3637_v35 }
 0x4ea   :  { %v3638_v0 = vmax.bf16 %v4949_v1, %v3574_v13  ;;  %v3958_v41 = vpop.xlane.xlu1 %3957  ;;  %v3955_v40 = vpop.xlane.xlu0 %3954  ;;  %v3451_v8 = vadd.f32 %v3450_v18, %v6260_v10 }
 0x4eb   :  { %v3452_v43 = vpop.f32.mrf.mxu0  ;;  %v4764_v61 = vpop.eup %4763  ;;  %v4133_v27 = vadd.f32 %v6495_v62, %v3958_v41  ;;  %v4132_v38 = vadd.f32 %v6495_v62, %v3955_v40  ;;  %v3889_v7 = vmul.f32 %v6281_v42, %v3750_v21  ;;  %v3887_v46 = vmul.f32 %v6281_v42, %v3748_v26 }
 0x4ec   :  { %v3453_v47 = vadd.f32 %v3452_v43, %v6257_v57  ;;  %v3751_v39 = vunpack.c.h.bf16 %v3638_v0  ;;  %v4766_v36 = vpop.eup %4765  ;;  %4258 = vst.msk [vmem:[%s6966_s13 + $0x38] sm:$0xff] %vm4250_vm2, %v4764_v61  ;;  %v3749_v51 = vunpack.c.l.bf16 %v3638_v0 }
 0x4ed   :  { %v3454_v53 = vpop.f32.mrf.mxu0  ;;  %4257 = vst.msk [vmem:[%s6966_s13 + $0x30] sm:$0xff] %vm4250_vm2, %v4766_v36  ;;  %4771 = vtanh.f32 %v4133_v27 }
 0x4ee   :  { %v3575_v59 = vpack.c.bf16 %v3453_v47, %v3449_v19  ;;  %v3455_v58 = vadd.f32 %v3454_v53, %v6260_v10  ;;  %v3890_v22 = vmul.f32 %v6278_v29, %v3751_v39  ;;  %4773 = vtanh.f32 %v4132_v38 }
 0x4ef   :  { %v3458_v44 = vpop.f32.mrf.mxu0  ;;  %v3888_v56 = vmul.f32 %v6278_v29, %v3749_v51 }
 0x4f0   :  { %v3639_v34 = vmax.bf16 %v4949_v1, %v3575_v59  ;;  %v3576_v50 = vpack.c.bf16 %v3455_v58, %v3451_v8  ;;  %v4064_v3 = vadd.f32 %v3890_v22, %v3889_v7  ;;  %v3459_v28 = vadd.f32 %v3458_v44, %v6257_v57 }
 0x4f1   :  { %v3460_v25 = vpop.f32.mrf.mxu0  ;;  %v4061_v48 = vadd.f32 %v3888_v56, %v3887_v46 }
 0x4f2   :  { %v3640_v17 = vmax.bf16 %v4949_v1, %v3576_v50  ;;  %4065 = vadd.xlane.f32.xlu1 %v4064_v3  ;;  %v3754_v49 = vunpack.c.h.bf16 %v3639_v34  ;;  %v3964_v20 = vpop.xlane.xlu1 %3963  ;;  %v3752_v2 = vunpack.c.l.bf16 %v3639_v34  ;;  %v3961_v14 = vpop.xlane.xlu0 %3960  ;;  %v3461_v24 = vadd.f32 %v3460_v25, %v6260_v10 }
 0x4f3   :  { %4062 = vadd.xlane.f32.xlu0 %v4061_v48  ;;  %v3462_v33 = vpop.f32.mrf.mxu0  ;;  %v4768_v23 = vpop.eup %4767  ;;  %v4135_v6 = vadd.f32 %v6495_v62, %v3964_v20  ;;  %v4134_v60 = vadd.f32 %v6495_v62, %v3961_v14 }
 0x4f4   :  { %v3463_v37 = vadd.f32 %v3462_v33, %v6257_v57  ;;  %v3755_v63 = vunpack.c.h.bf16 %v3640_v17  ;;  %v4770_v55 = vpop.eup %4769  ;;  %4260 = vst.msk [vmem:[%s6966_s13 + $0x48] sm:$0xff] %vm4250_vm2, %v4768_v23  ;;  %v3893_v54 = vmul.f32 %v6281_v42, %v3754_v49  ;;  %v3753_v52 = vunpack.c.l.bf16 %v3640_v17 }
 0x4f5   :  { %v3464_v16 = vpop.f32.mrf.mxu0  ;;  %4259 = vst.msk [vmem:[%s6966_s13 + $0x40] sm:$0xff] %vm4250_vm2, %v4770_v55  ;;  %4775 = vtanh.f32 %v4135_v6  ;;  %v3891_v12 = vmul.f32 %v6281_v42, %v3752_v2 }
 0x4f6   :  { %v3577_v11 = vpack.c.bf16 %v3463_v37, %v3459_v28  ;;  %v3465_v15 = vadd.f32 %v3464_v16, %v6260_v10  ;;  %v3894_v9 = vmul.f32 %v6278_v29, %v3755_v63  ;;  %4777 = vtanh.f32 %v4134_v60 }
 0x4f7   :  { %v3468_v32 = vpop.f32.mrf.mxu0  ;;  %v3892_v45 = vmul.f32 %v6278_v29, %v3753_v52 }
 0x4f8   :  { %v3641_v4 = vmax.bf16 %v4949_v1, %v3577_v11  ;;  %v3578_v5 = vpack.c.bf16 %v3465_v15, %v3461_v24  ;;  %v4070_v35 = vadd.f32 %v3894_v9, %v3893_v54  ;;  %v3469_v61 = vadd.f32 %v3468_v32, %v6257_v57 }
 0x4f9   :  { %v3470_v13 = vpop.f32.mrf.mxu0  ;;  %v4067_v18 = vadd.f32 %v3892_v45, %v3891_v12 }
 0x4fa   :  { %v3642_v30 = vmax.bf16 %v4949_v1, %v3578_v5  ;;  %4071 = vadd.xlane.f32.xlu1 %v4070_v35  ;;  %v3758_v31 = vunpack.c.h.bf16 %v3641_v4  ;;  %v4772_v0 = vpop.eup %4771  ;;  %v3970_v43 = vpop.xlane.xlu1 %3969  ;;  %v3756_v41 = vunpack.c.l.bf16 %v3641_v4  ;;  %v3471_v39 = vadd.f32 %v3470_v13, %v6260_v10 }
 0x4fb   :  { %4068 = vadd.xlane.f32.xlu0 %v4067_v18  ;;  %v3472_v21 = vpop.f32.mrf.mxu0  ;;  %v4774_v26 = vpop.eup %4773  ;;  %4262 = vst.msk [vmem:[%s6966_s13 + $0x58] sm:$0xff] %vm4250_vm2, %v4772_v0  ;;  %v4137_v47 = vadd.f32 %v6495_v62, %v3970_v43 }
 0x4fc   :  { %v3473_v19 = vadd.f32 %v3472_v21, %v6257_v57  ;;  %v3967_v27 = vpop.xlane.xlu0 %3966  ;;  %v3759_v40 = vunpack.c.h.bf16 %v3642_v30  ;;  %4261 = vst.msk [vmem:[%s6966_s13 + $0x50] sm:$0xff] %vm4250_vm2, %v4774_v26  ;;  %v3897_v38 = vmul.f32 %v6281_v42, %v3758_v31  ;;  %v3757_v53 = vunpack.c.l.bf16 %v3642_v30 }
 0x4fd   :  { %v4136_v36 = vadd.f32 %v6495_v62, %v3967_v27  ;;  %v3474_v8 = vpop.f32.mrf.mxu0  ;;  %4779 = vtanh.f32 %v4137_v47  ;;  %v3895_v22 = vmul.f32 %v6281_v42, %v3756_v41 }
 0x4fe   :  { %v3579_v7 = vpack.c.bf16 %v3473_v19, %v3469_v61  ;;  %v3475_v51 = vadd.f32 %v3474_v8, %v6260_v10  ;;  %v3898_v59 = vmul.f32 %v6278_v29, %v3759_v40  ;;  %v3896_v44 = vmul.f32 %v6278_v29, %v3757_v53 }
 0x4ff   :  { %4781 = vtanh.f32 %v4136_v36  ;;  %v3478_v58 = vpop.f32.mrf.mxu0 }
 0x500   :  { %v3643_v46 = vmax.bf16 %v4949_v1, %v3579_v7  ;;  %v3580_v56 = vpack.c.bf16 %v3475_v51, %v3471_v39  ;;  %v4076_v34 = vadd.f32 %v3898_v59, %v3897_v38  ;;  %v4073_v3 = vadd.f32 %v3896_v44, %v3895_v22 }
 0x501   :  { %v3480_v50 = vpop.f32.mrf.mxu0  ;;  %v3479_v23 = vadd.f32 %v3478_v58, %v6257_v57 }
 0x502   :  { %v3644_v25 = vmax.bf16 %v4949_v1, %v3580_v56  ;;  %4077 = vadd.xlane.f32.xlu1 %v4076_v34  ;;  %v3762_v48 = vunpack.c.h.bf16 %v3643_v46  ;;  %v4776_v17 = vpop.eup %4775  ;;  %4074 = vadd.xlane.f32.xlu0 %v4073_v3  ;;  %v3976_v33 = vpop.xlane.xlu1 %3975  ;;  %v3760_v20 = vunpack.c.l.bf16 %v3643_v46  ;;  %v3481_v63 = vadd.f32 %v3480_v50, %v6260_v10 }
 0x503   :  { %v3482_v49 = vpop.f32.mrf.mxu0  ;;  %v4778_v2 = vpop.eup %4777  ;;  %4264 = vst.msk [vmem:[%s6966_s13 + $0x68] sm:$0xff] %vm4250_vm2, %v4776_v17  ;;  %v4139_v37 = vadd.f32 %v6495_v62, %v3976_v33 }
 0x504   :  { %v3483_v28 = vadd.f32 %v3482_v49, %v6257_v57  ;;  %v3973_v6 = vpop.xlane.xlu0 %3972  ;;  %v3763_v14 = vunpack.c.h.bf16 %v3644_v25  ;;  %4263 = vst.msk [vmem:[%s6966_s13 + $0x60] sm:$0xff] %vm4250_vm2, %v4778_v2  ;;  %v3901_v60 = vmul.f32 %v6281_v42, %v3762_v48  ;;  %v3761_v16 = vunpack.c.l.bf16 %v3644_v25 }
 0x505   :  { %v4138_v55 = vadd.f32 %v6495_v62, %v3973_v6  ;;  %v3484_v24 = vpop.f32.mrf.mxu0  ;;  %4783 = vtanh.f32 %v4139_v37  ;;  %v3899_v9 = vmul.f32 %v6281_v42, %v3760_v20 }
 0x506   :  { %v3581_v54 = vpack.c.bf16 %v3483_v28, %v3479_v23  ;;  %v3485_v52 = vadd.f32 %v3484_v24, %v6260_v10  ;;  %v3902_v11 = vmul.f32 %v6278_v29, %v3763_v14  ;;  %v3900_v32 = vmul.f32 %v6278_v29, %v3761_v16 }
 0x507   :  { %4785 = vtanh.f32 %v4138_v55  ;;  %v3488_v15 = vpop.f32.mrf.mxu0 }
 0x508   :  { %v3645_v12 = vmax.bf16 %v4949_v1, %v3581_v54  ;;  %v3582_v45 = vpack.c.bf16 %v3485_v52, %v3481_v63  ;;  %v4082_v4 = vadd.f32 %v3902_v11, %v3901_v60  ;;  %v4079_v35 = vadd.f32 %v3900_v32, %v3899_v9 }
 0x509   :  { %v3490_v5 = vpop.f32.mrf.mxu0  ;;  %v3489_v41 = vadd.f32 %v3488_v15, %v6257_v57 }
 0x50a   :  { %v3646_v13 = vmax.bf16 %v4949_v1, %v3582_v45  ;;  %4083 = vadd.xlane.f32.xlu1 %v4082_v4  ;;  %v3766_v18 = vunpack.c.h.bf16 %v3645_v12  ;;  %v4780_v30 = vpop.eup %4779  ;;  %4080 = vadd.xlane.f32.xlu0 %v4079_v35  ;;  %v3982_v0 = vpop.xlane.xlu1 %3981  ;;  %v3764_v21 = vunpack.c.l.bf16 %v3645_v12  ;;  %v3491_v27 = vadd.f32 %v3490_v5, %v6260_v10 }
 0x50b   :  { %v3492_v31 = vpop.f32.mrf.mxu0  ;;  %4266 = vst.msk [vmem:[%s6966_s13 + $0x78] sm:$0xff] %vm4250_vm2, %v4780_v30  ;;  %v4141_v61 = vadd.f32 %v6495_v62, %v3982_v0  ;;  %v3979_v19 = vpop.xlane.xlu0 %3978 }
 0x50c   :  { %v4782_v43 = vpop.eup %4781  ;;  %v3493_v26 = vadd.f32 %v3492_v31, %v6257_v57  ;;  %v3767_v47 = vunpack.c.h.bf16 %v3646_v13  ;;  %v4140_v40 = vadd.f32 %v6495_v62, %v3979_v19  ;;  %v3905_v36 = vmul.f32 %v6281_v42, %v3766_v18 }
 0x50d   :  { %4265 = vst.msk [vmem:[%s6966_s13 + $0x70] sm:$0xff] %vm4250_vm2, %v4782_v43  ;;  %v3494_v39 = vpop.f32.mrf.mxu0  ;;  %v3765_v8 = vunpack.c.l.bf16 %v3646_v13  ;;  %4787 = vtanh.f32 %v4141_v61  ;;  %v3903_v59 = vmul.f32 %v6281_v42, %v3764_v21 }
 0x50e   :  { %v3583_v38 = vpack.c.bf16 %v3493_v26, %v3489_v41  ;;  %v3495_v53 = vadd.f32 %v3494_v39, %v6260_v10  ;;  %v3906_v7 = vmul.f32 %v6278_v29, %v3767_v47  ;;  %4789 = vtanh.f32 %v4140_v40 }
 0x50f   :  { %v3498_v51 = vpop.f32.mrf.mxu0  ;;  %v3904_v58 = vmul.f32 %v6278_v29, %v3765_v8 }
 0x510   :  { %v3647_v22 = vmax.bf16 %v4949_v1, %v3583_v38  ;;  %v3584_v44 = vpack.c.bf16 %v3495_v53, %v3491_v27  ;;  %v4088_v46 = vadd.f32 %v3906_v7, %v3905_v36  ;;  %v3499_v20 = vadd.f32 %v3498_v51, %v6257_v57 }
 0x511   :  { %v3500_v56 = vpop.f32.mrf.mxu0  ;;  %v4085_v34 = vadd.f32 %v3904_v58, %v3903_v59 }
 0x512   :  { %v3648_v50 = vmax.bf16 %v4949_v1, %v3584_v44  ;;  %4089 = vadd.xlane.f32.xlu1 %v4088_v46  ;;  %v3770_v3 = vunpack.c.h.bf16 %v3647_v22  ;;  %v4784_v25 = vpop.eup %4783  ;;  %v3988_v17 = vpop.xlane.xlu1 %3987  ;;  %v3768_v49 = vunpack.c.l.bf16 %v3647_v22  ;;  %v3501_v6 = vadd.f32 %v3500_v56, %v6260_v10 }
 0x513   :  { %4086 = vadd.xlane.f32.xlu0 %v4085_v34  ;;  %v3502_v48 = vpop.f32.mrf.mxu0  ;;  %4268 = vst.msk [vmem:[%s6966_s13 + $0x88] sm:$0xff] %vm4250_vm2, %v4784_v25  ;;  %v4143_v23 = vadd.f32 %v6495_v62, %v3988_v17  ;;  %v3985_v28 = vpop.xlane.xlu0 %3984 }
 0x514   :  { %v4786_v33 = vpop.eup %4785  ;;  %v3503_v2 = vadd.f32 %v3502_v48, %v6257_v57  ;;  %v3771_v37 = vunpack.c.h.bf16 %v3648_v50  ;;  %v4142_v14 = vadd.f32 %v6495_v62, %v3985_v28  ;;  %v3909_v55 = vmul.f32 %v6281_v42, %v3770_v3 }
 0x515   :  { %4267 = vst.msk [vmem:[%s6966_s13 + $0x80] sm:$0xff] %vm4250_vm2, %v4786_v33  ;;  %v3504_v63 = vpop.f32.mrf.mxu0  ;;  %v3769_v24 = vunpack.c.l.bf16 %v3648_v50  ;;  %4791 = vtanh.f32 %v4143_v23  ;;  %v3907_v11 = vmul.f32 %v6281_v42, %v3768_v49 }
 0x516   :  { %v3585_v60 = vpack.c.bf16 %v3503_v2, %v3499_v20  ;;  %v3505_v16 = vadd.f32 %v3504_v63, %v6260_v10  ;;  %v3910_v54 = vmul.f32 %v6278_v29, %v3771_v37  ;;  %4793 = vtanh.f32 %v4142_v14 }
 0x517   :  { %v3508_v52 = vpop.f32.mrf.mxu0  ;;  %v3908_v15 = vmul.f32 %v6278_v29, %v3769_v24 }
 0x518   :  { %v3649_v9 = vmax.bf16 %v4949_v1, %v3585_v60  ;;  %v3586_v32 = vpack.c.bf16 %v3505_v16, %v3501_v6  ;;  %v4094_v12 = vadd.f32 %v3910_v54, %v3909_v55  ;;  %v3509_v21 = vadd.f32 %v3508_v52, %v6257_v57 }
 0x519   :  { %v3510_v45 = vpop.f32.mrf.mxu0  ;;  %v4091_v4 = vadd.f32 %v3908_v15, %v3907_v11 }
 0x51a   :  { %v3650_v5 = vmax.bf16 %v4949_v1, %v3586_v32  ;;  %4095 = vadd.xlane.f32.xlu1 %v4094_v12  ;;  %v3774_v35 = vunpack.c.h.bf16 %v3649_v9  ;;  %v4788_v13 = vpop.eup %4787  ;;  %v3994_v30 = vpop.xlane.xlu1 %3993  ;;  %v3772_v31 = vunpack.c.l.bf16 %v3649_v9  ;;  %v3511_v19 = vadd.f32 %v3510_v45, %v6260_v10 }
 0x51b   :  { %4092 = vadd.xlane.f32.xlu0 %v4091_v4  ;;  %v3512_v18 = vpop.f32.mrf.mxu0  ;;  %v4790_v0 = vpop.eup %4789  ;;  %4270 = vst.msk [vmem:[%s6966_s13 + $0x98] sm:$0xff] %vm4250_vm2, %v4788_v13  ;;  %v4145_v41 = vadd.f32 %v6495_v62, %v3994_v30 }
 0x51c   :  { %v3513_v43 = vadd.f32 %v3512_v18, %v6257_v57  ;;  %v3991_v26 = vpop.xlane.xlu0 %3990  ;;  %v3775_v61 = vunpack.c.h.bf16 %v3650_v5  ;;  %4269 = vst.msk [vmem:[%s6966_s13 + $0x90] sm:$0xff] %vm4250_vm2, %v4790_v0  ;;  %v3913_v40 = vmul.f32 %v6281_v42, %v3774_v35  ;;  %v3773_v39 = vunpack.c.l.bf16 %v3650_v5 }
 0x51d   :  { %v4144_v47 = vadd.f32 %v6495_v62, %v3991_v26  ;;  %v3514_v27 = vpop.f32.mrf.mxu0  ;;  %4795 = vtanh.f32 %v4145_v41  ;;  %v3911_v7 = vmul.f32 %v6281_v42, %v3772_v31 }
 0x51e   :  { %v3587_v36 = vpack.c.bf16 %v3513_v43, %v3509_v21  ;;  %v3515_v8 = vadd.f32 %v3514_v27, %v6260_v10  ;;  %v3914_v38 = vmul.f32 %v6278_v29, %v3775_v61  ;;  %v3912_v51 = vmul.f32 %v6278_v29, %v3773_v39 }
 0x51f   :  { %4797 = vtanh.f32 %v4144_v47  ;;  %v3518_v53 = vpop.f32.mrf.mxu0 }
 0x520   :  { %v3651_v59 = vmax.bf16 %v4949_v1, %v3587_v36  ;;  %v3588_v58 = vpack.c.bf16 %v3515_v8, %v3511_v19  ;;  %v4100_v22 = vadd.f32 %v3914_v38, %v3913_v40  ;;  %v4097_v46 = vadd.f32 %v3912_v51, %v3911_v7 }
 0x521   :  { %v3520_v44 = vpop.f32.mrf.mxu0  ;;  %v3519_v49 = vadd.f32 %v3518_v53, %v6257_v57 }
 0x522   :  { %v3652_v56 = vmax.bf16 %v4949_v1, %v3588_v58  ;;  %4101 = vadd.xlane.f32.xlu1 %v4100_v22  ;;  %v3778_v34 = vunpack.c.h.bf16 %v3651_v59  ;;  %v4792_v50 = vpop.eup %4791  ;;  %4098 = vadd.xlane.f32.xlu0 %v4097_v46  ;;  %v4000_v25 = vpop.xlane.xlu1 %3999  ;;  %v3776_v48 = vunpack.c.l.bf16 %v3651_v59  ;;  %v3521_v28 = vadd.f32 %v3520_v44, %v6260_v10 }
 0x523   :  { %v3522_v3 = vpop.f32.mrf.mxu0  ;;  %v4794_v17 = vpop.eup %4793  ;;  %4272 = vst.msk [vmem:[%s6966_s13 + $0xa8] sm:$0xff] %vm4250_vm2, %v4792_v50  ;;  %v4147_v20 = vadd.f32 %v6495_v62, %v4000_v25 }
 0x524   :  { %v3523_v33 = vadd.f32 %v3522_v3, %v6257_v57  ;;  %v3997_v2 = vpop.xlane.xlu0 %3996  ;;  %v3779_v23 = vunpack.c.h.bf16 %v3652_v56  ;;  %4271 = vst.msk [vmem:[%s6966_s13 + $0xa0] sm:$0xff] %vm4250_vm2, %v4794_v17  ;;  %v3917_v14 = vmul.f32 %v6281_v42, %v3778_v34  ;;  %v3777_v63 = vunpack.c.l.bf16 %v3652_v56 }
 0x525   :  { %v4146_v37 = vadd.f32 %v6495_v62, %v3997_v2  ;;  %v3524_v6 = vpop.f32.mrf.mxu0  ;;  %4799 = vtanh.f32 %v4147_v20  ;;  %v3915_v60 = vmul.f32 %v6281_v42, %v3776_v48 }
 0x526   :  { %v3589_v55 = vpack.c.bf16 %v3523_v33, %v3519_v49  ;;  %v3525_v57 = vadd.f32 %v3524_v6, %v6260_v10  ;;  %v3918_v24 = vmul.f32 %v6278_v29, %v3779_v23  ;;  %v3916_v16 = vmul.f32 %v6278_v29, %v3777_v63 }
 0x527   :  { %4801 = vtanh.f32 %v4146_v37 }
 0x528   :  { %v3653_v54 = vmax.bf16 %v4949_v1, %v3589_v55  ;;  %v3590_v52 = vpack.c.bf16 %v3525_v57, %v3521_v28  ;;  %v4106_v11 = vadd.f32 %v3918_v24, %v3917_v14  ;;  %v4103_v15 = vadd.f32 %v3916_v16, %v3915_v60  ;;  %v6814_v14 = vld [vmem:[#allocation2] ss:$0 sm:$0xff] }
 0x52a   :  { %v3654_v9 = vmax.bf16 %v4949_v1, %v3590_v52  ;;  %4107 = vadd.xlane.f32.xlu1 %v4106_v11  ;;  %v3782_v32 = vunpack.c.h.bf16 %v3653_v54  ;;  %v3780_v12 = vunpack.c.l.bf16 %v3653_v54  ;;  %v4796_v45 = vpop.eup %4795  ;;  %4104 = vadd.xlane.f32.xlu0 %v4103_v15  ;;  %v4006_v10 = vpop.xlane.xlu1 %4005 }
 0x52b   :  { %4274 = vst.msk [vmem:[%s6966_s13 + $0xb8] sm:$0xff] %vm4250_vm2, %v4796_v45  ;;  %v4149_v5 = vadd.f32 %v6495_v62, %v4006_v10  ;;  %v4003_v35 = vpop.xlane.xlu0 %4002 }
 0x52c   :  { %v4798_v4 = vpop.eup %4797  ;;  %v3783_v13 = vunpack.c.h.bf16 %v3654_v9  ;;  %v3781_v18 = vunpack.c.l.bf16 %v3654_v9  ;;  %v4148_v1 = vadd.f32 %v6495_v62, %v4003_v35  ;;  %v3921_v30 = vmul.f32 %v6281_v42, %v3782_v32 }
 0x52d   :  { %4273 = vst.msk [vmem:[%s6966_s13 + $0xb0] sm:$0xff] %vm4250_vm2, %v4798_v4  ;;  %4803 = vtanh.f32 %v4149_v5  ;;  %v3919_v0 = vmul.f32 %v6281_v42, %v3780_v12 }
 0x52e   :  { %v3922_v31 = vmul.f32 %v6278_v29, %v3783_v13  ;;  %v3920_v21 = vmul.f32 %v6278_v29, %v3781_v18  ;;  %4805 = vtanh.f32 %v4148_v1 }
 0x530   :  { %v4112_v43 = vadd.f32 %v3922_v31, %v3921_v30  ;;  %v4109_v41 = vadd.f32 %v3920_v21, %v3919_v0 }
 0x532   :  { %4113 = vadd.xlane.f32.xlu1 %v4112_v43  ;;  %4110 = vadd.xlane.f32.xlu0 %v4109_v41  ;;  %v4800_v26 = vpop.eup %4799  ;;  %v4012_v61 = vpop.xlane.xlu1 %4011 }
 0x533   :  { %4276 = vst.msk [vmem:[%s6966_s13 + $0xc8] sm:$0xff] %vm4250_vm2, %v4800_v26  ;;  %v4151_v47 = vadd.f32 %v6495_v62, %v4012_v61  ;;  %v4009_v27 = vpop.xlane.xlu0 %4008 }
 0x534   :  { %v4802_v19 = vpop.eup %4801  ;;  %v4150_v29 = vadd.f32 %v6495_v62, %v4009_v27 }
 0x535   :  { %4275 = vst.msk [vmem:[%s6966_s13 + $0xc0] sm:$0xff] %vm4250_vm2, %v4802_v19  ;;  %4807 = vtanh.f32 %v4151_v47 }
 0x536   :  { %4809 = vtanh.f32 %v4150_v29 }
 0x53a   :  { %v4804_v42 = vpop.eup %4803  ;;  %v4018_v40 = vpop.xlane.xlu1 %4017 }
 0x53b   :  { %v4806_v39 = vpop.eup %4805  ;;  %4278 = vst.msk [vmem:[%s6966_s13 + $0xd8] sm:$0xff] %vm4250_vm2, %v4804_v42  ;;  %v4153_v36 = vadd.f32 %v6495_v62, %v4018_v40  ;;  %v4015_v8 = vpop.xlane.xlu0 %4014 }
 0x53c   :  { %4277 = vst.msk [vmem:[%s6966_s13 + $0xd0] sm:$0xff] %vm4250_vm2, %v4806_v39  ;;  %v4152_v38 = vadd.f32 %v6495_v62, %v4015_v8 }
 0x53d   :  { %4811 = vtanh.f32 %v4153_v36 }
 0x53e   :  { %4813 = vtanh.f32 %v4152_v38 }
 0x542   :  { %v4808_v53 = vpop.eup %4807  ;;  %v4024_v7 = vpop.xlane.xlu1 %4023 }
 0x543   :  { %v4810_v51 = vpop.eup %4809  ;;  %4280 = vst.msk [vmem:[%s6966_s13 + $0xe8] sm:$0xff] %vm4250_vm2, %v4808_v53  ;;  %v4155_v59 = vadd.f32 %v6495_v62, %v4024_v7  ;;  %v4021_v58 = vpop.xlane.xlu0 %4020 }
 0x544   :  { %4279 = vst.msk [vmem:[%s6966_s13 + $0xe0] sm:$0xff] %vm4250_vm2, %v4810_v51  ;;  %v4154_v22 = vadd.f32 %v6495_v62, %v4021_v58 }
 0x545   :  { %4815 = vtanh.f32 %v4155_v59 }
 0x546   :  { %4817 = vtanh.f32 %v4154_v22 }
 0x54a   :  { %v4812_v44 = vpop.eup %4811  ;;  %v4030_v46 = vpop.xlane.xlu1 %4029 }
 0x54b   :  { %v4814_v56 = vpop.eup %4813  ;;  %4282 = vst.msk [vmem:[%s6966_s13 + $0xf8] sm:$0xff] %vm4250_vm2, %v4812_v44  ;;  %v4157_v34 = vadd.f32 %v6495_v62, %v4030_v46  ;;  %v4027_v50 = vpop.xlane.xlu0 %4026 }
 0x54c   :  { %4281 = vst.msk [vmem:[%s6966_s13 + $0xf0] sm:$0xff] %vm4250_vm2, %v4814_v56  ;;  %v4156_v3 = vadd.f32 %v6495_v62, %v4027_v50 }
 0x54d   :  { %4819 = vtanh.f32 %v4157_v34 }
 0x54e   :  { %4821 = vtanh.f32 %v4156_v3 }
 0x552   :  { %v4816_v25 = vpop.eup %4815  ;;  %v4036_v48 = vpop.xlane.xlu1 %4035 }
 0x553   :  { %v4818_v17 = vpop.eup %4817  ;;  %4284 = vst.msk [vmem:[%s6966_s13 + $0x108] sm:$0xff] %vm4250_vm2, %v4816_v25  ;;  %v4159_v49 = vadd.f32 %v6495_v62, %v4036_v48  ;;  %v4033_v33 = vpop.xlane.xlu0 %4032 }
 0x554   :  { %4283 = vst.msk [vmem:[%s6966_s13 + $0x100] sm:$0xff] %vm4250_vm2, %v4818_v17  ;;  %v4158_v20 = vadd.f32 %v6495_v62, %v4033_v33 }
 0x555   :  { %4823 = vtanh.f32 %v4159_v49 }
 0x556   :  { %4825 = vtanh.f32 %v4158_v20 }
 0x55a   :  { %v4820_v2 = vpop.eup %4819  ;;  %v4042_v23 = vpop.xlane.xlu1 %4041 }
 0x55b   :  { %v4822_v28 = vpop.eup %4821  ;;  %4286 = vst.msk [vmem:[%s6966_s13 + $0x118] sm:$0xff] %vm4250_vm2, %v4820_v2  ;;  %v4161_v37 = vadd.f32 %v6495_v62, %v4042_v23  ;;  %v4039_v6 = vpop.xlane.xlu0 %4038 }
 0x55c   :  { %4285 = vst.msk [vmem:[%s6966_s13 + $0x110] sm:$0xff] %vm4250_vm2, %v4822_v28  ;;  %v4160_v63 = vadd.f32 %v6814_v14, %v4039_v6 }
 0x55d   :  { %4827 = vtanh.f32 %v4161_v37 }
 0x55e   :  { %4829 = vtanh.f32 %v4160_v63 }
 0x562   :  { %v4824_v55 = vpop.eup %4823  ;;  %v4048_v62 = vpop.xlane.xlu1 %4047 }
 0x563   :  { %v4826_v57 = vpop.eup %4825  ;;  %4288 = vst.msk [vmem:[%s6966_s13 + $0x128] sm:$0xff] %vm4250_vm2, %v4824_v55  ;;  %v4045_v24 = vpop.xlane.xlu0 %4044  ;;  %v4163_v60 = vadd.f32 %v6814_v14, %v4048_v62 }
 0x564   :  { %4287 = vst.msk [vmem:[%s6966_s13 + $0x120] sm:$0xff] %vm4250_vm2, %v4826_v57  ;;  %v4162_v16 = vadd.f32 %v6814_v14, %v4045_v24 }
 0x565   :  { %4831 = vtanh.f32 %v4163_v60 }
 0x566   :  { %4833 = vtanh.f32 %v4162_v16 }
 0x56a   :  { %v4828_v54 = vpop.eup %4827  ;;  %v4054_v11 = vpop.xlane.xlu1 %4053 }
 0x56b   :  { %v4830_v52 = vpop.eup %4829  ;;  %4290 = vst.msk [vmem:[%s6966_s13 + $0x138] sm:$0xff] %vm4250_vm2, %v4828_v54  ;;  %v4051_v15 = vpop.xlane.xlu0 %4050  ;;  %v4165_v9 = vadd.f32 %v6814_v14, %v4054_v11 }
 0x56c   :  { %4289 = vst.msk [vmem:[%s6966_s13 + $0x130] sm:$0xff] %vm4250_vm2, %v4830_v52  ;;  %v4164_v32 = vadd.f32 %v6814_v14, %v4051_v15 }
 0x56d   :  { %4835 = vtanh.f32 %v4165_v9 }
 0x56e   :  { %4837 = vtanh.f32 %v4164_v32 }
 0x572   :  { %v4832_v12 = vpop.eup %4831  ;;  %v4060_v45 = vpop.xlane.xlu1 %4059 }
 0x573   :  { %v4057_v10 = vpop.xlane.xlu0 %4056  ;;  %v4834_v4 = vpop.eup %4833  ;;  %4292 = vst.msk [vmem:[%s6966_s13 + $0x148] sm:$0xff] %vm4250_vm2, %v4832_v12  ;;  %v4167_v5 = vadd.f32 %v6814_v14, %v4060_v45 }
 0x574   :  { %v4166_v35 = vadd.f32 %v6814_v14, %v4057_v10  ;;  %4291 = vst.msk [vmem:[%s6966_s13 + $0x140] sm:$0xff] %vm4250_vm2, %v4834_v4 }
 0x575   :  { %4839 = vtanh.f32 %v4167_v5 }
 0x576   :  { %4841 = vtanh.f32 %v4166_v35 }
 0x57a   :  { %v4836_v18 = vpop.eup %4835 }
 0x57b   :  { %v4066_v13 = vpop.xlane.xlu1 %4065  ;;  %v4838_v31 = vpop.eup %4837  ;;  %4294 = vst.msk [vmem:[%s6966_s13 + $0x158] sm:$0xff] %vm4250_vm2, %v4836_v18 }
 0x57c   :  { %v4169_v1 = vadd.f32 %v6814_v14, %v4066_v13  ;;  %v4063_v30 = vpop.xlane.xlu0 %4062  ;;  %4293 = vst.msk [vmem:[%s6966_s13 + $0x150] sm:$0xff] %vm4250_vm2, %v4838_v31 }
 0x57d   :  { %v4168_v0 = vadd.f32 %v6814_v14, %v4063_v30 }
 0x57e   :  { %4843 = vtanh.f32 %v4169_v1 }
 0x57f   :  { %4845 = vtanh.f32 %v4168_v0 }
 0x582   :  { %v4840_v43 = vpop.eup %4839 }
 0x583   :  { %v4072_v21 = vpop.xlane.xlu1 %4071  ;;  %v4842_v61 = vpop.eup %4841  ;;  %4296 = vst.msk [vmem:[%s6966_s13 + $0x168] sm:$0xff] %vm4250_vm2, %v4840_v43 }
 0x584   :  { %v4171_v41 = vadd.f32 %v6814_v14, %v4072_v21  ;;  %v4069_v26 = vpop.xlane.xlu0 %4068  ;;  %4295 = vst.msk [vmem:[%s6966_s13 + $0x160] sm:$0xff] %vm4250_vm2, %v4842_v61 }
 0x585   :  { %v4170_v19 = vadd.f32 %v6814_v14, %v4069_v26 }
 0x586   :  { %4847 = vtanh.f32 %v4171_v41 }
 0x587   :  { %4849 = vtanh.f32 %v4170_v19 }
 0x58b   :  { %v4844_v47 = vpop.eup %4843  ;;  %v4078_v27 = vpop.xlane.xlu1 %4077 }
 0x58c   :  { %v4846_v29 = vpop.eup %4845  ;;  %4298 = vst.msk [vmem:[%s6966_s13 + $0x178] sm:$0xff] %vm4250_vm2, %v4844_v47  ;;  %v4173_v42 = vadd.f32 %v6814_v14, %v4078_v27  ;;  %v4075_v40 = vpop.xlane.xlu0 %4074 }
 0x58d   :  { %4297 = vst.msk [vmem:[%s6966_s13 + $0x170] sm:$0xff] %vm4250_vm2, %v4846_v29  ;;  %v4172_v39 = vadd.f32 %v6814_v14, %v4075_v40 }
 0x58e   :  { %4851 = vtanh.f32 %v4173_v42 }
 0x58f   :  { %4853 = vtanh.f32 %v4172_v39 }
 0x593   :  { %v4848_v36 = vpop.eup %4847  ;;  %v4084_v8 = vpop.xlane.xlu1 %4083 }
 0x594   :  { %v4850_v38 = vpop.eup %4849  ;;  %4300 = vst.msk [vmem:[%s6966_s13 + $0x188] sm:$0xff] %vm4250_vm2, %v4848_v36  ;;  %v4175_v53 = vadd.f32 %v6814_v14, %v4084_v8  ;;  %v4081_v7 = vpop.xlane.xlu0 %4080 }
 0x595   :  { %4299 = vst.msk [vmem:[%s6966_s13 + $0x180] sm:$0xff] %vm4250_vm2, %v4850_v38  ;;  %v4174_v51 = vadd.f32 %v6814_v14, %v4081_v7 }
 0x596   :  { %4855 = vtanh.f32 %v4175_v53 }
 0x597   :  { %4857 = vtanh.f32 %v4174_v51 }
 0x59b   :  { %v4852_v59 = vpop.eup %4851  ;;  %v4090_v58 = vpop.xlane.xlu1 %4089 }
 0x59c   :  { %v4854_v22 = vpop.eup %4853  ;;  %4302 = vst.msk [vmem:[%s6966_s13 + $0x198] sm:$0xff] %vm4250_vm2, %v4852_v59  ;;  %v4177_v44 = vadd.f32 %v6814_v14, %v4090_v58  ;;  %v4087_v46 = vpop.xlane.xlu0 %4086 }
 0x59d   :  { %4301 = vst.msk [vmem:[%s6966_s13 + $0x190] sm:$0xff] %vm4250_vm2, %v4854_v22  ;;  %v4176_v56 = vadd.f32 %v6814_v14, %v4087_v46 }
 0x59e   :  { %4859 = vtanh.f32 %v4177_v44 }
 0x59f   :  { %4861 = vtanh.f32 %v4176_v56 }
 0x5a3   :  { %v4856_v34 = vpop.eup %4855  ;;  %v4096_v50 = vpop.xlane.xlu1 %4095 }
 0x5a4   :  { %v4858_v3 = vpop.eup %4857  ;;  %4304 = vst.msk [vmem:[%s6966_s13 + $0x1a8] sm:$0xff] %vm4250_vm2, %v4856_v34  ;;  %v4179_v25 = vadd.f32 %v6814_v14, %v4096_v50  ;;  %v4093_v48 = vpop.xlane.xlu0 %4092 }
 0x5a5   :  { %4303 = vst.msk [vmem:[%s6966_s13 + $0x1a0] sm:$0xff] %vm4250_vm2, %v4858_v3  ;;  %v4178_v17 = vadd.f32 %v6814_v14, %v4093_v48 }
 0x5a6   :  { %4863 = vtanh.f32 %v4179_v25 }
 0x5a7   :  { %4865 = vtanh.f32 %v4178_v17 }
 0x5ab   :  { %v4860_v49 = vpop.eup %4859  ;;  %v4102_v33 = vpop.xlane.xlu1 %4101 }
 0x5ac   :  { %v4862_v20 = vpop.eup %4861  ;;  %4306 = vst.msk [vmem:[%s6966_s13 + $0x1b8] sm:$0xff] %vm4250_vm2, %v4860_v49  ;;  %v4181_v2 = vadd.f32 %v6814_v14, %v4102_v33  ;;  %v4099_v23 = vpop.xlane.xlu0 %4098 }
 0x5ad   :  { %4305 = vst.msk [vmem:[%s6966_s13 + $0x1b0] sm:$0xff] %vm4250_vm2, %v4862_v20  ;;  %v4180_v28 = vadd.f32 %v6814_v14, %v4099_v23 }
 0x5ae   :  { %4867 = vtanh.f32 %v4181_v2 }
 0x5af   :  { %4869 = vtanh.f32 %v4180_v28 }
 0x5b3   :  { %v4864_v37 = vpop.eup %4863  ;;  %v4108_v6 = vpop.xlane.xlu1 %4107 }
 0x5b4   :  { %v4866_v63 = vpop.eup %4865  ;;  %4308 = vst.msk [vmem:[%s6966_s13 + $0x1c8] sm:$0xff] %vm4250_vm2, %v4864_v37  ;;  %v4183_v55 = vadd.f32 %v6814_v14, %v4108_v6  ;;  %v4105_v57 = vpop.xlane.xlu0 %4104 }
 0x5b5   :  { %4307 = vst.msk [vmem:[%s6966_s13 + $0x1c0] sm:$0xff] %vm4250_vm2, %v4866_v63  ;;  %v4182_v62 = vadd.f32 %v6814_v14, %v4105_v57 }
 0x5b6   :  { %4871 = vtanh.f32 %v4183_v55 }
 0x5b7   :  { %4873 = vtanh.f32 %v4182_v62 }
 0x5bb   :  { %v4868_v24 = vpop.eup %4867  ;;  %v4114_v60 = vpop.xlane.xlu1 %4113 }
 0x5bc   :  { %v4111_v16 = vpop.xlane.xlu0 %4110  ;;  %v4870_v54 = vpop.eup %4869  ;;  %4310 = vst.msk [vmem:[%s6966_s13 + $0x1d8] sm:$0xff] %vm4250_vm2, %v4868_v24  ;;  %v4185_v52 = vadd.f32 %v6814_v14, %v4114_v60 }
 0x5bd   :  { %v4184_v11 = vadd.f32 %v6814_v14, %v4111_v16  ;;  %4309 = vst.msk [vmem:[%s6966_s13 + $0x1d0] sm:$0xff] %vm4250_vm2, %v4870_v54 }
 0x5be   :  { %4875 = vtanh.f32 %v4185_v52 }
 0x5bf   :  { %4877 = vtanh.f32 %v4184_v11 }
 0x5c3   :  { %v4872_v15 = vpop.eup %4871 }
 0x5c4   :  { %v4874_v9 = vpop.eup %4873  ;;  %4312 = vst.msk [vmem:[%s6966_s13 + $0x1e8] sm:$0xff] %vm4250_vm2, %v4872_v15 }
 0x5c5   :  { %4311 = vst.msk [vmem:[%s6966_s13 + $0x1e0] sm:$0xff] %vm4250_vm2, %v4874_v9 }
 0x5cb   :  { %v4876_v14 = vpop.eup %4875 }
 0x5cc   :  { %v4878_v32 = vpop.eup %4877  ;;  %4314 = vst.msk [vmem:[%s6966_s13 + $0x1f8] sm:$0xff] %vm4250_vm2, %v4876_v14 }
 0x5cd   :  { %4313 = vst.msk [vmem:[%s6966_s13 + $0x1f0] sm:$0xff] %vm4250_vm2, %v4878_v32 }
 0x5ce   :  { %4319 = vsyncpa [#allocation4], 1 }
 0x5cf   :  { %4320 = vsyncpa [#allocation6], 1 }

</bundles_post_ra>
